<compile_context>
chip_gen: v5e
topology: v5e:2x2
jax: 0.10.0
libtpu: 0.0.40
codegen_flags: <defaults>
</compile_context>

<pallas_src>
import math

import jax
import jax.numpy as jnp
from jax.experimental import pallas as pl
from jax.experimental.pallas import tpu as pltpu

# ----------------- small synthetic config (shapes implied by the module) -----
BATCH = 2
SEQ = 8
HIDDEN = 32
N_HEADS = 4
HEAD_DIM = HIDDEN // N_HEADS
FFN = 64
N_LAYERS = 2
VOCAB = 33
MASK_TOKEN_ID = 32       # ESM <mask> token id
LN_EPS = 1e-5


# ------------------------------ fused Pallas kernel --------------------------
def _esm_fused_kernel(
    x_ref, bias_ref, cos_ref, sin_ref, labels_ref,
    ln1g_ref, ln1b_ref, wqkv_ref, bqkv_ref, wo_ref, bo_ref,
    ln2g_ref, ln2b_ref, w1_ref, b1_ref, w2_ref, b2_ref,
    fing_ref, finb_ref, clsw_ref, clsb_ref, outw_ref, outb_ref,
    probs_ref, bce_ref,
):
    f32 = jnp.float32
    scale = 1.0 / math.sqrt(HEAD_DIM)
    inv_sqrt2 = 1.0 / math.sqrt(2.0)
    HH2 = HIDDEN // 2
    d2 = HEAD_DIM // 2
    HD = HEAD_DIM

    def layer_norm(x, g, b):
        mu = jnp.mean(x, axis=-1, keepdims=True)
        var = jnp.mean(jnp.square(x - mu), axis=-1, keepdims=True)
        return (x - mu) * jax.lax.rsqrt(var + LN_EPS) * g + b

    def mm(x, w, b):
        # bf16 transport -> f32 MXU accumulation; bias fused into the epilogue.
        return jnp.dot(x.astype(w.dtype), w, preferred_element_type=f32) + b

    def qk_dot(a, b):  # a @ b.T, contracting the head dim, no transpose op
        return jax.lax.dot_general(a, b, (((1,), (1,)), ((), ())),
                                   preferred_element_type=f32)

    h = x_ref[...]            # (B*S, H) f32 residual stream, stays in vregs/VMEM
    bias = bias_ref[...]      # (B*S, B*S) additive block mask (key + sample)
    cosf = cos_ref[...]       # (B*S, H/2) rotary tables, grouped-head layout
    sinf = sin_ref[...]

    for l in range(N_LAYERS):             # static unroll, no per-layer launches
        # ---------- self-attention block (pre-LN), fused QKV projection -------
        x_ln = layer_norm(h, ln1g_ref[l], ln1b_ref[l])
        qkv = mm(x_ln, wqkv_ref[l], bqkv_ref[l])           # (B*S, 3H) plain value

        # rotary on full slabs (W_q/W_k columns were permuted at init into
        # [half1 of all heads | half2 of all heads]); both halves share cos/sin.
        q1 = qkv[:, 0:HH2]
        q2 = qkv[:, HH2:HIDDEN]
        k1 = qkv[:, HIDDEN:HIDDEN + HH2]
        k2 = qkv[:, HIDDEN + HH2:2 * HIDDEN]
        qr1 = q1 * cosf - q2 * sinf
        qr2 = q2 * cosf + q1 * sinf
        kr1 = k1 * cosf - k2 * sinf
        kr2 = k2 * cosf + k1 * sinf

        def regroup(h1, h2):
            # grouped-halves -> per-head contiguous [h1|h2] so every head's
            # score is ONE K=HEAD_DIM MXU dot (instead of two K=HEAD_DIM/2 dots).
            parts = []
            for hd in range(N_HEADS):
                parts.append(h1[:, hd * d2:(hd + 1) * d2])
                parts.append(h2[:, hd * d2:(hd + 1) * d2])
            return jnp.concatenate(parts, axis=1)          # (B*S, H)

        q_rot = regroup(qr1, qr2)
        k_rot = regroup(kr1, kr2)

        ctx_heads = []
        for hd in range(N_HEADS):          # unrolled in-kernel, no per-head grid
            qh = q_rot[:, hd * HD:(hd + 1) * HD]
            kh = k_rot[:, hd * HD:(hd + 1) * HD]
            s = qk_dot(qh, kh) * scale + bias              # (B*S, B*S)
            # cross-sample / padded-key entries carry finfo.min bias -> exp()->0;
            # every query row has >=1 valid key (its own CLS), so max is finite.
            s = s - jnp.max(s, axis=-1, keepdims=True)
            p = jnp.exp(s)
            p = p * pl.reciprocal(jnp.sum(p, axis=-1, keepdims=True), approx=True)
            vh = qkv[:, 2 * HIDDEN + hd * HD:2 * HIDDEN + (hd + 1) * HD]
            ctx_heads.append(jnp.dot(p, vh, preferred_element_type=f32))

        ctx = jnp.concatenate(ctx_heads, axis=1)           # (B*S, H)
        # single K=HIDDEN out-projection (bf16 weight), residual + bias fused
        attn_out = h + mm(ctx, wo_ref[l], bo_ref[l])

        # ---------- feed-forward block (pre-LN), residual fused ---------------
        f_ln = layer_norm(attn_out, ln2g_ref[l], ln2b_ref[l])
        inter = mm(f_ln, w1_ref[l], b1_ref[l])
        inter = 0.5 * inter * (1.0 + jax.lax.erf(inter * inv_sqrt2))  # exact gelu
        h = mm(inter, w2_ref[l], b2_ref[l]) + attn_out

    # ---------- final LN + classifier head + sigmoid + BCE (CLS rows only) ----
    cls_rows = jnp.concatenate(
        [h[b * SEQ:b * SEQ + 1, :] for b in range(BATCH)], axis=0)     # (B, H)
    cls = layer_norm(cls_rows, fing_ref[...], finb_ref[...])
    t = jnp.tanh(mm(cls, clsw_ref[...], clsb_ref[...]))                # (B, H)
    logit = jnp.dot(t, outw_ref[...], preferred_element_type=f32) + outb_ref[...]
    prob = jax.nn.sigmoid(logit)                                       # (B, 1)
    y = labels_ref[...]                                                # (B, 1)
    # torch.nn.functional.binary_cross_entropy clamps log terms at -100
    log_p = jnp.maximum(jnp.log(prob), -100.0)
    log_1mp = jnp.maximum(jnp.log(1.0 - prob), -100.0)
    probs_ref[...] = prob
    bce_ref[...] = -(y * log_p + (1.0 - y) * log_1mp)


# ------------------------------ pallas_call wrapper --------------------------
def esm_forward_fused(x_flat, bias_full, cosf, sinf, labels2, params):
    weight_args = (
        params["ln1_g"], params["ln1_b"], params["wqkv"], params["bqkv"],
        params["wo"], params["bo"], params["ln2_g"], params["ln2_b"],
        params["w1"], params["b1"], params["w2"], params["b2"],
        params["final_ln_g"], params["final_ln_b"],
        params["cls_w"], params["cls_b"], params["out_w"], params["out_b"],
    )
    # single kernel invocation, no grid: every operand is a whole-array VMEM
    # block (everything here is tiny), so there is no per-step pipeline cost
    # and weights are DMA'd exactly once.
    probs, bce = pl.pallas_call(
        _esm_fused_kernel,
        out_shape=(jax.ShapeDtypeStruct((BATCH, 1), jnp.float32),
                   jax.ShapeDtypeStruct((BATCH, 1), jnp.float32)),
    )(x_flat, bias_full, cosf, sinf, labels2, *weight_args)
    return probs, bce


# ------------------------------- JAX glue -------------------------------------
def _qk_group_perm():
    # maps grouped column g -> canonical (per-head [h1|h2]) column, layout
    # [head0_h1, head1_h1, ..., head0_h2, head1_h2, ...]
    d2 = HEAD_DIM // 2
    idx = [hd * HEAD_DIM + half * d2 + r
           for half in range(2) for hd in range(N_HEADS) for r in range(d2)]
    return jnp.asarray(idx, dtype=jnp.int32)


def rotary_tables(seq_len, head_dim, n_heads, batch):
    # ESM rotary: inv_freq over head_dim/2; both halves use identical cos/sin.
    inv_freq = 1.0 / (10000.0 ** (jnp.arange(0, head_dim, 2, dtype=jnp.float32)
                                  / head_dim))
    t = jnp.arange(seq_len, dtype=jnp.float32)
    freqs = jnp.outer(t, inv_freq)                       # (S, head_dim/2)
    # tile lanes across heads (grouped-head layout) and sublanes across batch
    cosf = jnp.tile(jnp.cos(freqs), (batch, n_heads))    # (B*S, H/2)
    sinf = jnp.tile(jnp.sin(freqs), (batch, n_heads))
    return cosf, sinf


def init_params(key):
    ks = iter(jax.random.split(key, 12))

    def w(shape, scale=0.02):
        return scale * jax.random.normal(next(ks), shape, dtype=jnp.float32)

    L = N_LAYERS
    f32 = jnp.float32
    bf16 = jnp.bfloat16

    # canonical (PyTorch-layout) Q/K/V weights, then permute Q/K output columns
    # into [half1 of all heads | half2 of all heads] so the kernel runs rotary
    # on full slabs.  bf16 transport: documented precision delta vs f32 torch.
    perm = _qk_group_perm()
    wq = w((L, HIDDEN, HIDDEN))
    wk = w((L, HIDDEN, HIDDEN))
    wv = w((L, HIDDEN, HIDDEN))
    wqkv = jnp.concatenate([wq[..., perm], wk[..., perm], wv], axis=-1).astype(bf16)
    # biases are zero here; a real checkpoint would permute b_q/b_k identically.
    bqkv = jnp.zeros((L, 1, 3 * HIDDEN), f32)

    return dict(
        word_emb=w((VOCAB, HIDDEN)),
        ln1_g=jnp.ones((L, 1, HIDDEN), f32), ln1_b=jnp.zeros((L, 1, HIDDEN), f32),
        wqkv=wqkv, bqkv=bqkv,
        wo=w((L, HIDDEN, HIDDEN)).astype(bf16), bo=jnp.zeros((L, 1, HIDDEN), f32),
        ln2_g=jnp.ones((L, 1, HIDDEN), f32), ln2_b=jnp.zeros((L, 1, HIDDEN), f32),
        w1=w((L, HIDDEN, FFN)).astype(bf16), b1=jnp.zeros((L, 1, FFN), f32),
        w2=w((L, FFN, HIDDEN)).astype(bf16), b2=jnp.zeros((L, 1, HIDDEN), f32),
        final_ln_g=jnp.ones((1, HIDDEN), f32), final_ln_b=jnp.zeros((1, HIDDEN), f32),
        cls_w=w((HIDDEN, HIDDEN)).astype(bf16), cls_b=jnp.zeros((1, HIDDEN), f32),
        out_w=w((HIDDEN, 1)), out_b=jnp.zeros((1, 1), f32),
    )


def esm_classifier_forward(params, input_ids, attention_mask, labels):
    B, S = input_ids.shape
    mask_f = attention_mask.astype(jnp.float32)

    # --- ESM embeddings: gather + token-dropout rescale + attention-mask zero ---
    # TODO(synk): token gather is data-dependent; kept in XLA (a manual-DMA
    # Pallas gather is not worth it at VOCAB=33 / HIDDEN=32).
    x = params["word_emb"][input_ids]                          # (B, S, H)
    is_mask_tok = input_ids == MASK_TOKEN_ID
    x = jnp.where(is_mask_tok[..., None], 0.0, x)
    mask_ratio_train = 0.15 * 0.8
    src_len = jnp.maximum(jnp.sum(mask_f, axis=-1), 1.0)       # guard all-pad row
    mask_ratio_obs = jnp.sum(is_mask_tok.astype(jnp.float32), axis=-1) / src_len
    scale_td = (1.0 - mask_ratio_train) / jnp.maximum(1.0 - mask_ratio_obs, 1e-6)
    x = x * scale_td[:, None, None]
    x = x * mask_f[..., None]

    # fold batch into the sublane axis -> one kernel invocation
    x_flat = x.reshape(B * S, HIDDEN)

    # (B*S, B*S) additive block mask: -inf for cross-sample pairs and padded
    # keys (HF-style extended mask), 0 otherwise.
    neg = jnp.finfo(jnp.float32).min
    same = jnp.eye(B, dtype=jnp.bool_)[:, None, :, None]       # (B,1,B,1)
    key_ok = (mask_f > 0.5)[None, None, :, :]                  # (1,1,B,S)
    ok = jnp.broadcast_to(jnp.logical_and(same, key_ok), (B, S, B, S))
    bias_full = jnp.where(ok, 0.0, neg).reshape(B * S, B * S)

    cosf, sinf = rotary_tables(S, HEAD_DIM, N_HEADS, B)
    labels2 = labels.astype(jnp.float32).reshape(B, 1)

    probs, bce = esm_forward_fused(x_flat, bias_full, cosf, sinf, labels2, params)
    # mean of per-sample BCE over the batch: a 2-element reduction, left in XLA
    return probs, jnp.mean(bce)


# ------------------------------------ main ------------------------------------
if __name__ == "__main__":
    key = jax.random.PRNGKey(0)
    pkey, dkey, lkey = jax.random.split(key, 3)

    params = init_params(pkey)
    # amino-acid token range [4, 24), avoids the mask token (32)
    input_ids = jax.random.randint(dkey, (BATCH, SEQ), 4, 24, dtype=jnp.int32)
    attention_mask = jnp.array(
        [[1] * SEQ, [1] * (SEQ - 2) + [0] * 2], dtype=jnp.int32)
    labels = jax.random.bernoulli(lkey, 0.5, (BATCH, 1)).astype(jnp.float32)

    probs, loss = jax.jit(esm_classifier_forward)(
        params, input_ids, attention_mask, labels)
    jax.block_until_ready((probs, loss))

    assert probs.shape == (BATCH, 1)
    assert bool(jnp.all(jnp.isfinite(probs))) and bool(jnp.isfinite(loss))
    print("KERNEL_OK")
</pallas_src>

<mosaic_0001>
module attributes {stable_mosaic.version = 11 : i64} {
  func.func @_esm_fused_kernel(%arg0: memref<16x32xf32, #tpu.memory_space<vmem>>, %arg1: memref<16x16xf32, #tpu.memory_space<vmem>>, %arg2: memref<16x16xf32, #tpu.memory_space<vmem>>, %arg3: memref<16x16xf32, #tpu.memory_space<vmem>>, %arg4: memref<2x1xf32, #tpu.memory_space<vmem>>, %arg5: memref<2x1x32xf32, #tpu.memory_space<vmem>>, %arg6: memref<2x1x32xf32, #tpu.memory_space<vmem>>, %arg7: memref<2x32x96xbf16, #tpu.memory_space<vmem>>, %arg8: memref<2x1x96xf32, #tpu.memory_space<vmem>>, %arg9: memref<2x32x32xbf16, #tpu.memory_space<vmem>>, %arg10: memref<2x1x32xf32, #tpu.memory_space<vmem>>, %arg11: memref<2x1x32xf32, #tpu.memory_space<vmem>>, %arg12: memref<2x1x32xf32, #tpu.memory_space<vmem>>, %arg13: memref<2x32x64xbf16, #tpu.memory_space<vmem>>, %arg14: memref<2x1x64xf32, #tpu.memory_space<vmem>>, %arg15: memref<2x64x32xbf16, #tpu.memory_space<vmem>>, %arg16: memref<2x1x32xf32, #tpu.memory_space<vmem>>, %arg17: memref<1x32xf32, #tpu.memory_space<vmem>>, %arg18: memref<1x32xf32, #tpu.memory_space<vmem>>, %arg19: memref<32x32xbf16, #tpu.memory_space<vmem>>, %arg20: memref<1x32xf32, #tpu.memory_space<vmem>>, %arg21: memref<32x1xf32, #tpu.memory_space<vmem>>, %arg22: memref<1x1xf32, #tpu.memory_space<vmem>>, %arg23: memref<2x1xf32, #tpu.memory_space<vmem>>, %arg24: memref<2x1xf32, #tpu.memory_space<vmem>>) attributes {dimension_semantics = [], scalar_prefetch = 0 : i64, scratch_operands = 0 : i64, tpu.core_type = #tpu.core_type<tc>} {
    %c0 = arith.constant 0 : index
    %c0_0 = arith.constant 0 : index
    %0 = vector.load %arg0[%c0, %c0_0] : memref<16x32xf32, #tpu.memory_space<vmem>>, vector<16x32xf32>
    %c0_1 = arith.constant 0 : index
    %c0_2 = arith.constant 0 : index
    %1 = vector.load %arg1[%c0_1, %c0_2] : memref<16x16xf32, #tpu.memory_space<vmem>>, vector<16x16xf32>
    %c0_3 = arith.constant 0 : index
    %c0_4 = arith.constant 0 : index
    %2 = vector.load %arg2[%c0_3, %c0_4] : memref<16x16xf32, #tpu.memory_space<vmem>>, vector<16x16xf32>
    %c0_5 = arith.constant 0 : index
    %c0_6 = arith.constant 0 : index
    %3 = vector.load %arg3[%c0_5, %c0_6] : memref<16x16xf32, #tpu.memory_space<vmem>>, vector<16x16xf32>
    %c0_7 = arith.constant 0 : index
    %c0_8 = arith.constant 0 : index
    %c0_9 = arith.constant 0 : index
    %4 = vector.load %arg5[%c0_7, %c0_8, %c0_9] : memref<2x1x32xf32, #tpu.memory_space<vmem>>, vector<1x1x32xf32>
    %5 = vector.shape_cast %4 : vector<1x1x32xf32> to vector<1x32xf32>
    %c0_10 = arith.constant 0 : index
    %c0_11 = arith.constant 0 : index
    %c0_12 = arith.constant 0 : index
    %6 = vector.load %arg6[%c0_10, %c0_11, %c0_12] : memref<2x1x32xf32, #tpu.memory_space<vmem>>, vector<1x1x32xf32>
    %7 = vector.shape_cast %6 : vector<1x1x32xf32> to vector<1x32xf32>
    %cst = arith.constant dense<0.000000e+00> : vector<16xf32>
    %8 = vector.multi_reduction <add>, %0, %cst [1] : vector<16x32xf32> to vector<16xf32>
    %9 = vector.shape_cast %8 : vector<16xf32> to vector<16x1xf32>
    %cst_13 = arith.constant 3.200000e+01 : f32
    %10 = vector.broadcast %cst_13 : f32 to vector<16x1xf32>
    %11 = arith.divf %9, %10 : vector<16x1xf32>
    %12 = vector.broadcast %11 : vector<16x1xf32> to vector<16x32xf32>
    %13 = arith.subf %0, %12 : vector<16x32xf32>
    %14 = arith.mulf %13, %13 : vector<16x32xf32>
    %cst_14 = arith.constant dense<0.000000e+00> : vector<16xf32>
    %15 = vector.multi_reduction <add>, %14, %cst_14 [1] : vector<16x32xf32> to vector<16xf32>
    %16 = vector.shape_cast %15 : vector<16xf32> to vector<16x1xf32>
    %cst_15 = arith.constant 3.200000e+01 : f32
    %17 = vector.broadcast %cst_15 : f32 to vector<16x1xf32>
    %18 = arith.divf %16, %17 : vector<16x1xf32>
    %19 = vector.broadcast %11 : vector<16x1xf32> to vector<16x32xf32>
    %20 = arith.subf %0, %19 : vector<16x32xf32>
    %cst_16 = arith.constant 9.99999974E-6 : f32
    %21 = vector.broadcast %cst_16 : f32 to vector<16x1xf32>
    %22 = arith.addf %18, %21 : vector<16x1xf32>
    %23 = math.rsqrt %22 : vector<16x1xf32>
    %24 = vector.broadcast %23 : vector<16x1xf32> to vector<16x32xf32>
    %25 = arith.mulf %20, %24 : vector<16x32xf32>
    %26 = vector.broadcast %5 : vector<1x32xf32> to vector<16x32xf32>
    %27 = arith.mulf %25, %26 : vector<16x32xf32>
    %28 = vector.broadcast %7 : vector<1x32xf32> to vector<16x32xf32>
    %29 = arith.addf %27, %28 : vector<16x32xf32>
    %c0_17 = arith.constant 0 : index
    %c0_18 = arith.constant 0 : index
    %c0_19 = arith.constant 0 : index
    %30 = vector.load %arg7[%c0_17, %c0_18, %c0_19] : memref<2x32x96xbf16, #tpu.memory_space<vmem>>, vector<1x32x96xbf16>
    %31 = vector.shape_cast %30 : vector<1x32x96xbf16> to vector<32x96xbf16>
    %c0_20 = arith.constant 0 : index
    %c0_21 = arith.constant 0 : index
    %c0_22 = arith.constant 0 : index
    %32 = vector.load %arg8[%c0_20, %c0_21, %c0_22] : memref<2x1x96xf32, #tpu.memory_space<vmem>>, vector<1x1x96xf32>
    %33 = vector.shape_cast %32 : vector<1x1x96xf32> to vector<1x96xf32>
    %34 = arith.truncf %29 : vector<16x32xf32> to vector<16x32xbf16>
    %cst_23 = arith.constant dense<0.000000e+00> : vector<16x96xf32>
    %35 = tpu.matmul %34, %31, %cst_23 {dimension_numbers = #tpu.dot_dimension_numbers<[1], [0], [0], [1], [0, 0, 1, 1], [], []>} : vector<16x32xbf16>, vector<32x96xbf16>, vector<16x96xf32> -> vector<16x96xf32>
    %36 = vector.broadcast %33 : vector<1x96xf32> to vector<16x96xf32>
    %37 = arith.addf %35, %36 : vector<16x96xf32>
    %38 = vector.extract_strided_slice %37 {offsets = [0, 0], sizes = [16, 16], strides = [1, 1]} : vector<16x96xf32> to vector<16x16xf32>
    %39 = vector.extract_strided_slice %37 {offsets = [0, 16], sizes = [16, 16], strides = [1, 1]} : vector<16x96xf32> to vector<16x16xf32>
    %40 = vector.extract_strided_slice %37 {offsets = [0, 32], sizes = [16, 16], strides = [1, 1]} : vector<16x96xf32> to vector<16x16xf32>
    %41 = vector.extract_strided_slice %37 {offsets = [0, 48], sizes = [16, 16], strides = [1, 1]} : vector<16x96xf32> to vector<16x16xf32>
    %42 = arith.mulf %38, %2 : vector<16x16xf32>
    %43 = arith.mulf %39, %3 : vector<16x16xf32>
    %44 = arith.subf %42, %43 : vector<16x16xf32>
    %45 = arith.mulf %39, %2 : vector<16x16xf32>
    %46 = arith.mulf %38, %3 : vector<16x16xf32>
    %47 = arith.addf %45, %46 : vector<16x16xf32>
    %48 = arith.mulf %40, %2 : vector<16x16xf32>
    %49 = arith.mulf %41, %3 : vector<16x16xf32>
    %50 = arith.subf %48, %49 : vector<16x16xf32>
    %51 = arith.mulf %41, %2 : vector<16x16xf32>
    %52 = arith.mulf %40, %3 : vector<16x16xf32>
    %53 = arith.addf %51, %52 : vector<16x16xf32>
    %54 = vector.extract_strided_slice %44 {offsets = [0, 0], sizes = [16, 4], strides = [1, 1]} : vector<16x16xf32> to vector<16x4xf32>
    %55 = vector.extract_strided_slice %47 {offsets = [0, 0], sizes = [16, 4], strides = [1, 1]} : vector<16x16xf32> to vector<16x4xf32>
    %56 = vector.extract_strided_slice %44 {offsets = [0, 4], sizes = [16, 4], strides = [1, 1]} : vector<16x16xf32> to vector<16x4xf32>
    %57 = vector.extract_strided_slice %47 {offsets = [0, 4], sizes = [16, 4], strides = [1, 1]} : vector<16x16xf32> to vector<16x4xf32>
    %58 = vector.extract_strided_slice %44 {offsets = [0, 8], sizes = [16, 4], strides = [1, 1]} : vector<16x16xf32> to vector<16x4xf32>
    %59 = vector.extract_strided_slice %47 {offsets = [0, 8], sizes = [16, 4], strides = [1, 1]} : vector<16x16xf32> to vector<16x4xf32>
    %60 = vector.extract_strided_slice %44 {offsets = [0, 12], sizes = [16, 4], strides = [1, 1]} : vector<16x16xf32> to vector<16x4xf32>
    %61 = vector.extract_strided_slice %47 {offsets = [0, 12], sizes = [16, 4], strides = [1, 1]} : vector<16x16xf32> to vector<16x4xf32>
    %62 = tpu.concatenate %54, %55, %56, %57, %58, %59, %60, %61 in 1 : vector<16x4xf32>, vector<16x4xf32>, vector<16x4xf32>, vector<16x4xf32>, vector<16x4xf32>, vector<16x4xf32>, vector<16x4xf32>, vector<16x4xf32> -> vector<16x32xf32>
    %63 = vector.extract_strided_slice %50 {offsets = [0, 0], sizes = [16, 4], strides = [1, 1]} : vector<16x16xf32> to vector<16x4xf32>
    %64 = vector.extract_strided_slice %53 {offsets = [0, 0], sizes = [16, 4], strides = [1, 1]} : vector<16x16xf32> to vector<16x4xf32>
    %65 = vector.extract_strided_slice %50 {offsets = [0, 4], sizes = [16, 4], strides = [1, 1]} : vector<16x16xf32> to vector<16x4xf32>
    %66 = vector.extract_strided_slice %53 {offsets = [0, 4], sizes = [16, 4], strides = [1, 1]} : vector<16x16xf32> to vector<16x4xf32>
    %67 = vector.extract_strided_slice %50 {offsets = [0, 8], sizes = [16, 4], strides = [1, 1]} : vector<16x16xf32> to vector<16x4xf32>
    %68 = vector.extract_strided_slice %53 {offsets = [0, 8], sizes = [16, 4], strides = [1, 1]} : vector<16x16xf32> to vector<16x4xf32>
    %69 = vector.extract_strided_slice %50 {offsets = [0, 12], sizes = [16, 4], strides = [1, 1]} : vector<16x16xf32> to vector<16x4xf32>
    %70 = vector.extract_strided_slice %53 {offsets = [0, 12], sizes = [16, 4], strides = [1, 1]} : vector<16x16xf32> to vector<16x4xf32>
    %71 = tpu.concatenate %63, %64, %65, %66, %67, %68, %69, %70 in 1 : vector<16x4xf32>, vector<16x4xf32>, vector<16x4xf32>, vector<16x4xf32>, vector<16x4xf32>, vector<16x4xf32>, vector<16x4xf32>, vector<16x4xf32> -> vector<16x32xf32>
    %72 = vector.extract_strided_slice %62 {offsets = [0, 0], sizes = [16, 8], strides = [1, 1]} : vector<16x32xf32> to vector<16x8xf32>
    %73 = vector.extract_strided_slice %71 {offsets = [0, 0], sizes = [16, 8], strides = [1, 1]} : vector<16x32xf32> to vector<16x8xf32>
    %cst_24 = arith.constant dense<0.000000e+00> : vector<16x16xf32>
    %74 = tpu.matmul %72, %73, %cst_24 {dimension_numbers = #tpu.dot_dimension_numbers<[1], [1], [0], [0], [0, 0, 1, 0], [], []>} : vector<16x8xf32>, vector<16x8xf32>, vector<16x16xf32> -> vector<16x16xf32>
    %cst_25 = arith.constant 0.353553385 : f32
    %75 = vector.broadcast %cst_25 : f32 to vector<16x16xf32>
    %76 = arith.mulf %74, %75 : vector<16x16xf32>
    %77 = arith.addf %76, %1 : vector<16x16xf32>
    %cst_26 = arith.constant dense<0xFF800000> : vector<16xf32>
    %78 = vector.multi_reduction <maximumf>, %77, %cst_26 [1] : vector<16x16xf32> to vector<16xf32>
    %79 = vector.shape_cast %78 : vector<16xf32> to vector<16x1xf32>
    %80 = vector.broadcast %79 : vector<16x1xf32> to vector<16x16xf32>
    %81 = arith.subf %77, %80 : vector<16x16xf32>
    %82 = math.exp %81 : vector<16x16xf32>
    %cst_27 = arith.constant dense<0.000000e+00> : vector<16xf32>
    %83 = vector.multi_reduction <add>, %82, %cst_27 [1] : vector<16x16xf32> to vector<16xf32>
    %84 = vector.shape_cast %83 : vector<16xf32> to vector<16x1xf32>
    %85 = tpu.reciprocal %84 {approx = true} : vector<16x1xf32> -> vector<16x1xf32>
    %86 = vector.broadcast %85 : vector<16x1xf32> to vector<16x16xf32>
    %87 = arith.mulf %82, %86 : vector<16x16xf32>
    %88 = vector.extract_strided_slice %37 {offsets = [0, 64], sizes = [16, 8], strides = [1, 1]} : vector<16x96xf32> to vector<16x8xf32>
    %cst_28 = arith.constant dense<0.000000e+00> : vector<16x8xf32>
    %89 = tpu.matmul %87, %88, %cst_28 {dimension_numbers = #tpu.dot_dimension_numbers<[1], [0], [0], [1], [0, 0, 1, 1], [], []>} : vector<16x16xf32>, vector<16x8xf32>, vector<16x8xf32> -> vector<16x8xf32>
    %90 = vector.extract_strided_slice %62 {offsets = [0, 8], sizes = [16, 8], strides = [1, 1]} : vector<16x32xf32> to vector<16x8xf32>
    %91 = vector.extract_strided_slice %71 {offsets = [0, 8], sizes = [16, 8], strides = [1, 1]} : vector<16x32xf32> to vector<16x8xf32>
    %cst_29 = arith.constant dense<0.000000e+00> : vector<16x16xf32>
    %92 = tpu.matmul %90, %91, %cst_29 {dimension_numbers = #tpu.dot_dimension_numbers<[1], [1], [0], [0], [0, 0, 1, 0], [], []>} : vector<16x8xf32>, vector<16x8xf32>, vector<16x16xf32> -> vector<16x16xf32>
    %cst_30 = arith.constant 0.353553385 : f32
    %93 = vector.broadcast %cst_30 : f32 to vector<16x16xf32>
    %94 = arith.mulf %92, %93 : vector<16x16xf32>
    %95 = arith.addf %94, %1 : vector<16x16xf32>
    %cst_31 = arith.constant dense<0xFF800000> : vector<16xf32>
    %96 = vector.multi_reduction <maximumf>, %95, %cst_31 [1] : vector<16x16xf32> to vector<16xf32>
    %97 = vector.shape_cast %96 : vector<16xf32> to vector<16x1xf32>
    %98 = vector.broadcast %97 : vector<16x1xf32> to vector<16x16xf32>
    %99 = arith.subf %95, %98 : vector<16x16xf32>
    %100 = math.exp %99 : vector<16x16xf32>
    %cst_32 = arith.constant dense<0.000000e+00> : vector<16xf32>
    %101 = vector.multi_reduction <add>, %100, %cst_32 [1] : vector<16x16xf32> to vector<16xf32>
    %102 = vector.shape_cast %101 : vector<16xf32> to vector<16x1xf32>
    %103 = tpu.reciprocal %102 {approx = true} : vector<16x1xf32> -> vector<16x1xf32>
    %104 = vector.broadcast %103 : vector<16x1xf32> to vector<16x16xf32>
    %105 = arith.mulf %100, %104 : vector<16x16xf32>
    %106 = vector.extract_strided_slice %37 {offsets = [0, 72], sizes = [16, 8], strides = [1, 1]} : vector<16x96xf32> to vector<16x8xf32>
    %cst_33 = arith.constant dense<0.000000e+00> : vector<16x8xf32>
    %107 = tpu.matmul %105, %106, %cst_33 {dimension_numbers = #tpu.dot_dimension_numbers<[1], [0], [0], [1], [0, 0, 1, 1], [], []>} : vector<16x16xf32>, vector<16x8xf32>, vector<16x8xf32> -> vector<16x8xf32>
    %108 = vector.extract_strided_slice %62 {offsets = [0, 16], sizes = [16, 8], strides = [1, 1]} : vector<16x32xf32> to vector<16x8xf32>
    %109 = vector.extract_strided_slice %71 {offsets = [0, 16], sizes = [16, 8], strides = [1, 1]} : vector<16x32xf32> to vector<16x8xf32>
    %cst_34 = arith.constant dense<0.000000e+00> : vector<16x16xf32>
    %110 = tpu.matmul %108, %109, %cst_34 {dimension_numbers = #tpu.dot_dimension_numbers<[1], [1], [0], [0], [0, 0, 1, 0], [], []>} : vector<16x8xf32>, vector<16x8xf32>, vector<16x16xf32> -> vector<16x16xf32>
    %cst_35 = arith.constant 0.353553385 : f32
    %111 = vector.broadcast %cst_35 : f32 to vector<16x16xf32>
    %112 = arith.mulf %110, %111 : vector<16x16xf32>
    %113 = arith.addf %112, %1 : vector<16x16xf32>
    %cst_36 = arith.constant dense<0xFF800000> : vector<16xf32>
    %114 = vector.multi_reduction <maximumf>, %113, %cst_36 [1] : vector<16x16xf32> to vector<16xf32>
    %115 = vector.shape_cast %114 : vector<16xf32> to vector<16x1xf32>
    %116 = vector.broadcast %115 : vector<16x1xf32> to vector<16x16xf32>
    %117 = arith.subf %113, %116 : vector<16x16xf32>
    %118 = math.exp %117 : vector<16x16xf32>
    %cst_37 = arith.constant dense<0.000000e+00> : vector<16xf32>
    %119 = vector.multi_reduction <add>, %118, %cst_37 [1] : vector<16x16xf32> to vector<16xf32>
    %120 = vector.shape_cast %119 : vector<16xf32> to vector<16x1xf32>
    %121 = tpu.reciprocal %120 {approx = true} : vector<16x1xf32> -> vector<16x1xf32>
    %122 = vector.broadcast %121 : vector<16x1xf32> to vector<16x16xf32>
    %123 = arith.mulf %118, %122 : vector<16x16xf32>
    %124 = vector.extract_strided_slice %37 {offsets = [0, 80], sizes = [16, 8], strides = [1, 1]} : vector<16x96xf32> to vector<16x8xf32>
    %cst_38 = arith.constant dense<0.000000e+00> : vector<16x8xf32>
    %125 = tpu.matmul %123, %124, %cst_38 {dimension_numbers = #tpu.dot_dimension_numbers<[1], [0], [0], [1], [0, 0, 1, 1], [], []>} : vector<16x16xf32>, vector<16x8xf32>, vector<16x8xf32> -> vector<16x8xf32>
    %126 = vector.extract_strided_slice %62 {offsets = [0, 24], sizes = [16, 8], strides = [1, 1]} : vector<16x32xf32> to vector<16x8xf32>
    %127 = vector.extract_strided_slice %71 {offsets = [0, 24], sizes = [16, 8], strides = [1, 1]} : vector<16x32xf32> to vector<16x8xf32>
    %cst_39 = arith.constant dense<0.000000e+00> : vector<16x16xf32>
    %128 = tpu.matmul %126, %127, %cst_39 {dimension_numbers = #tpu.dot_dimension_numbers<[1], [1], [0], [0], [0, 0, 1, 0], [], []>} : vector<16x8xf32>, vector<16x8xf32>, vector<16x16xf32> -> vector<16x16xf32>
    %cst_40 = arith.constant 0.353553385 : f32
    %129 = vector.broadcast %cst_40 : f32 to vector<16x16xf32>
    %130 = arith.mulf %128, %129 : vector<16x16xf32>
    %131 = arith.addf %130, %1 : vector<16x16xf32>
    %cst_41 = arith.constant dense<0xFF800000> : vector<16xf32>
    %132 = vector.multi_reduction <maximumf>, %131, %cst_41 [1] : vector<16x16xf32> to vector<16xf32>
    %133 = vector.shape_cast %132 : vector<16xf32> to vector<16x1xf32>
    %134 = vector.broadcast %133 : vector<16x1xf32> to vector<16x16xf32>
    %135 = arith.subf %131, %134 : vector<16x16xf32>
    %136 = math.exp %135 : vector<16x16xf32>
    %cst_42 = arith.constant dense<0.000000e+00> : vector<16xf32>
    %137 = vector.multi_reduction <add>, %136, %cst_42 [1] : vector<16x16xf32> to vector<16xf32>
    %138 = vector.shape_cast %137 : vector<16xf32> to vector<16x1xf32>
    %139 = tpu.reciprocal %138 {approx = true} : vector<16x1xf32> -> vector<16x1xf32>
    %140 = vector.broadcast %139 : vector<16x1xf32> to vector<16x16xf32>
    %141 = arith.mulf %136, %140 : vector<16x16xf32>
    %142 = vector.extract_strided_slice %37 {offsets = [0, 88], sizes = [16, 8], strides = [1, 1]} : vector<16x96xf32> to vector<16x8xf32>
    %cst_43 = arith.constant dense<0.000000e+00> : vector<16x8xf32>
    %143 = tpu.matmul %141, %142, %cst_43 {dimension_numbers = #tpu.dot_dimension_numbers<[1], [0], [0], [1], [0, 0, 1, 1], [], []>} : vector<16x16xf32>, vector<16x8xf32>, vector<16x8xf32> -> vector<16x8xf32>
    %144 = tpu.concatenate %89, %107, %125, %143 in 1 : vector<16x8xf32>, vector<16x8xf32>, vector<16x8xf32>, vector<16x8xf32> -> vector<16x32xf32>
    %c0_44 = arith.constant 0 : index
    %c0_45 = arith.constant 0 : index
    %c0_46 = arith.constant 0 : index
    %145 = vector.load %arg9[%c0_44, %c0_45, %c0_46] : memref<2x32x32xbf16, #tpu.memory_space<vmem>>, vector<1x32x32xbf16>
    %146 = vector.shape_cast %145 : vector<1x32x32xbf16> to vector<32x32xbf16>
    %c0_47 = arith.constant 0 : index
    %c0_48 = arith.constant 0 : index
    %c0_49 = arith.constant 0 : index
    %147 = vector.load %arg10[%c0_47, %c0_48, %c0_49] : memref<2x1x32xf32, #tpu.memory_space<vmem>>, vector<1x1x32xf32>
    %148 = vector.shape_cast %147 : vector<1x1x32xf32> to vector<1x32xf32>
    %149 = arith.truncf %144 : vector<16x32xf32> to vector<16x32xbf16>
    %cst_50 = arith.constant dense<0.000000e+00> : vector<16x32xf32>
    %150 = tpu.matmul %149, %146, %cst_50 {dimension_numbers = #tpu.dot_dimension_numbers<[1], [0], [0], [1], [0, 0, 1, 1], [], []>} : vector<16x32xbf16>, vector<32x32xbf16>, vector<16x32xf32> -> vector<16x32xf32>
    %151 = vector.broadcast %148 : vector<1x32xf32> to vector<16x32xf32>
    %152 = arith.addf %150, %151 : vector<16x32xf32>
    %153 = arith.addf %0, %152 : vector<16x32xf32>
    %c0_51 = arith.constant 0 : index
    %c0_52 = arith.constant 0 : index
    %c0_53 = arith.constant 0 : index
    %154 = vector.load %arg11[%c0_51, %c0_52, %c0_53] : memref<2x1x32xf32, #tpu.memory_space<vmem>>, vector<1x1x32xf32>
    %155 = vector.shape_cast %154 : vector<1x1x32xf32> to vector<1x32xf32>
    %c0_54 = arith.constant 0 : index
    %c0_55 = arith.constant 0 : index
    %c0_56 = arith.constant 0 : index
    %156 = vector.load %arg12[%c0_54, %c0_55, %c0_56] : memref<2x1x32xf32, #tpu.memory_space<vmem>>, vector<1x1x32xf32>
    %157 = vector.shape_cast %156 : vector<1x1x32xf32> to vector<1x32xf32>
    %cst_57 = arith.constant dense<0.000000e+00> : vector<16xf32>
    %158 = vector.multi_reduction <add>, %153, %cst_57 [1] : vector<16x32xf32> to vector<16xf32>
    %159 = vector.shape_cast %158 : vector<16xf32> to vector<16x1xf32>
    %cst_58 = arith.constant 3.200000e+01 : f32
    %160 = vector.broadcast %cst_58 : f32 to vector<16x1xf32>
    %161 = arith.divf %159, %160 : vector<16x1xf32>
    %162 = vector.broadcast %161 : vector<16x1xf32> to vector<16x32xf32>
    %163 = arith.subf %153, %162 : vector<16x32xf32>
    %164 = arith.mulf %163, %163 : vector<16x32xf32>
    %cst_59 = arith.constant dense<0.000000e+00> : vector<16xf32>
    %165 = vector.multi_reduction <add>, %164, %cst_59 [1] : vector<16x32xf32> to vector<16xf32>
    %166 = vector.shape_cast %165 : vector<16xf32> to vector<16x1xf32>
    %cst_60 = arith.constant 3.200000e+01 : f32
    %167 = vector.broadcast %cst_60 : f32 to vector<16x1xf32>
    %168 = arith.divf %166, %167 : vector<16x1xf32>
    %169 = vector.broadcast %161 : vector<16x1xf32> to vector<16x32xf32>
    %170 = arith.subf %153, %169 : vector<16x32xf32>
    %cst_61 = arith.constant 9.99999974E-6 : f32
    %171 = vector.broadcast %cst_61 : f32 to vector<16x1xf32>
    %172 = arith.addf %168, %171 : vector<16x1xf32>
    %173 = math.rsqrt %172 : vector<16x1xf32>
    %174 = vector.broadcast %173 : vector<16x1xf32> to vector<16x32xf32>
    %175 = arith.mulf %170, %174 : vector<16x32xf32>
    %176 = vector.broadcast %155 : vector<1x32xf32> to vector<16x32xf32>
    %177 = arith.mulf %175, %176 : vector<16x32xf32>
    %178 = vector.broadcast %157 : vector<1x32xf32> to vector<16x32xf32>
    %179 = arith.addf %177, %178 : vector<16x32xf32>
    %c0_62 = arith.constant 0 : index
    %c0_63 = arith.constant 0 : index
    %c0_64 = arith.constant 0 : index
    %180 = vector.load %arg13[%c0_62, %c0_63, %c0_64] : memref<2x32x64xbf16, #tpu.memory_space<vmem>>, vector<1x32x64xbf16>
    %181 = vector.shape_cast %180 : vector<1x32x64xbf16> to vector<32x64xbf16>
    %c0_65 = arith.constant 0 : index
    %c0_66 = arith.constant 0 : index
    %c0_67 = arith.constant 0 : index
    %182 = vector.load %arg14[%c0_65, %c0_66, %c0_67] : memref<2x1x64xf32, #tpu.memory_space<vmem>>, vector<1x1x64xf32>
    %183 = vector.shape_cast %182 : vector<1x1x64xf32> to vector<1x64xf32>
    %184 = arith.truncf %179 : vector<16x32xf32> to vector<16x32xbf16>
    %cst_68 = arith.constant dense<0.000000e+00> : vector<16x64xf32>
    %185 = tpu.matmul %184, %181, %cst_68 {dimension_numbers = #tpu.dot_dimension_numbers<[1], [0], [0], [1], [0, 0, 1, 1], [], []>} : vector<16x32xbf16>, vector<32x64xbf16>, vector<16x64xf32> -> vector<16x64xf32>
    %186 = vector.broadcast %183 : vector<1x64xf32> to vector<16x64xf32>
    %187 = arith.addf %185, %186 : vector<16x64xf32>
    %cst_69 = arith.constant 5.000000e-01 : f32
    %188 = vector.broadcast %cst_69 : f32 to vector<16x64xf32>
    %189 = arith.mulf %188, %187 : vector<16x64xf32>
    %cst_70 = arith.constant 0.707106769 : f32
    %190 = vector.broadcast %cst_70 : f32 to vector<16x64xf32>
    %191 = arith.mulf %187, %190 : vector<16x64xf32>
    %192 = math.erf %191 : vector<16x64xf32>
    %cst_71 = arith.constant 1.000000e+00 : f32
    %193 = vector.broadcast %cst_71 : f32 to vector<16x64xf32>
    %194 = arith.addf %193, %192 : vector<16x64xf32>
    %195 = arith.mulf %189, %194 : vector<16x64xf32>
    %c0_72 = arith.constant 0 : index
    %c0_73 = arith.constant 0 : index
    %c0_74 = arith.constant 0 : index
    %196 = vector.load %arg15[%c0_72, %c0_73, %c0_74] : memref<2x64x32xbf16, #tpu.memory_space<vmem>>, vector<1x64x32xbf16>
    %197 = vector.shape_cast %196 : vector<1x64x32xbf16> to vector<64x32xbf16>
    %c0_75 = arith.constant 0 : index
    %c0_76 = arith.constant 0 : index
    %c0_77 = arith.constant 0 : index
    %198 = vector.load %arg16[%c0_75, %c0_76, %c0_77] : memref<2x1x32xf32, #tpu.memory_space<vmem>>, vector<1x1x32xf32>
    %199 = vector.shape_cast %198 : vector<1x1x32xf32> to vector<1x32xf32>
    %200 = arith.truncf %195 : vector<16x64xf32> to vector<16x64xbf16>
    %cst_78 = arith.constant dense<0.000000e+00> : vector<16x32xf32>
    %201 = tpu.matmul %200, %197, %cst_78 {dimension_numbers = #tpu.dot_dimension_numbers<[1], [0], [0], [1], [0, 0, 1, 1], [], []>} : vector<16x64xbf16>, vector<64x32xbf16>, vector<16x32xf32> -> vector<16x32xf32>
    %202 = vector.broadcast %199 : vector<1x32xf32> to vector<16x32xf32>
    %203 = arith.addf %201, %202 : vector<16x32xf32>
    %204 = arith.addf %203, %153 : vector<16x32xf32>
    %c1 = arith.constant 1 : index
    %c0_79 = arith.constant 0 : index
    %c0_80 = arith.constant 0 : index
    %205 = vector.load %arg5[%c1, %c0_79, %c0_80] : memref<2x1x32xf32, #tpu.memory_space<vmem>>, vector<1x1x32xf32>
    %206 = vector.shape_cast %205 : vector<1x1x32xf32> to vector<1x32xf32>
    %c1_81 = arith.constant 1 : index
    %c0_82 = arith.constant 0 : index
    %c0_83 = arith.constant 0 : index
    %207 = vector.load %arg6[%c1_81, %c0_82, %c0_83] : memref<2x1x32xf32, #tpu.memory_space<vmem>>, vector<1x1x32xf32>
    %208 = vector.shape_cast %207 : vector<1x1x32xf32> to vector<1x32xf32>
    %cst_84 = arith.constant dense<0.000000e+00> : vector<16xf32>
    %209 = vector.multi_reduction <add>, %204, %cst_84 [1] : vector<16x32xf32> to vector<16xf32>
    %210 = vector.shape_cast %209 : vector<16xf32> to vector<16x1xf32>
    %cst_85 = arith.constant 3.200000e+01 : f32
    %211 = vector.broadcast %cst_85 : f32 to vector<16x1xf32>
    %212 = arith.divf %210, %211 : vector<16x1xf32>
    %213 = vector.broadcast %212 : vector<16x1xf32> to vector<16x32xf32>
    %214 = arith.subf %204, %213 : vector<16x32xf32>
    %215 = arith.mulf %214, %214 : vector<16x32xf32>
    %cst_86 = arith.constant dense<0.000000e+00> : vector<16xf32>
    %216 = vector.multi_reduction <add>, %215, %cst_86 [1] : vector<16x32xf32> to vector<16xf32>
    %217 = vector.shape_cast %216 : vector<16xf32> to vector<16x1xf32>
    %cst_87 = arith.constant 3.200000e+01 : f32
    %218 = vector.broadcast %cst_87 : f32 to vector<16x1xf32>
    %219 = arith.divf %217, %218 : vector<16x1xf32>
    %220 = vector.broadcast %212 : vector<16x1xf32> to vector<16x32xf32>
    %221 = arith.subf %204, %220 : vector<16x32xf32>
    %cst_88 = arith.constant 9.99999974E-6 : f32
    %222 = vector.broadcast %cst_88 : f32 to vector<16x1xf32>
    %223 = arith.addf %219, %222 : vector<16x1xf32>
    %224 = math.rsqrt %223 : vector<16x1xf32>
    %225 = vector.broadcast %224 : vector<16x1xf32> to vector<16x32xf32>
    %226 = arith.mulf %221, %225 : vector<16x32xf32>
    %227 = vector.broadcast %206 : vector<1x32xf32> to vector<16x32xf32>
    %228 = arith.mulf %226, %227 : vector<16x32xf32>
    %229 = vector.broadcast %208 : vector<1x32xf32> to vector<16x32xf32>
    %230 = arith.addf %228, %229 : vector<16x32xf32>
    %c1_89 = arith.constant 1 : index
    %c0_90 = arith.constant 0 : index
    %c0_91 = arith.constant 0 : index
    %231 = vector.load %arg7[%c1_89, %c0_90, %c0_91] : memref<2x32x96xbf16, #tpu.memory_space<vmem>>, vector<1x32x96xbf16>
    %232 = vector.shape_cast %231 : vector<1x32x96xbf16> to vector<32x96xbf16>
    %c1_92 = arith.constant 1 : index
    %c0_93 = arith.constant 0 : index
    %c0_94 = arith.constant 0 : index
    %233 = vector.load %arg8[%c1_92, %c0_93, %c0_94] : memref<2x1x96xf32, #tpu.memory_space<vmem>>, vector<1x1x96xf32>
    %234 = vector.shape_cast %233 : vector<1x1x96xf32> to vector<1x96xf32>
    %235 = arith.truncf %230 : vector<16x32xf32> to vector<16x32xbf16>
    %cst_95 = arith.constant dense<0.000000e+00> : vector<16x96xf32>
    %236 = tpu.matmul %235, %232, %cst_95 {dimension_numbers = #tpu.dot_dimension_numbers<[1], [0], [0], [1], [0, 0, 1, 1], [], []>} : vector<16x32xbf16>, vector<32x96xbf16>, vector<16x96xf32> -> vector<16x96xf32>
    %237 = vector.broadcast %234 : vector<1x96xf32> to vector<16x96xf32>
    %238 = arith.addf %236, %237 : vector<16x96xf32>
    %239 = vector.extract_strided_slice %238 {offsets = [0, 0], sizes = [16, 16], strides = [1, 1]} : vector<16x96xf32> to vector<16x16xf32>
    %240 = vector.extract_strided_slice %238 {offsets = [0, 16], sizes = [16, 16], strides = [1, 1]} : vector<16x96xf32> to vector<16x16xf32>
    %241 = vector.extract_strided_slice %238 {offsets = [0, 32], sizes = [16, 16], strides = [1, 1]} : vector<16x96xf32> to vector<16x16xf32>
    %242 = vector.extract_strided_slice %238 {offsets = [0, 48], sizes = [16, 16], strides = [1, 1]} : vector<16x96xf32> to vector<16x16xf32>
    %243 = arith.mulf %239, %2 : vector<16x16xf32>
    %244 = arith.mulf %240, %3 : vector<16x16xf32>
    %245 = arith.subf %243, %244 : vector<16x16xf32>
    %246 = arith.mulf %240, %2 : vector<16x16xf32>
    %247 = arith.mulf %239, %3 : vector<16x16xf32>
    %248 = arith.addf %246, %247 : vector<16x16xf32>
    %249 = arith.mulf %241, %2 : vector<16x16xf32>
    %250 = arith.mulf %242, %3 : vector<16x16xf32>
    %251 = arith.subf %249, %250 : vector<16x16xf32>
    %252 = arith.mulf %242, %2 : vector<16x16xf32>
    %253 = arith.mulf %241, %3 : vector<16x16xf32>
    %254 = arith.addf %252, %253 : vector<16x16xf32>
    %255 = vector.extract_strided_slice %245 {offsets = [0, 0], sizes = [16, 4], strides = [1, 1]} : vector<16x16xf32> to vector<16x4xf32>
    %256 = vector.extract_strided_slice %248 {offsets = [0, 0], sizes = [16, 4], strides = [1, 1]} : vector<16x16xf32> to vector<16x4xf32>
    %257 = vector.extract_strided_slice %245 {offsets = [0, 4], sizes = [16, 4], strides = [1, 1]} : vector<16x16xf32> to vector<16x4xf32>
    %258 = vector.extract_strided_slice %248 {offsets = [0, 4], sizes = [16, 4], strides = [1, 1]} : vector<16x16xf32> to vector<16x4xf32>
    %259 = vector.extract_strided_slice %245 {offsets = [0, 8], sizes = [16, 4], strides = [1, 1]} : vector<16x16xf32> to vector<16x4xf32>
    %260 = vector.extract_strided_slice %248 {offsets = [0, 8], sizes = [16, 4], strides = [1, 1]} : vector<16x16xf32> to vector<16x4xf32>
    %261 = vector.extract_strided_slice %245 {offsets = [0, 12], sizes = [16, 4], strides = [1, 1]} : vector<16x16xf32> to vector<16x4xf32>
    %262 = vector.extract_strided_slice %248 {offsets = [0, 12], sizes = [16, 4], strides = [1, 1]} : vector<16x16xf32> to vector<16x4xf32>
    %263 = tpu.concatenate %255, %256, %257, %258, %259, %260, %261, %262 in 1 : vector<16x4xf32>, vector<16x4xf32>, vector<16x4xf32>, vector<16x4xf32>, vector<16x4xf32>, vector<16x4xf32>, vector<16x4xf32>, vector<16x4xf32> -> vector<16x32xf32>
    %264 = vector.extract_strided_slice %251 {offsets = [0, 0], sizes = [16, 4], strides = [1, 1]} : vector<16x16xf32> to vector<16x4xf32>
    %265 = vector.extract_strided_slice %254 {offsets = [0, 0], sizes = [16, 4], strides = [1, 1]} : vector<16x16xf32> to vector<16x4xf32>
    %266 = vector.extract_strided_slice %251 {offsets = [0, 4], sizes = [16, 4], strides = [1, 1]} : vector<16x16xf32> to vector<16x4xf32>
    %267 = vector.extract_strided_slice %254 {offsets = [0, 4], sizes = [16, 4], strides = [1, 1]} : vector<16x16xf32> to vector<16x4xf32>
    %268 = vector.extract_strided_slice %251 {offsets = [0, 8], sizes = [16, 4], strides = [1, 1]} : vector<16x16xf32> to vector<16x4xf32>
    %269 = vector.extract_strided_slice %254 {offsets = [0, 8], sizes = [16, 4], strides = [1, 1]} : vector<16x16xf32> to vector<16x4xf32>
    %270 = vector.extract_strided_slice %251 {offsets = [0, 12], sizes = [16, 4], strides = [1, 1]} : vector<16x16xf32> to vector<16x4xf32>
    %271 = vector.extract_strided_slice %254 {offsets = [0, 12], sizes = [16, 4], strides = [1, 1]} : vector<16x16xf32> to vector<16x4xf32>
    %272 = tpu.concatenate %264, %265, %266, %267, %268, %269, %270, %271 in 1 : vector<16x4xf32>, vector<16x4xf32>, vector<16x4xf32>, vector<16x4xf32>, vector<16x4xf32>, vector<16x4xf32>, vector<16x4xf32>, vector<16x4xf32> -> vector<16x32xf32>
    %273 = vector.extract_strided_slice %263 {offsets = [0, 0], sizes = [16, 8], strides = [1, 1]} : vector<16x32xf32> to vector<16x8xf32>
    %274 = vector.extract_strided_slice %272 {offsets = [0, 0], sizes = [16, 8], strides = [1, 1]} : vector<16x32xf32> to vector<16x8xf32>
    %cst_96 = arith.constant dense<0.000000e+00> : vector<16x16xf32>
    %275 = tpu.matmul %273, %274, %cst_96 {dimension_numbers = #tpu.dot_dimension_numbers<[1], [1], [0], [0], [0, 0, 1, 0], [], []>} : vector<16x8xf32>, vector<16x8xf32>, vector<16x16xf32> -> vector<16x16xf32>
    %cst_97 = arith.constant 0.353553385 : f32
    %276 = vector.broadcast %cst_97 : f32 to vector<16x16xf32>
    %277 = arith.mulf %275, %276 : vector<16x16xf32>
    %278 = arith.addf %277, %1 : vector<16x16xf32>
    %cst_98 = arith.constant dense<0xFF800000> : vector<16xf32>
    %279 = vector.multi_reduction <maximumf>, %278, %cst_98 [1] : vector<16x16xf32> to vector<16xf32>
    %280 = vector.shape_cast %279 : vector<16xf32> to vector<16x1xf32>
    %281 = vector.broadcast %280 : vector<16x1xf32> to vector<16x16xf32>
    %282 = arith.subf %278, %281 : vector<16x16xf32>
    %283 = math.exp %282 : vector<16x16xf32>
    %cst_99 = arith.constant dense<0.000000e+00> : vector<16xf32>
    %284 = vector.multi_reduction <add>, %283, %cst_99 [1] : vector<16x16xf32> to vector<16xf32>
    %285 = vector.shape_cast %284 : vector<16xf32> to vector<16x1xf32>
    %286 = tpu.reciprocal %285 {approx = true} : vector<16x1xf32> -> vector<16x1xf32>
    %287 = vector.broadcast %286 : vector<16x1xf32> to vector<16x16xf32>
    %288 = arith.mulf %283, %287 : vector<16x16xf32>
    %289 = vector.extract_strided_slice %238 {offsets = [0, 64], sizes = [16, 8], strides = [1, 1]} : vector<16x96xf32> to vector<16x8xf32>
    %cst_100 = arith.constant dense<0.000000e+00> : vector<16x8xf32>
    %290 = tpu.matmul %288, %289, %cst_100 {dimension_numbers = #tpu.dot_dimension_numbers<[1], [0], [0], [1], [0, 0, 1, 1], [], []>} : vector<16x16xf32>, vector<16x8xf32>, vector<16x8xf32> -> vector<16x8xf32>
    %291 = vector.extract_strided_slice %263 {offsets = [0, 8], sizes = [16, 8], strides = [1, 1]} : vector<16x32xf32> to vector<16x8xf32>
    %292 = vector.extract_strided_slice %272 {offsets = [0, 8], sizes = [16, 8], strides = [1, 1]} : vector<16x32xf32> to vector<16x8xf32>
    %cst_101 = arith.constant dense<0.000000e+00> : vector<16x16xf32>
    %293 = tpu.matmul %291, %292, %cst_101 {dimension_numbers = #tpu.dot_dimension_numbers<[1], [1], [0], [0], [0, 0, 1, 0], [], []>} : vector<16x8xf32>, vector<16x8xf32>, vector<16x16xf32> -> vector<16x16xf32>
    %cst_102 = arith.constant 0.353553385 : f32
    %294 = vector.broadcast %cst_102 : f32 to vector<16x16xf32>
    %295 = arith.mulf %293, %294 : vector<16x16xf32>
    %296 = arith.addf %295, %1 : vector<16x16xf32>
    %cst_103 = arith.constant dense<0xFF800000> : vector<16xf32>
    %297 = vector.multi_reduction <maximumf>, %296, %cst_103 [1] : vector<16x16xf32> to vector<16xf32>
    %298 = vector.shape_cast %297 : vector<16xf32> to vector<16x1xf32>
    %299 = vector.broadcast %298 : vector<16x1xf32> to vector<16x16xf32>
    %300 = arith.subf %296, %299 : vector<16x16xf32>
    %301 = math.exp %300 : vector<16x16xf32>
    %cst_104 = arith.constant dense<0.000000e+00> : vector<16xf32>
    %302 = vector.multi_reduction <add>, %301, %cst_104 [1] : vector<16x16xf32> to vector<16xf32>
    %303 = vector.shape_cast %302 : vector<16xf32> to vector<16x1xf32>
    %304 = tpu.reciprocal %303 {approx = true} : vector<16x1xf32> -> vector<16x1xf32>
    %305 = vector.broadcast %304 : vector<16x1xf32> to vector<16x16xf32>
    %306 = arith.mulf %301, %305 : vector<16x16xf32>
    %307 = vector.extract_strided_slice %238 {offsets = [0, 72], sizes = [16, 8], strides = [1, 1]} : vector<16x96xf32> to vector<16x8xf32>
    %cst_105 = arith.constant dense<0.000000e+00> : vector<16x8xf32>
    %308 = tpu.matmul %306, %307, %cst_105 {dimension_numbers = #tpu.dot_dimension_numbers<[1], [0], [0], [1], [0, 0, 1, 1], [], []>} : vector<16x16xf32>, vector<16x8xf32>, vector<16x8xf32> -> vector<16x8xf32>
    %309 = vector.extract_strided_slice %263 {offsets = [0, 16], sizes = [16, 8], strides = [1, 1]} : vector<16x32xf32> to vector<16x8xf32>
    %310 = vector.extract_strided_slice %272 {offsets = [0, 16], sizes = [16, 8], strides = [1, 1]} : vector<16x32xf32> to vector<16x8xf32>
    %cst_106 = arith.constant dense<0.000000e+00> : vector<16x16xf32>
    %311 = tpu.matmul %309, %310, %cst_106 {dimension_numbers = #tpu.dot_dimension_numbers<[1], [1], [0], [0], [0, 0, 1, 0], [], []>} : vector<16x8xf32>, vector<16x8xf32>, vector<16x16xf32> -> vector<16x16xf32>
    %cst_107 = arith.constant 0.353553385 : f32
    %312 = vector.broadcast %cst_107 : f32 to vector<16x16xf32>
    %313 = arith.mulf %311, %312 : vector<16x16xf32>
    %314 = arith.addf %313, %1 : vector<16x16xf32>
    %cst_108 = arith.constant dense<0xFF800000> : vector<16xf32>
    %315 = vector.multi_reduction <maximumf>, %314, %cst_108 [1] : vector<16x16xf32> to vector<16xf32>
    %316 = vector.shape_cast %315 : vector<16xf32> to vector<16x1xf32>
    %317 = vector.broadcast %316 : vector<16x1xf32> to vector<16x16xf32>
    %318 = arith.subf %314, %317 : vector<16x16xf32>
    %319 = math.exp %318 : vector<16x16xf32>
    %cst_109 = arith.constant dense<0.000000e+00> : vector<16xf32>
    %320 = vector.multi_reduction <add>, %319, %cst_109 [1] : vector<16x16xf32> to vector<16xf32>
    %321 = vector.shape_cast %320 : vector<16xf32> to vector<16x1xf32>
    %322 = tpu.reciprocal %321 {approx = true} : vector<16x1xf32> -> vector<16x1xf32>
    %323 = vector.broadcast %322 : vector<16x1xf32> to vector<16x16xf32>
    %324 = arith.mulf %319, %323 : vector<16x16xf32>
    %325 = vector.extract_strided_slice %238 {offsets = [0, 80], sizes = [16, 8], strides = [1, 1]} : vector<16x96xf32> to vector<16x8xf32>
    %cst_110 = arith.constant dense<0.000000e+00> : vector<16x8xf32>
    %326 = tpu.matmul %324, %325, %cst_110 {dimension_numbers = #tpu.dot_dimension_numbers<[1], [0], [0], [1], [0, 0, 1, 1], [], []>} : vector<16x16xf32>, vector<16x8xf32>, vector<16x8xf32> -> vector<16x8xf32>
    %327 = vector.extract_strided_slice %263 {offsets = [0, 24], sizes = [16, 8], strides = [1, 1]} : vector<16x32xf32> to vector<16x8xf32>
    %328 = vector.extract_strided_slice %272 {offsets = [0, 24], sizes = [16, 8], strides = [1, 1]} : vector<16x32xf32> to vector<16x8xf32>
    %cst_111 = arith.constant dense<0.000000e+00> : vector<16x16xf32>
    %329 = tpu.matmul %327, %328, %cst_111 {dimension_numbers = #tpu.dot_dimension_numbers<[1], [1], [0], [0], [0, 0, 1, 0], [], []>} : vector<16x8xf32>, vector<16x8xf32>, vector<16x16xf32> -> vector<16x16xf32>
    %cst_112 = arith.constant 0.353553385 : f32
    %330 = vector.broadcast %cst_112 : f32 to vector<16x16xf32>
    %331 = arith.mulf %329, %330 : vector<16x16xf32>
    %332 = arith.addf %331, %1 : vector<16x16xf32>
    %cst_113 = arith.constant dense<0xFF800000> : vector<16xf32>
    %333 = vector.multi_reduction <maximumf>, %332, %cst_113 [1] : vector<16x16xf32> to vector<16xf32>
    %334 = vector.shape_cast %333 : vector<16xf32> to vector<16x1xf32>
    %335 = vector.broadcast %334 : vector<16x1xf32> to vector<16x16xf32>
    %336 = arith.subf %332, %335 : vector<16x16xf32>
    %337 = math.exp %336 : vector<16x16xf32>
    %cst_114 = arith.constant dense<0.000000e+00> : vector<16xf32>
    %338 = vector.multi_reduction <add>, %337, %cst_114 [1] : vector<16x16xf32> to vector<16xf32>
    %339 = vector.shape_cast %338 : vector<16xf32> to vector<16x1xf32>
    %340 = tpu.reciprocal %339 {approx = true} : vector<16x1xf32> -> vector<16x1xf32>
    %341 = vector.broadcast %340 : vector<16x1xf32> to vector<16x16xf32>
    %342 = arith.mulf %337, %341 : vector<16x16xf32>
    %343 = vector.extract_strided_slice %238 {offsets = [0, 88], sizes = [16, 8], strides = [1, 1]} : vector<16x96xf32> to vector<16x8xf32>
    %cst_115 = arith.constant dense<0.000000e+00> : vector<16x8xf32>
    %344 = tpu.matmul %342, %343, %cst_115 {dimension_numbers = #tpu.dot_dimension_numbers<[1], [0], [0], [1], [0, 0, 1, 1], [], []>} : vector<16x16xf32>, vector<16x8xf32>, vector<16x8xf32> -> vector<16x8xf32>
    %345 = tpu.concatenate %290, %308, %326, %344 in 1 : vector<16x8xf32>, vector<16x8xf32>, vector<16x8xf32>, vector<16x8xf32> -> vector<16x32xf32>
    %c1_116 = arith.constant 1 : index
    %c0_117 = arith.constant 0 : index
    %c0_118 = arith.constant 0 : index
    %346 = vector.load %arg9[%c1_116, %c0_117, %c0_118] : memref<2x32x32xbf16, #tpu.memory_space<vmem>>, vector<1x32x32xbf16>
    %347 = vector.shape_cast %346 : vector<1x32x32xbf16> to vector<32x32xbf16>
    %c1_119 = arith.constant 1 : index
    %c0_120 = arith.constant 0 : index
    %c0_121 = arith.constant 0 : index
    %348 = vector.load %arg10[%c1_119, %c0_120, %c0_121] : memref<2x1x32xf32, #tpu.memory_space<vmem>>, vector<1x1x32xf32>
    %349 = vector.shape_cast %348 : vector<1x1x32xf32> to vector<1x32xf32>
    %350 = arith.truncf %345 : vector<16x32xf32> to vector<16x32xbf16>
    %cst_122 = arith.constant dense<0.000000e+00> : vector<16x32xf32>
    %351 = tpu.matmul %350, %347, %cst_122 {dimension_numbers = #tpu.dot_dimension_numbers<[1], [0], [0], [1], [0, 0, 1, 1], [], []>} : vector<16x32xbf16>, vector<32x32xbf16>, vector<16x32xf32> -> vector<16x32xf32>
    %352 = vector.broadcast %349 : vector<1x32xf32> to vector<16x32xf32>
    %353 = arith.addf %351, %352 : vector<16x32xf32>
    %354 = arith.addf %204, %353 : vector<16x32xf32>
    %c1_123 = arith.constant 1 : index
    %c0_124 = arith.constant 0 : index
    %c0_125 = arith.constant 0 : index
    %355 = vector.load %arg11[%c1_123, %c0_124, %c0_125] : memref<2x1x32xf32, #tpu.memory_space<vmem>>, vector<1x1x32xf32>
    %356 = vector.shape_cast %355 : vector<1x1x32xf32> to vector<1x32xf32>
    %c1_126 = arith.constant 1 : index
    %c0_127 = arith.constant 0 : index
    %c0_128 = arith.constant 0 : index
    %357 = vector.load %arg12[%c1_126, %c0_127, %c0_128] : memref<2x1x32xf32, #tpu.memory_space<vmem>>, vector<1x1x32xf32>
    %358 = vector.shape_cast %357 : vector<1x1x32xf32> to vector<1x32xf32>
    %cst_129 = arith.constant dense<0.000000e+00> : vector<16xf32>
    %359 = vector.multi_reduction <add>, %354, %cst_129 [1] : vector<16x32xf32> to vector<16xf32>
    %360 = vector.shape_cast %359 : vector<16xf32> to vector<16x1xf32>
    %cst_130 = arith.constant 3.200000e+01 : f32
    %361 = vector.broadcast %cst_130 : f32 to vector<16x1xf32>
    %362 = arith.divf %360, %361 : vector<16x1xf32>
    %363 = vector.broadcast %362 : vector<16x1xf32> to vector<16x32xf32>
    %364 = arith.subf %354, %363 : vector<16x32xf32>
    %365 = arith.mulf %364, %364 : vector<16x32xf32>
    %cst_131 = arith.constant dense<0.000000e+00> : vector<16xf32>
    %366 = vector.multi_reduction <add>, %365, %cst_131 [1] : vector<16x32xf32> to vector<16xf32>
    %367 = vector.shape_cast %366 : vector<16xf32> to vector<16x1xf32>
    %cst_132 = arith.constant 3.200000e+01 : f32
    %368 = vector.broadcast %cst_132 : f32 to vector<16x1xf32>
    %369 = arith.divf %367, %368 : vector<16x1xf32>
    %370 = vector.broadcast %362 : vector<16x1xf32> to vector<16x32xf32>
    %371 = arith.subf %354, %370 : vector<16x32xf32>
    %cst_133 = arith.constant 9.99999974E-6 : f32
    %372 = vector.broadcast %cst_133 : f32 to vector<16x1xf32>
    %373 = arith.addf %369, %372 : vector<16x1xf32>
    %374 = math.rsqrt %373 : vector<16x1xf32>
    %375 = vector.broadcast %374 : vector<16x1xf32> to vector<16x32xf32>
    %376 = arith.mulf %371, %375 : vector<16x32xf32>
    %377 = vector.broadcast %356 : vector<1x32xf32> to vector<16x32xf32>
    %378 = arith.mulf %376, %377 : vector<16x32xf32>
    %379 = vector.broadcast %358 : vector<1x32xf32> to vector<16x32xf32>
    %380 = arith.addf %378, %379 : vector<16x32xf32>
    %c1_134 = arith.constant 1 : index
    %c0_135 = arith.constant 0 : index
    %c0_136 = arith.constant 0 : index
    %381 = vector.load %arg13[%c1_134, %c0_135, %c0_136] : memref<2x32x64xbf16, #tpu.memory_space<vmem>>, vector<1x32x64xbf16>
    %382 = vector.shape_cast %381 : vector<1x32x64xbf16> to vector<32x64xbf16>
    %c1_137 = arith.constant 1 : index
    %c0_138 = arith.constant 0 : index
    %c0_139 = arith.constant 0 : index
    %383 = vector.load %arg14[%c1_137, %c0_138, %c0_139] : memref<2x1x64xf32, #tpu.memory_space<vmem>>, vector<1x1x64xf32>
    %384 = vector.shape_cast %383 : vector<1x1x64xf32> to vector<1x64xf32>
    %385 = arith.truncf %380 : vector<16x32xf32> to vector<16x32xbf16>
    %cst_140 = arith.constant dense<0.000000e+00> : vector<16x64xf32>
    %386 = tpu.matmul %385, %382, %cst_140 {dimension_numbers = #tpu.dot_dimension_numbers<[1], [0], [0], [1], [0, 0, 1, 1], [], []>} : vector<16x32xbf16>, vector<32x64xbf16>, vector<16x64xf32> -> vector<16x64xf32>
    %387 = vector.broadcast %384 : vector<1x64xf32> to vector<16x64xf32>
    %388 = arith.addf %386, %387 : vector<16x64xf32>
    %cst_141 = arith.constant 5.000000e-01 : f32
    %389 = vector.broadcast %cst_141 : f32 to vector<16x64xf32>
    %390 = arith.mulf %389, %388 : vector<16x64xf32>
    %cst_142 = arith.constant 0.707106769 : f32
    %391 = vector.broadcast %cst_142 : f32 to vector<16x64xf32>
    %392 = arith.mulf %388, %391 : vector<16x64xf32>
    %393 = math.erf %392 : vector<16x64xf32>
    %cst_143 = arith.constant 1.000000e+00 : f32
    %394 = vector.broadcast %cst_143 : f32 to vector<16x64xf32>
    %395 = arith.addf %394, %393 : vector<16x64xf32>
    %396 = arith.mulf %390, %395 : vector<16x64xf32>
    %c1_144 = arith.constant 1 : index
    %c0_145 = arith.constant 0 : index
    %c0_146 = arith.constant 0 : index
    %397 = vector.load %arg15[%c1_144, %c0_145, %c0_146] : memref<2x64x32xbf16, #tpu.memory_space<vmem>>, vector<1x64x32xbf16>
    %398 = vector.shape_cast %397 : vector<1x64x32xbf16> to vector<64x32xbf16>
    %c1_147 = arith.constant 1 : index
    %c0_148 = arith.constant 0 : index
    %c0_149 = arith.constant 0 : index
    %399 = vector.load %arg16[%c1_147, %c0_148, %c0_149] : memref<2x1x32xf32, #tpu.memory_space<vmem>>, vector<1x1x32xf32>
    %400 = vector.shape_cast %399 : vector<1x1x32xf32> to vector<1x32xf32>
    %401 = arith.truncf %396 : vector<16x64xf32> to vector<16x64xbf16>
    %cst_150 = arith.constant dense<0.000000e+00> : vector<16x32xf32>
    %402 = tpu.matmul %401, %398, %cst_150 {dimension_numbers = #tpu.dot_dimension_numbers<[1], [0], [0], [1], [0, 0, 1, 1], [], []>} : vector<16x64xbf16>, vector<64x32xbf16>, vector<16x32xf32> -> vector<16x32xf32>
    %403 = vector.broadcast %400 : vector<1x32xf32> to vector<16x32xf32>
    %404 = arith.addf %402, %403 : vector<16x32xf32>
    %405 = arith.addf %404, %354 : vector<16x32xf32>
    %406 = vector.extract_strided_slice %405 {offsets = [0, 0], sizes = [1, 32], strides = [1, 1]} : vector<16x32xf32> to vector<1x32xf32>
    %407 = vector.extract_strided_slice %405 {offsets = [8, 0], sizes = [1, 32], strides = [1, 1]} : vector<16x32xf32> to vector<1x32xf32>
    %408 = tpu.concatenate %406, %407 in 0 : vector<1x32xf32>, vector<1x32xf32> -> vector<2x32xf32>
    %c0_151 = arith.constant 0 : index
    %c0_152 = arith.constant 0 : index
    %409 = vector.load %arg17[%c0_151, %c0_152] : memref<1x32xf32, #tpu.memory_space<vmem>>, vector<1x32xf32>
    %c0_153 = arith.constant 0 : index
    %c0_154 = arith.constant 0 : index
    %410 = vector.load %arg18[%c0_153, %c0_154] : memref<1x32xf32, #tpu.memory_space<vmem>>, vector<1x32xf32>
    %cst_155 = arith.constant dense<0.000000e+00> : vector<2xf32>
    %411 = vector.multi_reduction <add>, %408, %cst_155 [1] : vector<2x32xf32> to vector<2xf32>
    %412 = vector.shape_cast %411 : vector<2xf32> to vector<2x1xf32>
    %cst_156 = arith.constant 3.200000e+01 : f32
    %413 = vector.broadcast %cst_156 : f32 to vector<2x1xf32>
    %414 = arith.divf %412, %413 : vector<2x1xf32>
    %415 = vector.broadcast %414 : vector<2x1xf32> to vector<2x32xf32>
    %416 = arith.subf %408, %415 : vector<2x32xf32>
    %417 = arith.mulf %416, %416 : vector<2x32xf32>
    %cst_157 = arith.constant dense<0.000000e+00> : vector<2xf32>
    %418 = vector.multi_reduction <add>, %417, %cst_157 [1] : vector<2x32xf32> to vector<2xf32>
    %419 = vector.shape_cast %418 : vector<2xf32> to vector<2x1xf32>
    %cst_158 = arith.constant 3.200000e+01 : f32
    %420 = vector.broadcast %cst_158 : f32 to vector<2x1xf32>
    %421 = arith.divf %419, %420 : vector<2x1xf32>
    %422 = vector.broadcast %414 : vector<2x1xf32> to vector<2x32xf32>
    %423 = arith.subf %408, %422 : vector<2x32xf32>
    %cst_159 = arith.constant 9.99999974E-6 : f32
    %424 = vector.broadcast %cst_159 : f32 to vector<2x1xf32>
    %425 = arith.addf %421, %424 : vector<2x1xf32>
    %426 = math.rsqrt %425 : vector<2x1xf32>
    %427 = vector.broadcast %426 : vector<2x1xf32> to vector<2x32xf32>
    %428 = arith.mulf %423, %427 : vector<2x32xf32>
    %429 = vector.broadcast %409 : vector<1x32xf32> to vector<2x32xf32>
    %430 = arith.mulf %428, %429 : vector<2x32xf32>
    %431 = vector.broadcast %410 : vector<1x32xf32> to vector<2x32xf32>
    %432 = arith.addf %430, %431 : vector<2x32xf32>
    %c0_160 = arith.constant 0 : index
    %c0_161 = arith.constant 0 : index
    %433 = vector.load %arg19[%c0_160, %c0_161] : memref<32x32xbf16, #tpu.memory_space<vmem>>, vector<32x32xbf16>
    %c0_162 = arith.constant 0 : index
    %c0_163 = arith.constant 0 : index
    %434 = vector.load %arg20[%c0_162, %c0_163] : memref<1x32xf32, #tpu.memory_space<vmem>>, vector<1x32xf32>
    %435 = arith.truncf %432 : vector<2x32xf32> to vector<2x32xbf16>
    %cst_164 = arith.constant dense<0.000000e+00> : vector<2x32xf32>
    %436 = tpu.matmul %435, %433, %cst_164 {dimension_numbers = #tpu.dot_dimension_numbers<[1], [0], [0], [1], [0, 0, 1, 1], [], []>} : vector<2x32xbf16>, vector<32x32xbf16>, vector<2x32xf32> -> vector<2x32xf32>
    %437 = vector.broadcast %434 : vector<1x32xf32> to vector<2x32xf32>
    %438 = arith.addf %436, %437 : vector<2x32xf32>
    %439 = math.tanh %438 : vector<2x32xf32>
    %c0_165 = arith.constant 0 : index
    %c0_166 = arith.constant 0 : index
    %440 = vector.load %arg21[%c0_165, %c0_166] : memref<32x1xf32, #tpu.memory_space<vmem>>, vector<32x1xf32>
    %cst_167 = arith.constant dense<0.000000e+00> : vector<2x1xf32>
    %441 = tpu.matmul %439, %440, %cst_167 {dimension_numbers = #tpu.dot_dimension_numbers<[1], [0], [0], [1], [0, 0, 1, 1], [], []>} : vector<2x32xf32>, vector<32x1xf32>, vector<2x1xf32> -> vector<2x1xf32>
    %c0_168 = arith.constant 0 : index
    %c0_169 = arith.constant 0 : index
    %442 = vector.load %arg22[%c0_168, %c0_169] : memref<1x1xf32, #tpu.memory_space<vmem>>, vector<1x1xf32>
    %443 = vector.broadcast %442 : vector<1x1xf32> to vector<2x1xf32>
    %444 = arith.addf %441, %443 : vector<2x1xf32>
    %445 = arith.negf %444 : vector<2x1xf32>
    %446 = math.exp %445 : vector<2x1xf32>
    %cst_170 = arith.constant 1.000000e+00 : f32
    %447 = vector.broadcast %cst_170 : f32 to vector<2x1xf32>
    %448 = arith.addf %447, %446 : vector<2x1xf32>
    %449 = arith.divf %447, %448 : vector<2x1xf32>
    %c0_171 = arith.constant 0 : index
    %c0_172 = arith.constant 0 : index
    %450 = vector.load %arg4[%c0_171, %c0_172] : memref<2x1xf32, #tpu.memory_space<vmem>>, vector<2x1xf32>
    %451 = math.log %449 : vector<2x1xf32>
    %cst_173 = arith.constant -1.000000e+02 : f32
    %452 = vector.broadcast %cst_173 : f32 to vector<2x1xf32>
    %453 = arith.maximumf %451, %452 : vector<2x1xf32>
    %cst_174 = arith.constant 1.000000e+00 : f32
    %454 = vector.broadcast %cst_174 : f32 to vector<2x1xf32>
    %455 = arith.subf %454, %449 : vector<2x1xf32>
    %456 = math.log %455 : vector<2x1xf32>
    %cst_175 = arith.constant -1.000000e+02 : f32
    %457 = vector.broadcast %cst_175 : f32 to vector<2x1xf32>
    %458 = arith.maximumf %456, %457 : vector<2x1xf32>
    %c0_176 = arith.constant 0 : index
    %c0_177 = arith.constant 0 : index
    %459 = vector.load %arg23[%c0_176, %c0_177] : memref<2x1xf32, #tpu.memory_space<vmem>>, vector<2x1xf32>
    tpu.vector_store %arg23[%c0_176, %c0_177], %449 {strides = array<i32>} : memref<2x1xf32, #tpu.memory_space<vmem>>, vector<2x1xf32>,
    %460 = arith.mulf %450, %453 : vector<2x1xf32>
    %cst_178 = arith.constant 1.000000e+00 : f32
    %461 = vector.broadcast %cst_178 : f32 to vector<2x1xf32>
    %462 = arith.subf %461, %450 : vector<2x1xf32>
    %463 = arith.mulf %462, %458 : vector<2x1xf32>
    %464 = arith.addf %460, %463 : vector<2x1xf32>
    %cst_179 = arith.constant 0.000000e+00 : f32
    %465 = vector.broadcast %cst_179 : f32 to vector<2x1xf32>
    %466 = arith.subf %465, %464 : vector<2x1xf32>
    %c0_180 = arith.constant 0 : index
    %c0_181 = arith.constant 0 : index
    %467 = vector.load %arg24[%c0_180, %c0_181] : memref<2x1xf32, #tpu.memory_space<vmem>>, vector<2x1xf32>
    tpu.vector_store %arg24[%c0_180, %c0_181], %466 {strides = array<i32>} : memref<2x1xf32, #tpu.memory_space<vmem>>, vector<2x1xf32>,
    return
  }
}

</mosaic_0001>

<bundles_post_ra>
// kernel: tile.18
= control target key start
LH: loop header
LB: loop body
LE: loop exit
PB: predicated region body
PF: predicated region fallthrough
CT: control target
= control target key end

     0   :  { %s130_s0 = inlined_call_operand.vmem [shape: f32[8,4], index: 0, kind: input, shape index: {}]   ;;  %s131_s1 = inlined_call_operand.vmem [shape: f32[2,8,4,4], index: 1, kind: output, shape index: {}]  }
   0x1   :  { %v4_v0 = vld [vmem:[%s130_s0] ss:$0 sm:$0xff]  ;;  %v45_v1 = vld [vmem:[%s130_s0 + $0x1] ss:$0 sm:$0xff]  ;;  %v50_v2 = vld [vmem:[%s130_s0 + $0x2] ss:$0 sm:$0xff] }
   0x2   :  { %5 = vst [vmem:[%s131_s1] sm:$0x3] %v4_v0  ;;  %v55_v3 = vld [vmem:[%s130_s0 + $0x3] ss:$0 sm:$0xff] }
   0x3   :  { %42 = vst [vmem:[%s131_s1 + $0x8] sm:$0x3] %v4_v0 }
   0x4   :  { %43 = vst [vmem:[%s131_s1 + $0x10] sm:$0x3] %v4_v0 }
   0x5   :  { %44 = vst [vmem:[%s131_s1 + $0x18] sm:$0x3] %v4_v0 }
   0x6   :  { %46 = vst [vmem:[%s131_s1 + $0x2] sm:$0x3] %v45_v1 }
   0x7   :  { %47 = vst [vmem:[%s131_s1 + $0xa] sm:$0x3] %v45_v1 }
   0x8   :  { %48 = vst [vmem:[%s131_s1 + $0x12] sm:$0x3] %v45_v1 }
   0x9   :  { %49 = vst [vmem:[%s131_s1 + $0x1a] sm:$0x3] %v45_v1 }
   0xa   :  { %51 = vst [vmem:[%s131_s1 + $0x4] sm:$0x3] %v50_v2 }
   0xb   :  { %52 = vst [vmem:[%s131_s1 + $0xc] sm:$0x3] %v50_v2 }
   0xc   :  { %53 = vst [vmem:[%s131_s1 + $0x14] sm:$0x3] %v50_v2 }
   0xd   :  { %54 = vst [vmem:[%s131_s1 + $0x1c] sm:$0x3] %v50_v2 }
   0xe   :  { %56 = vst [vmem:[%s131_s1 + $0x6] sm:$0x3] %v55_v3 }
   0xf   :  { %57 = vst [vmem:[%s131_s1 + $0xe] sm:$0x3] %v55_v3 }
  0x10   :  { %58 = vst [vmem:[%s131_s1 + $0x16] sm:$0x3] %v55_v3 }
  0x11   :  { %59 = vst [vmem:[%s131_s1 + $0x1e] sm:$0x3] %v55_v3 }

// kernel: tile.19
= control target key start
LH: loop header
LB: loop body
LE: loop exit
PB: predicated region body
PF: predicated region fallthrough
CT: control target
= control target key end

     0   :  { %vm68_vm0 = vcmask 1047556   ;;  %vm70_vm1 = vcmask 64512   ;;  %vm89_vm2 = vcmask 130112   ;;  %s195_s0 = inlined_call_operand.vmem [shape: f32[2,8,4,4], index: 0, kind: input, shape index: {}]   ;;  %s196_s1 = inlined_call_operand.vmem [shape: f32[16,16], index: 1, kind: output, shape index: {}]  }
   0x1   :  { %v110_v0 = vld [vmem:[%s195_s0 + $0xe] sm:$0x3]  ;;  %v111_v1 = vld [vmem:[%s195_s0 + $0xc] sm:$0x3]  ;;  %v112_v2 = vld [vmem:[%s195_s0 + $0xa] sm:$0x3] }
   0x2   :  { %39 = vst [vmem:[#allocation0 + $0x38] sm:$0x3] %v110_v0  ;;  %v113_v3 = vld [vmem:[%s195_s0 + $0x8] sm:$0x3]  ;;  %v114_v4 = vld [vmem:[%s195_s0 + $0x6] sm:$0x3] }
   0x3   :  { %43 = vst [vmem:[#allocation0 + $0x30] sm:$0x3] %v111_v1  ;;  %v115_v5 = vld [vmem:[%s195_s0 + $0x4] sm:$0x3]  ;;  %v116_v6 = vld [vmem:[%s195_s0 + $0x2] sm:$0x3] }
   0x4   :  { %47 = vst [vmem:[#allocation0 + $0x28] sm:$0x3] %v112_v2  ;;  %v64_v7 = vld [vmem:[%s195_s0] sm:$0x3]  ;;  %v102_v8 = vld [vmem:[%s195_s0 + $0x1e] sm:$0x3] }
   0x5   :  { %51 = vst [vmem:[#allocation0 + $0x20] sm:$0x3] %v113_v3  ;;  %v103_v9 = vld [vmem:[%s195_s0 + $0x1c] sm:$0x3]  ;;  %v104_v10 = vld [vmem:[%s195_s0 + $0x1a] sm:$0x3] }
   0x6   :  { %55 = vst [vmem:[#allocation0 + $0x18] sm:$0x3] %v114_v4  ;;  %v105_v11 = vld [vmem:[%s195_s0 + $0x18] sm:$0x3]  ;;  %v106_v12 = vld [vmem:[%s195_s0 + $0x16] sm:$0x3] }
   0x7   :  { %59 = vst [vmem:[#allocation0 + $0x10] sm:$0x3] %v115_v5  ;;  %v107_v13 = vld [vmem:[%s195_s0 + $0x14] sm:$0x3]  ;;  %v108_v14 = vld [vmem:[%s195_s0 + $0x12] sm:$0x3] }
   0x8   :  { %63 = vst [vmem:[#allocation0 + $0x8] sm:$0x3] %v116_v6  ;;  %v109_v15 = vld [vmem:[%s195_s0 + $0x10] sm:$0x3]  ;;  %s120_s0 = smov 8  }
   0x9   :  { %65 = vst [vmem:[#allocation0] sm:$0x3] %v64_v7 }
   0xa   :  { %7 = vst [vmem:[#allocation0 + $0x78] sm:$0x3] %v102_v8 }
   0xb   :  { %11 = vst [vmem:[#allocation0 + $0x70] sm:$0x3] %v103_v9 }
   0xc   :  { %15 = vst [vmem:[#allocation0 + $0x68] sm:$0x3] %v104_v10  ;;  %v84_v16 = vld [vmem:[#allocation0 + $0x1] ss:$8 sm:$0xf0]  }
   0xd   :  { %19 = vst [vmem:[#allocation0 + $0x60] sm:$0x3] %v105_v11  ;;  %v67_v23 = vld [vmem:[#allocation0] ss:$8 sm:$0xf0]  }
   0xe   :  { %23 = vst [vmem:[#allocation0 + $0x58] sm:$0x3] %v106_v12 }
   0xf   :  { %27 = vst [vmem:[#allocation0 + $0x50] sm:$0x3] %v107_v13 }
  0x10   :  { %v82_v17 = vld [vmem:[#allocation0 + $0x1] ss:$8 sm:$0xf]   ;;  %31 = vst [vmem:[#allocation0 + $0x48] sm:$0x3] %v108_v14 }
  0x11   :  { %v86_v18 = vsel %vm68_vm0, %v84_v16, %v82_v17  ;;  %35 = vst [vmem:[#allocation0 + $0x40] sm:$0x3] %v109_v15  ;;  %v66_v22 = vld [vmem:[#allocation0] ss:$8 sm:$0xf]  }
  0x12   :  { %87 = vrot.lane.b32.xlu0 %v86_v18, %s120_s0  ;;  %v69_v24 = vsel %vm68_vm0, %v67_v23, %v66_v22 }
  0x13   :  { %71 = vst.msk [vmem:[%s196_s1] sm:$0xff] %vm70_vm1, %v69_v24  }
  0x14   :  { %v94_v19 = vld [vmem:[#allocation0 + $0x41] ss:$8 sm:$0xf0]   ;;  %v75_v26 = vld [vmem:[#allocation0 + $0x40] ss:$8 sm:$0xf0]  }
  0x18   :  { %v92_v20 = vld [vmem:[#allocation0 + $0x41] ss:$8 sm:$0xf]   ;;  %v73_v25 = vld [vmem:[#allocation0 + $0x40] ss:$8 sm:$0xf]  }
  0x19   :  { %v96_v21 = vsel %vm68_vm0, %v94_v19, %v92_v20  ;;  %v77_v27 = vsel %vm68_vm0, %v75_v26, %v73_v25 }
  0x1a   :  { %97 = vrot.lane.b32.xlu0 %v96_v21, %s120_s0  ;;  %117 = vst.msk [vmem:[%s196_s1 + $0x8] sm:$0xff] %vm70_vm1, %v77_v27  }
  0x84   :  { %v88_v28 = vpop.permute.xlu0 %87  }
  0x85   :  { %90 = vst.msk [vmem:[%s196_s1] sm:$0xff] %vm89_vm2, %v88_v28  }
  0x8c   :  { %v98_v29 = vpop.permute.xlu0 %97  }
  0x8d   :  { %118 = vst.msk [vmem:[%s196_s1 + $0x8] sm:$0xff] %vm89_vm2, %v98_v29  }

// kernel: esm_classifier_forward.1
= control target key start
LH: loop header
LB: loop body
LE: loop exit
PB: predicated region body
PF: predicated region fallthrough
CT: control target
= control target key end

     0   :  { %vm89_vm0 = vcmask 261120   ;;  %v2682_v4 = vmov 32.0   ;;  %s3623_s29 = smov 16   ;;  %s3629_s26 = smov 88   ;;  %vm328_vm8 = vcmask 64512   ;;  %vm325_vm9 = vcmask 31744   ;;  %s3589_s0 = inlined_call_operand.vmem [shape: f32[16,32], index: 0, kind: input, shape index: {}]   ;;  %s3590_s5 = inlined_call_operand.vmem [shape: f32[2,1,32], index: 5, kind: input, shape index: {}]   ;;  %s3591_s6 = inlined_call_operand.vmem [shape: f32[2,1,32], index: 6, kind: input, shape index: {}]   ;;  %s3592_s3 = inlined_call_operand.vmem [shape: f32[16,16], index: 3, kind: input, shape index: {}]   ;;  %s3593_s7 = inlined_call_operand.vmem [shape: bf16[2,32,96], index: 7, kind: input, shape index: {}]   ;;  %s3594_s8 = inlined_call_operand.vmem [shape: f32[2,1,96], index: 8, kind: input, shape index: {}]   ;;  %s3595_s2 = inlined_call_operand.vmem [shape: f32[16,16], index: 2, kind: input, shape index: {}]   ;;  %s3596_s1 = inlined_call_operand.vmem [shape: f32[16,16], index: 1, kind: input, shape index: {}]   ;;  %s3597_s10 = inlined_call_operand.vmem [shape: f32[2,1,32], index: 10, kind: input, shape index: {}]   ;;  %s3598_s9 = inlined_call_operand.vmem [shape: bf16[2,32,32], index: 9, kind: input, shape index: {}]   ;;  %s3599_s11 = inlined_call_operand.vmem [shape: f32[2,1,32], index: 11, kind: input, shape index: {}]   ;;  %s3600_s12 = inlined_call_operand.vmem [shape: f32[2,1,32], index: 12, kind: input, shape index: {}]   ;;  %s3601_s14 = inlined_call_operand.vmem [shape: f32[2,1,64], index: 14, kind: input, shape index: {}]   ;;  %s3602_s13 = inlined_call_operand.vmem [shape: bf16[2,32,64], index: 13, kind: input, shape index: {}]   ;;  %s3603_s16 = inlined_call_operand.vmem [shape: f32[2,1,32], index: 16, kind: input, shape index: {}]   ;;  %s3604_s15 = inlined_call_operand.vmem [shape: bf16[2,64,32], index: 15, kind: input, shape index: {}]   ;;  %s3605_s17 = inlined_call_operand.vmem [shape: f32[1,32], index: 17, kind: input, shape index: {}]   ;;  %s3606_s18 = inlined_call_operand.vmem [shape: f32[1,32], index: 18, kind: input, shape index: {}]   ;;  %s3607_s20 = inlined_call_operand.vmem [shape: f32[1,32], index: 20, kind: input, shape index: {}]   ;;  %s3608_s19 = inlined_call_operand.vmem [shape: bf16[32,32], index: 19, kind: input, shape index: {}]   ;;  %s3609_s21 = inlined_call_operand.vmem [shape: f32[32,1], index: 21, kind: input, shape index: {}]   ;;  %s3610_s22 = inlined_call_operand.<no memory space> [shape: f32[1,1], index: 22, kind: input, shape index: {}]   ;;  %s3611_s23 = inlined_call_operand.vmem [shape: f32[2,1], index: 23, kind: output, shape index: {0}]   ;;  %s3612_s4 = inlined_call_operand.vmem [shape: f32[2,1], index: 4, kind: input, shape index: {}]   ;;  %s3613_s24 = inlined_call_operand.vmem [shape: f32[2,1], index: 24, kind: output, shape index: {1}]  }
   0x1   :  { %3663 = sst [smem:[#allocation3_spill]] %s3589_s0  ;;  %2572 = vrcp.f32 %v2682_v4  ;;  %s3641_s28 = smov 84   ;;  %vm331_vm10 = vcmask 97280   ;;  %vm334_vm11 = vcmask 130048   ;;  %vm337_vm12 = vcmask 162816  }
   0x2   :  { %3664 = sst [smem:[#allocation4_spill]] %s3590_s5  ;;  %s2684_s5 = smov 32   ;;  %vm340_vm13 = vcmask 195584   ;;  %vm343_vm14 = vcmask 228352  }
   0x3   :  { %3665 = sst [smem:[#allocation5_spill]] %s3591_s6  ;;  %s3643_s30 = smov 104  }
   0x4   :  { %3666 = sst [smem:[#allocation6_spill]] %s3592_s3 }
   0x5   :  { %3667 = sst [smem:[#allocation7_spill]] %s3593_s7  ;;  %s3647_s7 = smov 96  }
   0x6   :  { %3668 = sst [smem:[#allocation8_spill]] %s3594_s8 }
   0x7   :  { %3669 = sst [smem:[#allocation9_spill]] %s3595_s2  ;;  %v2573_v5 = vpop.eup %2572 }
   0x8   :  { %3670 = sst [smem:[#allocation10_spill]] %s3596_s1  ;;  %v97_v6 = vmul.f32 32.0, %v2573_v5  ;;  %vm101_vm1 = vweird.f32 %v2573_v5  ;;  %s3625_s1 = smov 48  }
   0x9   :  { %3671 = sst [smem:[#allocation11_spill]] %s3597_s10  ;;  %s3627_s10 = smov 112  }
   0xa   :  { %3672 = sst [smem:[#allocation12_spill]] %s3598_s9  ;;  %v98_v7 = vsub.f32 1.0, %v97_v6 }
   0xb   :  { %3673 = sst [smem:[#allocation13_spill]] %s3605_s17  ;;  %s3704_s17 = smov 92  }
   0xc   :  { %3674 = sst [smem:[#allocation14_spill]] %s3606_s18  ;;  %v99_v8 = vmul.f32 %v2573_v5, %v98_v7  ;;  %s3705_s18 = smov 108  }
   0xd   :  { %3675 = sst [smem:[#allocation15_spill]] %s3607_s20 }
   0xe   :  { %3676 = sst [smem:[#allocation16_spill]] %s3608_s19  ;;  %v100_v9 = vadd.f32 %v2573_v5, %v99_v8 }
   0xf   :  { %3677 = sst [smem:[#allocation17_spill]] %s3609_s21  ;;  %s3656_s21 = smov 64  }
  0x10   :  { %3678 = sst [smem:[#allocation18_spill]] %s3610_s22  ;;  %v2837_v10 = vsel %vm101_vm1, %v2573_v5, %v100_v9  ;;  %s3657_s22 = smov 40  }
  0x11   :  { %3679 = sst [smem:[#allocation19_spill]] %s3611_s23  ;;  %s3699_s23 = smov 48  }
  0x12   :  { %3680 = sst [smem:[#allocation20_spill]] %s3612_s4  ;;  %s3658_s4 = smov 56  }
  0x13   :  { %3681 = sst [smem:[#allocation21_spill]] %s3613_s24  ;;  %s3695_s24 = smov 12  }
  0x14   :  { %s3682_s27 = sld [smem:[#allocation3_spill]] }
  0x15   :  { %s3683_s0 = sld [smem:[#allocation6_spill]] }
  0x16   :  { %s3684_s25 = sld [smem:[#allocation7_spill]] }
  0x17   :  { %s3685_s6 = sld [smem:[#allocation9_spill]] }
  0x18   :  { %s3686_s8 = sld [smem:[#allocation4_spill]] }
  0x19   :  { %s3687_s2 = sld [smem:[#allocation5_spill]] }
  0x1a   :  { %v79_v0 = vld [vmem:[%s3682_s27] sm:$0xff]  ;;  %v80_v2 = vld [vmem:[%s3682_s27 + $0x8] sm:$0xff]  ;;  %s3688_s3 = sld [smem:[#allocation8_spill]] }
  0x1b   :  { %v90_v1 = vsel %vm89_vm0, %v79_v0, 0.0  ;;  %v93_v3 = vsel %vm89_vm0, %v80_v2, 0.0  ;;  %v2846_v21 = vld [vmem:[%s3683_s0 + $0x8] sm:$0xff]  ;;  %v2856_v23 = vld [vmem:[%s3683_s0] sm:$0xff]  ;;  %s3698_s20 = sld [smem:[#allocation10_spill]] }
  0x1c   :  { %91 = vadd.xlane.f32.xlu0 %v90_v1  ;;  %243 = vrot.lane.b32.xlu2 %v2846_v21, %s3625_s1  ;;  %v2437_v22 = vld [vmem:[%s3684_s25 + $0x8] sm:$0xff]  ;;  %v2436_v25 = vld [vmem:[%s3684_s25] sm:$0xff]  ;;  %s3701_s19 = sld [smem:[#allocation11_spill]] }
  0x1d   :  { %181 = vmatpush.bf16.msra.mxu0 %v2437_v22  ;;  %v2871_v28 = vld [vmem:[%s3685_s6 + $0x8] sm:$0xff]  ;;  %v2881_v34 = vld [vmem:[%s3685_s6] sm:$0xff] }
  0x1e   :  { %v2552_v46 = vld [vmem:[%s3686_s8] ss:$0 sm:$0xff] }
  0x1f   :  { %v2553_v51 = vld [vmem:[%s3687_s2] ss:$0 sm:$0xff] }
  0x20   :  { %v2556_v57 = vld [vmem:[%s3688_s3] ss:$0 sm:$0xff] }
  0x21   :  { %182 = vmatpush.bf16.msra.mxu0 %v2436_v25 }
  0x24   :  { %94 = vadd.xlane.f32.xlu0 %v93_v3  ;;  %269 = vrot.lane.b32.xlu2 %v2846_v21, %s2684_s5 }
  0x2c   :  { %193 = vrot.lane.b32.xlu2 %v2856_v23, %s3623_s29 }
  0x34   :  { %195 = vrot.lane.b32.xlu2 %v2846_v21, %s3623_s29 }
  0x38   :  { %241 = vrot.lane.b32.xlu0 %v2856_v23, %s3625_s1 }
  0x3c   :  { %235 = vrot.lane.b32.xlu2 %v2871_v28, %s2684_s5 }
  0x40   :  { %261 = vrot.lane.b32.xlu0 %v2871_v28, %s3625_s1 }
  0x44   :  { %259 = vrot.lane.b32.xlu2 %v2881_v34, %s3625_s1  ;;  %s3635_s1 = smov 120  }
  0x48   :  { %233 = vrot.lane.b32.xlu0 %v2881_v34, %s2684_s5 }
  0x4c   :  { %213 = vrot.lane.b32.xlu2 %v2881_v34, %s3623_s29 }
  0x54   :  { %215 = vrot.lane.b32.xlu2 %v2871_v28, %s3623_s29 }
  0x76   :  { %v2902_v56 = vpop.permute.xlu2 %243 }
  0x7e   :  { %v2907_v58 = vpop.permute.xlu2 %269 }
  0x86   :  { %v2917_v1 = vpop.permute.xlu2 %193 }
  0x8e   :  { %v2931_v8 = vpop.permute.xlu2 %195 }
  0x8f   :  { %v92_v11 = vpop.xlane.xlu0 %91 }
  0x90   :  { %v103_v12 = vmul.f32 %v2837_v10, %v92_v11 }
  0x92   :  { %v105_v13 = vsub.f32 %v79_v0, %v103_v12 }
  0x94   :  { %v107_v14 = vmul.f32 %v105_v13, %v105_v13 }
  0x96   :  { %v109_v15 = vsel %vm89_vm0, %v107_v14, 0.0  ;;  %v2944_v14 = vpop.permute.xlu2 %235 }
  0x97   :  { %110 = vadd.xlane.f32.xlu1 %v109_v15  ;;  %v95_v16 = vpop.xlane.xlu0 %94 }
  0x98   :  { %v104_v17 = vmul.f32 %v2837_v10, %v95_v16 }
  0x9a   :  { %v106_v18 = vsub.f32 %v80_v2, %v104_v17 }
  0x9c   :  { %v108_v19 = vmul.f32 %v106_v18, %v106_v18 }
  0x9e   :  { %v112_v20 = vsel %vm89_vm0, %v108_v19, 0.0  ;;  %v2948_v16 = vpop.permute.xlu2 %259 }
  0x9f   :  { %113 = vadd.xlane.f32.xlu1 %v112_v20 }
  0xaa   :  { %v2911_v62 = vpop.permute.xlu0 %241 }
  0xb8   :  { %267 = vrot.lane.b32.xlu1 %v2856_v23, %s2684_s5  ;;  %s3631_s5 = smov 100  }
 0x10a   :  { %v111_v24 = vpop.xlane.xlu1 %110 }
 0x10b   :  { %v115_v26 = vmul.f32 %v111_v24, %v2837_v10 }
 0x10d   :  { %v117_v27 = vadd.f32 1e-05, %v115_v26 }
 0x10f   :  { %2574 = vrsqrt.f32 %v117_v27  ;;  %vm125_vm3 = vweird.f32 %v117_v27 }
 0x112   :  { %v114_v29 = vpop.xlane.xlu1 %113 }
 0x113   :  { %v116_v30 = vmul.f32 %v114_v29, %v2837_v10 }
 0x115   :  { %v2575_v31 = vpop.eup %2574  ;;  %v118_v32 = vadd.f32 1e-05, %v116_v30 }
 0x116   :  { %v120_v33 = vmul.f32 %v2575_v31, %v117_v27  ;;  %vm126_vm2 = vweird.f32 %v2575_v31 }
 0x117   :  { %2576 = vrsqrt.f32 %v118_v32  ;;  %vm127_vm4 = vmor %vm125_vm3, %vm126_vm2  ;;  %vm135_vm6 = vweird.f32 %v118_v32 }
 0x118   :  { %v121_v35 = vmul.f32 %v2575_v31, %v120_v33 }
 0x11a   :  { %v122_v36 = vmul.f32 0.5, %v121_v35 }
 0x11c   :  { %v123_v37 = vsub.f32 1.5, %v122_v36 }
 0x11d   :  { %v2577_v38 = vpop.eup %2576 }
 0x11e   :  { %v124_v39 = vmul.f32 %v2575_v31, %v123_v37  ;;  %v130_v40 = vmul.f32 %v2577_v38, %v118_v32  ;;  %vm136_vm5 = vweird.f32 %v2577_v38 }
 0x11f   :  { %vm137_vm7 = vmor %vm135_vm6, %vm136_vm5 }
 0x120   :  { %v131_v41 = vmul.f32 %v2577_v38, %v130_v40  ;;  %v128_v42 = vsel %vm127_vm4, %v2575_v31, %v124_v39 }
 0x121   :  { %v139_v45 = vmul.f32 %v128_v42, %v105_v13  ;;  %v2942_v13 = vpop.permute.xlu0 %261 }
 0x122   :  { %v132_v43 = vmul.f32 0.5, %v131_v41 }
 0x123   :  { %v144_v50 = vmul.f32 %v2552_v46, %v139_v45 }
 0x124   :  { %v133_v44 = vsub.f32 1.5, %v132_v43 }
 0x125   :  { %v149_v53 = vadd.f32 %v2553_v51, %v144_v50 }
 0x126   :  { %v134_v47 = vmul.f32 %v2577_v38, %v133_v44 }
 0x128   :  { %v138_v48 = vsel %vm137_vm7, %v2577_v38, %v134_v47 }
 0x129   :  { %v140_v49 = vmul.f32 %v138_v48, %v106_v18  ;;  %v2946_v15 = vpop.permute.xlu0 %233 }
 0x12a   :  { %v2909_v60 = vpop.permute.xlu1 %267 }
 0x12b   :  { %v145_v52 = vmul.f32 %v2552_v46, %v140_v49 }
 0x12d   :  { %v150_v54 = vadd.f32 %v2553_v51, %v145_v52 }
 0x12f   :  { %v156_v55 = vpack.c.bf16 %v150_v54, %v149_v53 }
 0x131   :  { %2265 = vmatmul.msk.bf16.vlgmr.msra.gmra.mxu0 %vm89_vm0, %v156_v55 }
 0x1ae   :  { %v184_v59 = vpop.f32.mrf.mxu0 }
 0x1af   :  { %v185_v61 = vadd.f32 %v2556_v57, %v184_v59 }
 0x1b1   :  { %v273_v63 = vmul.f32 %v2909_v60, %v185_v61  ;;  %v247_v0 = vmul.f32 %v2911_v62, %v185_v61  ;;  %v199_v5 = vmul.f32 %v2917_v1, %v185_v61  ;;  %v221_v6 = vmul.f32 %v185_v61, %v2856_v23 }
 0x1b2   :  { %v239_v17 = vmul.f32 %v2946_v15, %v185_v61  ;;  %v265_v18 = vmul.f32 %v2948_v16, %v185_v61  ;;  %v189_v29 = vmul.f32 %v185_v61, %v2881_v34 }
 0x1b3   :  { %277 = vrot.lane.b32.xlu0 %v273_v63, %s3623_s29  ;;  %251 = vrot.lane.b32.xlu1 %v247_v0, %s3627_s10 }
 0x1b6   :  { %v186_v2 = vpop.f32.mrf.mxu0 }
 0x1b7   :  { %v2919_v3 = vadd.f32 %v2556_v57, %v186_v2 }
 0x1b9   :  { %v248_v4 = vmul.f32 %v2902_v56, %v2919_v3  ;;  %v2928_v7 = vpack.i.bf16 %v185_v61, %v2919_v3  ;;  %v200_v9 = vmul.f32 %v2931_v8, %v2919_v3  ;;  %v274_v11 = vmul.f32 %v2907_v58, %v2919_v3 }
 0x1ba   :  { %v222_v12 = vmul.f32 %v2919_v3, %v2846_v21  ;;  %v2955_v21 = vpop.permute.xlu2 %213  ;;  %v266_v33 = vmul.f32 %v2942_v13, %v2919_v3  ;;  %v240_v36 = vmul.f32 %v2944_v14, %v2919_v3  ;;  %v190_v40 = vmul.f32 %v2919_v3, %v2871_v28 }
 0x1bb   :  { %253 = vrot.lane.b32.xlu2 %v248_v4, %s3627_s10  ;;  %203 = vrot.lane.b32.xlu0 %v199_v5, %s3627_s10  ;;  %v219_v24 = vmul.f32 %v2955_v21, %v185_v61 }
 0x1bc   :  { %225 = vrot.lane.b32.xlu1 %v221_v6, %s3623_s29 }
 0x1c2   :  { %v2976_v31 = vpop.permute.xlu2 %215 }
 0x1c3   :  { %205 = vrot.lane.b32.xlu0 %v200_v9, %s3627_s10  ;;  %s3637_s10 = smov 4   ;;  %v220_v41 = vmul.f32 %v2976_v31, %v2919_v3 }
 0x1c4   :  { %279 = vrot.lane.b32.xlu1 %v274_v11, %s3623_s29 }
 0x1cc   :  { %227 = vrot.lane.b32.xlu1 %v222_v12, %s3623_s29  ;;  %s3633_s29 = smov 116  }
 0x215   :  { %v254_v35 = vpop.permute.xlu2 %253 }
 0x216   :  { %v258_v37 = vsub.f32 %v240_v36, %v254_v35 }
 0x225   :  { %v252_v19 = vpop.permute.xlu1 %251  ;;  %v278_v20 = vpop.permute.xlu0 %277 }
 0x226   :  { %v257_v22 = vsub.f32 %v239_v17, %v252_v19  ;;  %v283_v23 = vadd.f32 %v278_v20, %v265_v18 }
 0x228   :  { %348 = vrot.lane.b32.xlu0 %v257_v22, %s3647_s7  ;;  %368 = vrot.lane.b32.xlu1 %v283_v23, %s3629_s26  ;;  %s3645_s26 = smov 92  }
 0x229   :  { %356 = vrot.lane.b32.xlu2 %v283_v23, %s3641_s28 }
 0x22d   :  { %v204_v27 = vpop.permute.xlu0 %203 }
 0x22e   :  { %v226_v25 = vpop.permute.xlu1 %225  ;;  %v2965_v30 = vsub.f32 %v189_v29, %v204_v27 }
 0x22f   :  { %v2958_v26 = vadd.f32 %v226_v25, %v219_v24 }
 0x230   :  { %362 = vrot.lane.b32.xlu0 %v257_v22, %s3631_s5  ;;  %374 = vrot.lane.b32.xlu1 %v257_v22, %s3643_s30  ;;  %s3653_s5 = smov 108  }
 0x231   :  { %287 = vrot.lane.b32.xlu2 %v2958_v26, %s3633_s29  ;;  %s3639_s29 = smov 8  }
 0x235   :  { %v206_v38 = vpop.permute.xlu0 %205 }
 0x236   :  { %v280_v32 = vpop.permute.xlu1 %279  ;;  %v2997_v42 = vsub.f32 %v190_v40, %v206_v38 }
 0x237   :  { %v284_v34 = vadd.f32 %v280_v32, %v266_v33 }
 0x238   :  { %301 = vrot.lane.b32.xlu1 %v2958_v26, %s3635_s1  ;;  %295 = vrot.lane.b32.xlu0 %v2965_v30, %s3637_s10  ;;  %s3651_s1 = smov 124   ;;  %s3649_s10 = smov 12  }
 0x239   :  { %380 = vrot.lane.b32.xlu2 %v283_v23, %s3645_s26 }
 0x23e   :  { %v228_v39 = vpop.permute.xlu1 %227 }
 0x23f   :  { %v2999_v43 = vadd.f32 %v228_v39, %v220_v41 }
 0x240   :  { %392 = vrot.lane.b32.xlu1 %v283_v23, %s3647_s7  ;;  %386 = vrot.lane.b32.xlu0 %v257_v22, %s3653_s5 }
 0x241   :  { %307 = vrot.lane.b32.xlu2 %v2965_v30, %s3639_s29  ;;  %s3689_s29 = smov 100  }
 0x248   :  { %358 = vrot.lane.b32.xlu1 %v284_v34, %s3641_s28  ;;  %313 = vrot.lane.b32.xlu0 %v2958_v26, %s3651_s1  ;;  %s3690_s28 = smov 88  }
 0x249   :  { %319 = vrot.lane.b32.xlu2 %v2965_v30, %s3649_s10  ;;  %s3694_s10 = smov 120  }
 0x250   :  { %376 = vrot.lane.b32.xlu1 %v258_v37, %s3643_s30  ;;  %364 = vrot.lane.b32.xlu0 %v258_v37, %s3689_s29  ;;  %s3691_s30 = smov 116  }
 0x251   :  { %350 = vrot.lane.b32.xlu2 %v258_v37, %s3647_s7 }
 0x258   :  { %382 = vrot.lane.b32.xlu1 %v284_v34, %s3645_s26  ;;  %394 = vrot.lane.b32.xlu0 %v284_v34, %s3647_s7  ;;  %s3692_s26 = smov 4   ;;  %s3693_s7 = smov 8  }
 0x259   :  { %370 = vrot.lane.b32.xlu2 %v284_v34, %s3690_s28 }
 0x260   :  { %289 = vrot.lane.b32.xlu1 %v2999_v43, %s3691_s30  ;;  %297 = vrot.lane.b32.xlu0 %v2997_v42, %s3692_s26 }
 0x261   :  { %388 = vrot.lane.b32.xlu2 %v258_v37, %s3653_s5  ;;  %s3697_s5 = smov 112  }
 0x268   :  { %309 = vrot.lane.b32.xlu1 %v2997_v42, %s3693_s7  ;;  %315 = vrot.lane.b32.xlu0 %v2999_v43, %s3651_s1  ;;  %s3696_s1 = smov 104  }
 0x269   :  { %303 = vrot.lane.b32.xlu2 %v2999_v43, %s3694_s10 }
 0x271   :  { %321 = vrot.lane.b32.xlu2 %v2997_v42, %s3695_s24 }
 0x283   :  { %v357_v28 = vpop.permute.xlu2 %356 }
 0x28b   :  { %v288_v44 = vpop.permute.xlu2 %287 }
 0x28c   :  { %v326_v2 = vsel %vm325_vm9, %v2965_v30, %v288_v44 }
 0x293   :  { %v381_v45 = vpop.permute.xlu2 %380 }
 0x29a   :  { %v369_v46 = vpop.permute.xlu1 %368  ;;  %v349_v47 = vpop.permute.xlu0 %348 }
 0x29b   :  { %v308_v48 = vpop.permute.xlu2 %307  ;;  %v398_v51 = vsel %vm325_vm9, %v349_v47, %v357_v28 }
 0x2a2   :  { %v375_v49 = vpop.permute.xlu1 %374  ;;  %v363_v50 = vpop.permute.xlu0 %362 }
 0x2a3   :  { %v320_v52 = vpop.permute.xlu2 %319  ;;  %v400_v53 = vsel %vm328_vm8, %v398_v51, %v363_v50 }
 0x2a4   :  { %v402_v57 = vsel %vm331_vm10, %v400_v53, %v369_v46 }
 0x2a5   :  { %v404_v59 = vsel %vm334_vm11, %v402_v57, %v375_v49 }
 0x2a6   :  { %v406_v63 = vsel %vm337_vm12, %v404_v59, %v381_v45 }
 0x2aa   :  { %v302_v54 = vpop.permute.xlu1 %301  ;;  %v296_v55 = vpop.permute.xlu0 %295 }
 0x2ab   :  { %v351_v3 = vpop.permute.xlu2 %350  ;;  %v329_v5 = vsel %vm328_vm8, %v326_v2, %v296_v55 }
 0x2ac   :  { %v332_v9 = vsel %vm331_vm10, %v329_v5, %v302_v54 }
 0x2ad   :  { %v335_v12 = vsel %vm334_vm11, %v332_v9, %v308_v48 }
 0x2b2   :  { %v393_v61 = vpop.permute.xlu1 %392  ;;  %v387_v0 = vpop.permute.xlu0 %386 }
 0x2b3   :  { %v408_v4 = vsel %vm340_vm13, %v406_v63, %v387_v0  ;;  %v371_v20 = vpop.permute.xlu2 %370 }
 0x2b4   :  { %v410_v6 = vsel %vm343_vm14, %v408_v4, %v393_v61 }
 0x2b5   :  { %514 = vrot.lane.b32.xlu0 %v410_v6, %s3694_s10 }
 0x2ba   :  { %v359_v11 = vpop.permute.xlu1 %358  ;;  %v314_v17 = vpop.permute.xlu0 %313 }
 0x2bb   :  { %v338_v18 = vsel %vm337_vm12, %v335_v12, %v314_v17  ;;  %v399_v25 = vsel %vm325_vm9, %v351_v3, %v359_v11  ;;  %v389_v29 = vpop.permute.xlu2 %388  ;;  %v82_v3 = vld [vmem:[%s3698_s20 + $0x8] sm:$0xff]  ;;  %v81_v12 = vld [vmem:[%s3698_s20] sm:$0xff] }
 0x2bc   :  { %v341_v19 = vsel %vm340_vm13, %v338_v18, %v320_v52 }
 0x2bd   :  { %v344_v22 = vsel %vm343_vm14, %v341_v19, %v2958_v26 }
 0x2be   :  { %510 = vrot.lane.b32.xlu2 %v344_v22, %s3694_s10 }
 0x2c2   :  { %v377_v23 = vpop.permute.xlu1 %376  ;;  %v365_v24 = vpop.permute.xlu0 %364 }
 0x2c3   :  { %v401_v27 = vsel %vm328_vm8, %v399_v25, %v365_v24  ;;  %v304_v37 = vpop.permute.xlu2 %303 }
 0x2c4   :  { %v403_v30 = vsel %vm331_vm10, %v401_v27, %v371_v20 }
 0x2c5   :  { %v405_v33 = vsel %vm334_vm11, %v403_v30, %v377_v23 }
 0x2c6   :  { %714 = vrot.lane.b32.xlu2 %v410_v6, %s3696_s1 }
 0x2ca   :  { %v383_v32 = vpop.permute.xlu1 %382  ;;  %v395_v34 = vpop.permute.xlu0 %394 }
 0x2cb   :  { %v407_v35 = vsel %vm337_vm12, %v405_v33, %v383_v32  ;;  %v322_v47 = vpop.permute.xlu2 %321 }
 0x2cc   :  { %v409_v26 = vsel %vm340_vm13, %v407_v35, %v389_v29 }
 0x2cd   :  { %v411_v36 = vsel %vm343_vm14, %v409_v26, %v395_v34 }
 0x2ce   :  { %614 = vrot.lane.b32.xlu2 %v410_v6, %s3697_s5  ;;  %716 = vrot.lane.b32.xlu0 %v411_v36, %s3696_s1 }
 0x2cf   :  { %516 = vrot.lane.b32.xlu1 %v411_v36, %s3694_s10  ;;  %2266 = vmatpush.xpose.msk.msra.mxu1 %vm328_vm8, %v411_v36 }
 0x2d2   :  { %v290_v38 = vpop.permute.xlu1 %289  ;;  %v298_v39 = vpop.permute.xlu0 %297 }
 0x2d3   :  { %2267 = vmatpush.xpose.msk.msra.mxu1 %vm328_vm8, %v410_v6  ;;  %v327_v40 = vsel %vm325_vm9, %v2997_v42, %v290_v38 }
 0x2d4   :  { %v330_v41 = vsel %vm328_vm8, %v327_v40, %v298_v39 }
 0x2d5   :  { %v333_v44 = vsel %vm331_vm10, %v330_v41, %v304_v37 }
 0x2d6   :  { %2268 = vmatmul.msk.f32.vlgmr.msra.gmra.mxu1 %vm328_vm8, %v344_v22  ;;  %616 = vrot.lane.b32.xlu0 %v411_v36, %s3697_s5 }
 0x2da   :  { %v310_v28 = vpop.permute.xlu1 %309  ;;  %v316_v45 = vpop.permute.xlu0 %315 }
 0x2db   :  { %v336_v46 = vsel %vm334_vm11, %v333_v44, %v310_v28 }
 0x2dc   :  { %v339_v48 = vsel %vm337_vm12, %v336_v46, %v316_v45 }
 0x2dd   :  { %v342_v49 = vsel %vm340_vm13, %v339_v48, %v322_v47 }
 0x2de   :  { %610 = vrot.lane.b32.xlu0 %v344_v22, %s3697_s5  ;;  %v345_v42 = vsel %vm343_vm14, %v342_v49, %v2999_v43 }
 0x2df   :  { %612 = vrot.lane.b32.xlu2 %v345_v42, %s3697_s5  ;;  %512 = vrot.lane.b32.xlu1 %v345_v42, %s3694_s10 }
 0x2e0   :  { %2269 = vmatmul.msk.f32.gmra.mxu1 %vm328_vm8, %v345_v42 }
 0x2e7   :  { %710 = vrot.lane.b32.xlu1 %v344_v22, %s3696_s1 }
 0x2ef   :  { %712 = vrot.lane.b32.xlu1 %v345_v42, %s3696_s1 }
 0x318   :  { %v511_v50 = vpop.permute.xlu2 %510 }
 0x320   :  { %v715_v54 = vpop.permute.xlu2 %714 }
 0x327   :  { %v515_v51 = vpop.permute.xlu0 %514 }
 0x328   :  { %v615_v55 = vpop.permute.xlu2 %614 }
 0x339   :  { %v613_v63 = vpop.permute.xlu2 %612 }
 0x340   :  { %v717_v52 = vpop.permute.xlu0 %716 }
 0x341   :  { %v517_v53 = vpop.permute.xlu1 %516 }
 0x342   :  { %2272 = vmatpush.xpose.msk.msra.mxu3 %vm328_vm8, %v517_v53 }
 0x346   :  { %2273 = vmatpush.xpose.msk.msra.mxu3 %vm328_vm8, %v515_v51 }
 0x348   :  { %v617_v43 = vpop.permute.xlu0 %616 }
 0x349   :  { %2274 = vmatmul.msk.f32.vlgmr.msra.gmra.mxu3 %vm328_vm8, %v511_v50  ;;  %2278 = vmatpush.xpose.msk.msrb.mxu0 %vm328_vm8, %v617_v43 }
 0x34a   :  { %2284 = vmatpush.xpose.msk.msrb.mxu3 %vm328_vm8, %v717_v52 }
 0x34d   :  { %2279 = vmatpush.xpose.msk.msrb.mxu0 %vm328_vm8, %v615_v55 }
 0x34e   :  { %2285 = vmatpush.xpose.msk.msrb.mxu3 %vm328_vm8, %v715_v54 }
 0x350   :  { %v611_v57 = vpop.permute.xlu0 %610 }
 0x351   :  { %v513_v59 = vpop.permute.xlu1 %512  ;;  %2280 = vmatmul.msk.f32.vlgmr.msrb.gmra.mxu0 %vm328_vm8, %v611_v57 }
 0x352   :  { %2275 = vmatmul.msk.f32.gmra.mxu3 %vm328_vm8, %v513_v59 }
 0x353   :  { %v441_v61 = vpop.f32.mrf.mxu1 }
 0x354   :  { %v447_v9 = vmul.f32 0.35355338, %v441_v61 }
 0x356   :  { %v449_v17 = vadd.f32 %v447_v9, %v81_v12 }
 0x358   :  { %v451_v18 = vsel %vm334_vm11, %v449_v17, -inf }
 0x359   :  { %v711_v0 = vpop.permute.xlu1 %710  ;;  %2281 = vmatmul.msk.f32.gmra.mxu0 %vm328_vm8, %v613_v63 }
 0x35a   :  { %2286 = vmatmul.msk.f32.vlgmr.msrb.gmra.mxu3 %vm328_vm8, %v711_v0 }
 0x35d   :  { %v444_v2 = vpop.f32.mrf.mxu1 }
 0x35e   :  { %v448_v4 = vmul.f32 0.35355338, %v444_v2 }
 0x360   :  { %v450_v5 = vadd.f32 %v448_v4, %v82_v3 }
 0x361   :  { %v713_v6 = vpop.permute.xlu1 %712 }
 0x362   :  { %v454_v11 = vsel %vm334_vm11, %v450_v5, -inf  ;;  %2287 = vmatmul.msk.f32.gmra.mxu3 %vm328_vm8, %v713_v6 }
 0x363   :  { %455 = vmax.xlane.f32.xlu1 %v454_v11 }
 0x36b   :  { %452 = vmax.xlane.f32.xlu1 %v451_v18 }
 0x3cc   :  { %v543_v19 = vpop.f32.mrf.mxu3 }
 0x3cd   :  { %v549_v20 = vmul.f32 0.35355338, %v543_v19 }
 0x3ce   :  { %v643_v25 = vpop.f32.mrf.mxu0 }
 0x3cf   :  { %v551_v22 = vadd.f32 %v549_v20, %v81_v12  ;;  %v649_v33 = vmul.f32 0.35355338, %v643_v25 }
 0x3d1   :  { %v553_v23 = vsel %vm334_vm11, %v551_v22, -inf  ;;  %v651_v37 = vadd.f32 %v649_v33, %v81_v12 }
 0x3d2   :  { %554 = vmax.xlane.f32.xlu0 %v553_v23 }
 0x3d3   :  { %v653_v44 = vsel %vm334_vm11, %v651_v37, -inf }
 0x3d5   :  { %v546_v24 = vpop.f32.mrf.mxu3 }
 0x3d6   :  { %v456_v27 = vpop.xlane.xlu1 %455  ;;  %v550_v29 = vmul.f32 0.35355338, %v546_v24  ;;  %v646_v39 = vpop.f32.mrf.mxu0 }
 0x3d7   :  { %v458_v32 = vsub.f32 %v450_v5, %v456_v27  ;;  %v650_v45 = vmul.f32 0.35355338, %v646_v39 }
 0x3d8   :  { %v552_v30 = vadd.f32 %v550_v29, %v82_v3 }
 0x3d9   :  { %v461_v35 = vmul.f32 1.442695, %v458_v32  ;;  %v652_v42 = vadd.f32 %v650_v45, %v82_v3 }
 0x3da   :  { %v556_v34 = vsel %vm334_vm11, %v552_v30, -inf }
 0x3db   :  { %557 = vmax.xlane.f32.xlu2 %v556_v34  ;;  %2578 = vpow2.f32 %v461_v35  ;;  %v656_v53 = vsel %vm334_vm11, %v652_v42, -inf }
 0x3dd   :  { %v743_v26 = vpop.f32.mrf.mxu3 }
 0x3de   :  { %v749_v36 = vmul.f32 0.35355338, %v743_v26  ;;  %v453_v38 = vpop.xlane.xlu1 %452 }
 0x3df   :  { %v457_v41 = vsub.f32 %v449_v17, %v453_v38 }
 0x3e0   :  { %v751_v40 = vadd.f32 %v749_v36, %v81_v12 }
 0x3e1   :  { %v459_v47 = vmul.f32 1.442695, %v457_v41  ;;  %v3086_v49 = vpop.eup %2578 }
 0x3e2   :  { %v753_v28 = vsel %vm334_vm11, %v751_v40, -inf  ;;  %v466_v52 = vsel %vm334_vm11, %v3086_v49, 0.0 }
 0x3e3   :  { %754 = vmax.xlane.f32.xlu0 %v753_v28  ;;  %654 = vmax.xlane.f32.xlu2 %v653_v44  ;;  %2580 = vpow2.f32 %v459_v47 }
 0x3e5   :  { %v746_v46 = vpop.f32.mrf.mxu3 }
 0x3e6   :  { %v750_v48 = vmul.f32 0.35355338, %v746_v46 }
 0x3e8   :  { %v752_v50 = vadd.f32 %v750_v48, %v82_v3 }
 0x3e9   :  { %v3092_v54 = vpop.eup %2580 }
 0x3ea   :  { %v756_v51 = vsel %vm334_vm11, %v752_v50, -inf  ;;  %v463_v43 = vsel %vm334_vm11, %v3092_v54, 0.0 }
 0x3eb   :  { %757 = vmax.xlane.f32.xlu1 %v756_v51  ;;  %467 = vadd.xlane.f32.xlu2 %v466_v52 }
 0x3ec   :  { %657 = vmax.xlane.f32.xlu0 %v656_v53 }
 0x3f4   :  { %464 = vadd.xlane.f32.xlu0 %v463_v43 }
 0x403   :  { %2488 = vrot.lane.b32.xlu2 %v2928_v7, %s3658_s4  ;;  %s3706_s4 = smov 124  }
 0x404   :  { %2483 = vrot.lane.b32.xlu1 %v2928_v7, %s3656_s21  ;;  %s3660_s21 = smov 24  }
 0x40b   :  { %2493 = vrot.lane.b32.xlu2 %v2928_v7, %s3657_s22  ;;  %s3700_s22 = smov 16  }
 0x413   :  { %2498 = vrot.lane.b32.xlu2 %v2928_v7, %s3699_s23 }
 0x445   :  { %v555_v55 = vpop.xlane.xlu0 %554 }
 0x446   :  { %v559_v57 = vsub.f32 %v551_v22, %v555_v55 }
 0x448   :  { %v561_v59 = vmul.f32 1.442695, %v559_v57 }
 0x44a   :  { %2582 = vpow2.f32 %v561_v59 }
 0x44e   :  { %v558_v61 = vpop.xlane.xlu2 %557 }
 0x44f   :  { %v560_v63 = vsub.f32 %v552_v30, %v558_v61 }
 0x450   :  { %v3104_v0 = vpop.eup %2582 }
 0x451   :  { %v563_v2 = vmul.f32 1.442695, %v560_v63  ;;  %v565_v3 = vsel %vm334_vm11, %v3104_v0, 0.0 }
 0x452   :  { %566 = vadd.xlane.f32.xlu0 %v565_v3 }
 0x453   :  { %2584 = vpow2.f32 %v563_v2 }
 0x456   :  { %v655_v4 = vpop.xlane.xlu2 %654  ;;  %v755_v5 = vpop.xlane.xlu0 %754 }
 0x457   :  { %v659_v6 = vsub.f32 %v651_v37, %v655_v4  ;;  %v759_v9 = vsub.f32 %v751_v40, %v755_v5 }
 0x459   :  { %v3108_v11 = vpop.eup %2584  ;;  %v661_v7 = vmul.f32 1.442695, %v659_v6  ;;  %v761_v12 = vmul.f32 1.442695, %v759_v9 }
 0x45a   :  { %v568_v17 = vsel %vm334_vm11, %v3108_v11, 0.0 }
 0x45b   :  { %2586 = vpow2.f32 %v661_v7  ;;  %569 = vadd.xlane.f32.xlu0 %v568_v17 }
 0x45c   :  { %2588 = vpow2.f32 %v761_v12 }
 0x45e   :  { %v758_v18 = vpop.xlane.xlu1 %757  ;;  %v468_v19 = vpop.xlane.xlu2 %467 }
 0x45f   :  { %v760_v20 = vsub.f32 %v752_v50, %v758_v18  ;;  %v658_v22 = vpop.xlane.xlu0 %657 }
 0x460   :  { %v660_v25 = vsub.f32 %v652_v42, %v658_v22 }
 0x461   :  { %v3112_v23 = vpop.eup %2586  ;;  %v763_v24 = vmul.f32 1.442695, %v760_v20 }
 0x462   :  { %v3114_v27 = vpop.eup %2588  ;;  %v665_v29 = vsel %vm334_vm11, %v3112_v23, 0.0  ;;  %v663_v32 = vmul.f32 1.442695, %v660_v25 }
 0x463   :  { %2590 = vpow2.f32 %v763_v24  ;;  %666 = vadd.xlane.f32.xlu0 %v665_v29  ;;  %v765_v30 = vsel %vm334_vm11, %v3114_v27, 0.0 }
 0x464   :  { %766 = vadd.xlane.f32.xlu1 %v765_v30  ;;  %2592 = vpow2.f32 %v663_v32  ;;  %v2439_v32 = vld [vmem:[%s3598_s9 + $0x8] sm:$0xff] }
 0x465   :  { %2594 = vrcp.f32 %v468_v19  ;;  %870 = vmatpush.bf16.msra.mxu0 %v2439_v32 }
 0x466   :  { %v2489_v33 = vpop.permute.xlu2 %2488 }
 0x467   :  { %v465_v26 = vpop.xlane.xlu0 %464  ;;  %v2490_v42 = vunpack.i.l.bf16 %v2489_v33  ;;  %v2491_v51 = vunpack.i.h.bf16 %v2489_v33  ;;  %v2438_v33 = vld [vmem:[%s3598_s9] sm:$0xff] }
 0x468   :  { %2596 = vrcp.f32 %v465_v26 }
 0x469   :  { %v2591_v34 = vpop.eup %2590  ;;  %871 = vmatpush.bf16.msra.mxu0 %v2438_v33 }
 0x46a   :  { %v768_v35 = vsel %vm334_vm11, %v2591_v34, 0.0  ;;  %v2593_v37 = vpop.eup %2592 }
 0x46b   :  { %769 = vadd.xlane.f32.xlu0 %v768_v35  ;;  %v668_v38 = vsel %vm334_vm11, %v2593_v37, 0.0  ;;  %v2595_v39 = vpop.eup %2594 }
 0x46c   :  { %v472_v47 = vmul.f32 %v2595_v39, %v3086_v49 }
 0x46e   :  { %v2494_v36 = vpop.permute.xlu2 %2493  ;;  %v2597_v41 = vpop.eup %2596 }
 0x46f   :  { %v471_v46 = vmul.f32 %v2597_v41, %v3092_v54  ;;  %v2495_v52 = vunpack.i.l.bf16 %v2494_v36  ;;  %v2496_v53 = vunpack.i.h.bf16 %v2494_v36 }
 0x473   :  { %669 = vadd.xlane.f32.xlu0 %v668_v38 }
 0x476   :  { %v2484_v40 = vpop.permute.xlu1 %2483  ;;  %v2499_v44 = vpop.permute.xlu2 %2498 }
 0x477   :  { %v2485_v28 = vunpack.i.l.bf16 %v2484_v40  ;;  %v2486_v45 = vunpack.i.h.bf16 %v2484_v40  ;;  %v2500_v48 = vunpack.i.l.bf16 %v2499_v44  ;;  %v2501_v50 = vunpack.i.h.bf16 %v2499_v44 }
 0x479   :  { %501 = vmatpush.msrb.mxu1 %v2485_v28  ;;  %2458 = vmatpush.msra.mxu2 %v2485_v28 }
 0x47b   :  { %502 = vmatpush.msrb.mxu1 %v2486_v45  ;;  %2459 = vmatpush.msra.mxu2 %v2486_v45 }
 0x47c   :  { %2270 = vmatmul.msk.f32.vlgmr.msrb.gmra.mxu1 %vm334_vm11, %v471_v46  ;;  %2271 = vmatmul.msk.f32.vlgmr.msra.gmra.mxu2 %vm334_vm11, %v472_v47 }
 0x47d   :  { %601 = vmatpush.msrb.mxu2 %v2490_v42  ;;  %701 = vmatpush.msra.mxu1 %v2500_v48 }
 0x47f   :  { %602 = vmatpush.msrb.mxu2 %v2491_v51  ;;  %702 = vmatpush.msra.mxu1 %v2501_v50  ;;  %v2557_v50 = vld [vmem:[%s3701_s19] ss:$0 sm:$0xff] }
 0x481   :  { %801 = vmatpush.msra.mxu2 %v2495_v52 }
 0x483   :  { %802 = vmatpush.msra.mxu2 %v2496_v53  ;;  %v2674_v53 = vld [vmem:[%s3682_s27] sm:$0xff] }
 0x4c5   :  { %v567_v54 = vpop.xlane.xlu0 %566 }
 0x4c6   :  { %2598 = vrcp.f32 %v567_v54 }
 0x4cc   :  { %v2599_v49 = vpop.eup %2598 }
 0x4cd   :  { %v573_v43 = vmul.f32 %v2599_v49, %v3104_v0 }
 0x4ce   :  { %v570_v55 = vpop.xlane.xlu0 %569 }
 0x4cf   :  { %2276 = vmatmul.msk.f32.vlgmr.msrb.gmra.mxu2 %vm334_vm11, %v573_v43  ;;  %2600 = vrcp.f32 %v570_v55 }
 0x4d5   :  { %v2601_v57 = vpop.eup %2600 }
 0x4d6   :  { %v667_v59 = vpop.xlane.xlu0 %666  ;;  %v574_v61 = vmul.f32 %v2601_v57, %v3108_v11  ;;  %v2675_v57 = vld [vmem:[%s3682_s27 + $0x8] sm:$0xff]  ;;  %s3714_s27 = sld [smem:[#allocation13_spill]] }
 0x4d7   :  { %v767_v63 = vpop.xlane.xlu1 %766  ;;  %2602 = vrcp.f32 %v667_v59 }
 0x4d8   :  { %2604 = vrcp.f32 %v767_v63  ;;  %2277 = vmatmul.msk.f32.gmra.mxu2 %vm334_vm11, %v574_v61 }
 0x4dd   :  { %v2603_v2 = vpop.eup %2602 }
 0x4de   :  { %v2605_v3 = vpop.eup %2604  ;;  %v673_v4 = vmul.f32 %v2603_v2, %v3112_v23  ;;  %v770_v5 = vpop.xlane.xlu0 %769 }
 0x4df   :  { %v773_v0 = vmul.f32 %v2605_v3, %v3114_v27  ;;  %2606 = vrcp.f32 %v770_v5 }
 0x4e0   :  { %2282 = vmatmul.msk.f32.vlgmr.msra.gmra.mxu1 %vm334_vm11, %v673_v4 }
 0x4e1   :  { %2288 = vmatmul.msk.f32.vlgmr.msra.gmra.mxu2 %vm334_vm11, %v773_v0 }
 0x4e5   :  { %v2607_v6 = vpop.eup %2606 }
 0x4e6   :  { %v670_v9 = vpop.xlane.xlu0 %669  ;;  %v774_v11 = vmul.f32 %v2607_v6, %v2591_v34 }
 0x4e7   :  { %2608 = vrcp.f32 %v670_v9 }
 0x4e9   :  { %2289 = vmatmul.msk.f32.gmra.mxu2 %vm334_vm11, %v774_v11 }
 0x4ed   :  { %v2609_v7 = vpop.eup %2608 }
 0x4ee   :  { %v674_v12 = vmul.f32 %v2609_v7, %v2593_v37 }
 0x4f0   :  { %2283 = vmatmul.msk.f32.gmra.mxu1 %vm334_vm11, %v674_v12 }
 0x4f9   :  { %v504_v22 = vpop.f32.mrf.mxu1 }
 0x4ff   :  { %v507_v17 = vpop.f32.mrf.mxu2 }
 0x552   :  { %v604_v18 = vpop.f32.mrf.mxu2 }
 0x55b   :  { %v607_v19 = vpop.f32.mrf.mxu2 }
 0x55c   :  { %v2507_v20 = vpack.i.bf16 %v607_v19, %v604_v18  ;;  %v2441_v18 = vld [vmem:[%s3602_s13 + $0x8] sm:$0xff] }
 0x55d   :  { %v704_v24 = vpop.f32.mrf.mxu1  ;;  %966 = vmatpush.bf16.msrb.mxu1 %v2441_v18 }
 0x55e   :  { %2508 = vrot.lane.b32.xlu2 %v2507_v20, %s3693_s7  ;;  %v2440_v20 = vld [vmem:[%s3602_s13] sm:$0xff] }
 0x561   :  { %967 = vmatpush.bf16.msrb.mxu1 %v2440_v20 }
 0x564   :  { %v804_v23 = vpop.f32.mrf.mxu2 }
 0x56c   :  { %v807_v25 = vpop.f32.mrf.mxu2 }
 0x56d   :  { %v2512_v27 = vpack.i.bf16 %v807_v25, %v804_v23  ;;  %v707_v29 = vpop.f32.mrf.mxu1 }
 0x56e   :  { %v2502_v30 = vpack.i.bf16 %v707_v29, %v704_v24 }
 0x56f   :  { %2513 = vrot.lane.b32.xlu2 %v2512_v27, %s3660_s21  ;;  %s3702_s21 = smov 96  }
 0x570   :  { %2503 = vrot.lane.b32.xlu0 %v2502_v30, %s3700_s22 }
 0x5b8   :  { %v2509_v34 = vpop.permute.xlu2 %2508 }
 0x5b9   :  { %v2511_v35 = vunpack.i.h.bf16 %v2509_v34  ;;  %v2510_v26 = vunpack.i.l.bf16 %v2509_v34 }
 0x5bb   :  { %v835_v40 = vsel %vm328_vm8, %v507_v17, %v2511_v35  ;;  %v834_v41 = vsel %vm328_vm8, %v504_v22, %v2510_v26 }
 0x5c9   :  { %v2514_v36 = vpop.permute.xlu2 %2513 }
 0x5ca   :  { %v2516_v28 = vunpack.i.h.bf16 %v2514_v36  ;;  %v2515_v44 = vunpack.i.l.bf16 %v2514_v36 }
 0x5e2   :  { %v2504_v37 = vpop.permute.xlu0 %2503 }
 0x5e3   :  { %v2506_v38 = vunpack.i.h.bf16 %v2504_v37  ;;  %v2505_v39 = vunpack.i.l.bf16 %v2504_v37 }
 0x5e5   :  { %v837_v45 = vsel %vm334_vm11, %v835_v40, %v2506_v38  ;;  %v836_v46 = vsel %vm334_vm11, %v834_v41, %v2505_v39  ;;  %v2558_v39 = vld [vmem:[%s3599_s11] ss:$0 sm:$0xff] }
 0x5e6   :  { %v839_v47 = vsel %vm340_vm13, %v837_v45, %v2516_v28  ;;  %v838_v48 = vsel %vm340_vm13, %v836_v46, %v2515_v44  ;;  %v2559_v44 = vld [vmem:[%s3600_s12] ss:$0 sm:$0xff] }
 0x5e7   :  { %v845_v42 = vpack.c.bf16 %v839_v47, %v838_v48 }
 0x5e9   :  { %2298 = vmatmul.msk.bf16.vlgmr.msra.gmra.mxu0 %vm89_vm0, %v845_v42 }
 0x666   :  { %v873_v51 = vpop.f32.mrf.mxu0 }
 0x667   :  { %v874_v52 = vadd.f32 %v2557_v50, %v873_v51  ;;  %v2560_v51 = vld [vmem:[%s3601_s14] ss:$0 sm:$0xff] }
 0x669   :  { %v3158_v54 = vadd.f32 %v2674_v53, %v874_v52 }
 0x66b   :  { %v882_v49 = vsel %vm89_vm0, %v3158_v54, 0.0 }
 0x66c   :  { %883 = vadd.xlane.f32.xlu2 %v882_v49 }
 0x66e   :  { %v875_v43 = vpop.f32.mrf.mxu0 }
 0x66f   :  { %v876_v55 = vadd.f32 %v2557_v50, %v875_v43 }
 0x671   :  { %v3165_v59 = vadd.f32 %v2675_v57, %v876_v55 }
 0x673   :  { %v885_v61 = vsel %vm89_vm0, %v3165_v59, 0.0 }
 0x674   :  { %886 = vadd.xlane.f32.xlu1 %v885_v61 }
 0x6df   :  { %v884_v63 = vpop.xlane.xlu2 %883 }
 0x6e0   :  { %v888_v2 = vmul.f32 %v884_v63, %v2837_v10 }
 0x6e2   :  { %v890_v3 = vsub.f32 %v3158_v54, %v888_v2 }
 0x6e4   :  { %v892_v4 = vmul.f32 %v890_v3, %v890_v3 }
 0x6e6   :  { %v894_v5 = vsel %vm89_vm0, %v892_v4, 0.0 }
 0x6e7   :  { %v887_v0 = vpop.xlane.xlu1 %886  ;;  %895 = vadd.xlane.f32.xlu0 %v894_v5 }
 0x6e8   :  { %v889_v6 = vmul.f32 %v887_v0, %v2837_v10 }
 0x6ea   :  { %v891_v9 = vsub.f32 %v3165_v59, %v889_v6 }
 0x6ec   :  { %v893_v11 = vmul.f32 %v891_v9, %v891_v9 }
 0x6ee   :  { %v897_v7 = vsel %vm89_vm0, %v893_v11, 0.0 }
 0x6ef   :  { %898 = vadd.xlane.f32.xlu1 %v897_v7 }
 0x75a   :  { %v896_v12 = vpop.xlane.xlu0 %895 }
 0x75b   :  { %v900_v17 = vmul.f32 %v896_v12, %v2837_v10 }
 0x75d   :  { %v902_v19 = vadd.f32 1e-05, %v900_v17 }
 0x75f   :  { %2610 = vrsqrt.f32 %v902_v19  ;;  %vm910_vm1 = vweird.f32 %v902_v19 }
 0x762   :  { %v899_v22 = vpop.xlane.xlu1 %898 }
 0x763   :  { %v901_v23 = vmul.f32 %v899_v22, %v2837_v10 }
 0x765   :  { %v2611_v24 = vpop.eup %2610  ;;  %v903_v25 = vadd.f32 1e-05, %v901_v23 }
 0x766   :  { %v905_v27 = vmul.f32 %v2611_v24, %v902_v19  ;;  %vm911_vm15 = vweird.f32 %v2611_v24  ;;  %v2445_v19 = vld [vmem:[%s3604_s15 + $0x18] sm:$0xff] }
 0x767   :  { %2612 = vrsqrt.f32 %v903_v25  ;;  %vm912_vm2 = vmor %vm910_vm1, %vm911_vm15  ;;  %vm920_vm4 = vweird.f32 %v903_v25  ;;  %1107 = vmatpush.bf16.msra.mxu3 %v2445_v19 }
 0x768   :  { %v906_v29 = vmul.f32 %v2611_v24, %v905_v27 }
 0x76a   :  { %v907_v30 = vmul.f32 0.5, %v906_v29 }
 0x76c   :  { %v908_v32 = vsub.f32 1.5, %v907_v30  ;;  %v2444_v30 = vld [vmem:[%s3604_s15 + $0x10] sm:$0xff] }
 0x76d   :  { %v2613_v33 = vpop.eup %2612  ;;  %1108 = vmatpush.bf16.msra.mxu3 %v2444_v30 }
 0x76e   :  { %v909_v34 = vmul.f32 %v2611_v24, %v908_v32  ;;  %v915_v35 = vmul.f32 %v2613_v33, %v903_v25  ;;  %vm921_vm3 = vweird.f32 %v2613_v33 }
 0x76f   :  { %vm922_vm5 = vmor %vm920_vm4, %vm921_vm3 }
 0x770   :  { %v916_v26 = vmul.f32 %v2613_v33, %v915_v35  ;;  %v913_v36 = vsel %vm912_vm2, %v2611_v24, %v909_v34 }
 0x771   :  { %v924_v40 = vmul.f32 %v913_v36, %v890_v3 }
 0x772   :  { %v917_v37 = vmul.f32 0.5, %v916_v26 }
 0x773   :  { %v929_v45 = vmul.f32 %v2558_v39, %v924_v40 }
 0x774   :  { %v918_v38 = vsub.f32 1.5, %v917_v37  ;;  %v2443_v37 = vld [vmem:[%s3604_s15 + $0x8] sm:$0xff] }
 0x775   :  { %v934_v48 = vadd.f32 %v2559_v44, %v929_v45  ;;  %1109 = vmatpush.bf16.msra.mxu3 %v2443_v37 }
 0x776   :  { %v919_v41 = vmul.f32 %v2613_v33, %v918_v38 }
 0x778   :  { %v923_v28 = vsel %vm922_vm5, %v2613_v33, %v919_v41 }
 0x779   :  { %v925_v46 = vmul.f32 %v923_v28, %v891_v9 }
 0x77b   :  { %v930_v47 = vmul.f32 %v2558_v39, %v925_v46 }
 0x77d   :  { %v935_v42 = vadd.f32 %v2559_v44, %v930_v47  ;;  %v2442_v44 = vld [vmem:[%s3604_s15] sm:$0xff] }
 0x77e   :  { %1110 = vmatpush.bf16.msra.mxu3 %v2442_v44 }
 0x77f   :  { %v941_v50 = vpack.c.bf16 %v935_v42, %v934_v48 }
 0x781   :  { %2307 = vmatmul.msk.bf16.vlgmr.msrb.gmra.mxu1 %vm89_vm0, %v941_v50 }
 0x7fe   :  { %v969_v52 = vpop.f32.mrf.mxu1 }
 0x7ff   :  { %v3193_v53 = vadd.f32 %v2560_v51, %v969_v52 }
 0x801   :  { %v3196_v49 = vmul.f32 0.70710677, %v3193_v53  ;;  %v974_v37 = vmul.f32 0.5, %v3193_v53 }
 0x803   :  { %v978_v43 = vmul.f32 %v3196_v49, %v3196_v49 }
 0x805   :  { %v979_v55 = vmin.f32 %v978_v43, 16.0 }
 0x806   :  { %v971_v57 = vpop.f32.mrf.mxu1 }
 0x807   :  { %v980_v61 = vmul.f32 2.1237322e-06, %v979_v55  ;;  %v991_v63 = vmul.f32 3.8918573e-05, %v979_v55  ;;  %v3200_v2 = vadd.f32 %v2560_v51, %v971_v57 }
 0x809   :  { %v981_v3 = vadd.f32 0.00028619796, %v980_v61  ;;  %v992_v4 = vadd.f32 0.001143296, %v991_v63  ;;  %v3203_v5 = vmul.f32 0.70710677, %v3200_v2 }
 0x80b   :  { %v993_v0 = vmul.f32 %v992_v4, %v979_v55  ;;  %v1018_v6 = vmul.f32 %v3203_v5, %v3203_v5  ;;  %v982_v9 = vmul.f32 %v981_v3, %v979_v55 }
 0x80d   :  { %v994_v11 = vadd.f32 0.014752088, %v993_v0  ;;  %v1019_v7 = vmin.f32 %v1018_v6, 16.0  ;;  %v983_v20 = vadd.f32 0.0036580483, %v982_v9 }
 0x80f   :  { %v995_v12 = vmul.f32 %v994_v11, %v979_v55  ;;  %v1020_v17 = vmul.f32 2.1237322e-06, %v1019_v7  ;;  %v1031_v18 = vmul.f32 3.8918573e-05, %v1019_v7  ;;  %v984_v32 = vmul.f32 %v983_v20, %v979_v55 }
 0x811   :  { %v996_v22 = vadd.f32 0.112945676, %v995_v12  ;;  %v1021_v23 = vadd.f32 0.00028619796, %v1020_v17  ;;  %v1032_v24 = vadd.f32 0.001143296, %v1031_v18 }
 0x812   :  { %v985_v38 = vadd.f32 0.05243302, %v984_v32 }
 0x813   :  { %v997_v25 = vmul.f32 %v996_v22, %v979_v55  ;;  %v1022_v27 = vmul.f32 %v1021_v23, %v1019_v7  ;;  %v1033_v29 = vmul.f32 %v1032_v24, %v1019_v7 }
 0x814   :  { %v986_v45 = vmul.f32 %v985_v38, %v979_v55  ;;  %v975_v38 = vmul.f32 0.5, %v3200_v2 }
 0x815   :  { %v998_v33 = vadd.f32 0.4994258, %v997_v25  ;;  %v1023_v34 = vadd.f32 0.0036580483, %v1022_v27  ;;  %v1034_v35 = vadd.f32 0.014752088, %v1033_v29 }
 0x816   :  { %v987_v50 = vadd.f32 0.18741608, %v986_v45 }
 0x817   :  { %v999_v26 = vmul.f32 %v998_v33, %v979_v55  ;;  %v1035_v36 = vmul.f32 %v1034_v35, %v1019_v7  ;;  %v1024_v40 = vmul.f32 %v1023_v34, %v1019_v7 }
 0x818   :  { %v988_v61 = vmul.f32 %v987_v50, %v979_v55 }
 0x819   :  { %v1000_v39 = vadd.f32 1.0, %v999_v26  ;;  %v1036_v41 = vadd.f32 0.112945676, %v1035_v36  ;;  %v1025_v46 = vadd.f32 0.05243302, %v1024_v40 }
 0x81a   :  { %v989_v9 = vadd.f32 1.1283791, %v988_v61 }
 0x81b   :  { %2614 = vrcp.f32 %v1000_v39  ;;  %v1037_v28 = vmul.f32 %v1036_v41, %v1019_v7  ;;  %v1026_v52 = vmul.f32 %v1025_v46, %v1019_v7  ;;  %v1012_v3 = vand.u32 2147483648, %v1000_v39 }
 0x81c   :  { %v1010_v0 = vand.u32 2147483647, %v1000_v39  ;;  %vm1006_vm7 = vweird.f32 %v1000_v39  ;;  %v990_v22 = vmul.f32 %v989_v9, %v3196_v49 }
 0x81d   :  { %v1038_v47 = vadd.f32 0.4994258, %v1037_v28  ;;  %v1027_v4 = vadd.f32 0.18741608, %v1026_v52  ;;  %v1013_v17 = vor.u32 1.1754944e-38, %v1012_v3 }
 0x81e   :  { %vm1011_vm1 = vcmp.eq.f32.partialorder %v1010_v0, 8.507059e+37  ;;  %v2447_v0 = vld [vmem:[%s3684_s25 + $0x18] sm:$0xff] }
 0x81f   :  { %v1039_v48 = vmul.f32 %v1038_v47, %v1019_v7  ;;  %v1028_v18 = vmul.f32 %v1027_v4, %v1019_v7  ;;  %1209 = vmatpush.bf16.msrb.mxu2 %v2447_v0 }
 0x821   :  { %v2615_v42 = vpop.eup %2614  ;;  %v1040_v43 = vadd.f32 1.0, %v1039_v48  ;;  %v1029_v55 = vadd.f32 1.1283791, %v1028_v18 }
 0x822   :  { %v1002_v51 = vmul.f32 %v2615_v42, %v1000_v39  ;;  %vm1007_vm6 = vweird.f32 %v2615_v42 }
 0x823   :  { %2616 = vrcp.f32 %v1040_v43  ;;  %vm1008_vm15 = vmor %vm1006_vm7, %vm1007_vm6  ;;  %v1052_v24 = vand.u32 2147483648, %v1040_v43  ;;  %v1050_v29 = vand.u32 2147483647, %v1040_v43  ;;  %vm1046_vm3 = vweird.f32 %v1040_v43 }
 0x824   :  { %v1003_v57 = vsub.f32 1.0, %v1002_v51  ;;  %v1030_v34 = vmul.f32 %v1029_v55, %v3203_v5  ;;  %vm1099_vm6 = vcmask 523264   ;;  %v2561_v5 = vld [vmem:[%s3603_s16] ss:$0 sm:$0xff] }
 0x825   :  { %v1053_v32 = vor.u32 1.1754944e-38, %v1052_v24  ;;  %vm1051_vm5 = vcmp.eq.f32.partialorder %v1050_v29, 8.507059e+37 }
 0x826   :  { %v1004_v63 = vmul.f32 %v2615_v42, %v1003_v57 }
 0x828   :  { %v1005_v6 = vadd.f32 %v2615_v42, %v1004_v63 }
 0x829   :  { %v2617_v11 = vpop.eup %2616 }
 0x82a   :  { %v1009_v12 = vsel %vm1008_vm15, %v2615_v42, %v1005_v6  ;;  %v1042_v19 = vmul.f32 %v2617_v11, %v1040_v43  ;;  %vm1047_vm2 = vweird.f32 %v2617_v11 }
 0x82b   :  { %v1014_v20 = vsel %vm1011_vm1, %v1013_v17, %v1009_v12  ;;  %vm1048_vm4 = vmor %vm1046_vm3, %vm1047_vm2 }
 0x82c   :  { %v1043_v23 = vsub.f32 1.0, %v1042_v19  ;;  %v1015_v25 = vmul.f32 %v1014_v20, %v990_v22 }
 0x82e   :  { %v1044_v27 = vmul.f32 %v2617_v11, %v1043_v23  ;;  %v2308_v33 = vclamps-f32 %v1015_v25, 1.0 }
 0x830   :  { %v1045_v30 = vadd.f32 %v2617_v11, %v1044_v27  ;;  %v1058_v36 = vadd.f32 1.0, %v2308_v33 }
 0x832   :  { %v1049_v7 = vsel %vm1048_vm4, %v2617_v11, %v1045_v30  ;;  %v1060_v40 = vmul.f32 %v1058_v36, %v974_v37  ;;  %v2446_v11 = vld [vmem:[%s3684_s25 + $0x10] sm:$0xff]  ;;  %v2555_v36 = vld [vmem:[%s3687_s2 + $0x1] ss:$0 sm:$0xff]  ;;  %s3716_s25 = sld [smem:[#allocation17_spill]] }
 0x833   :  { %v1054_v35 = vsel %vm1051_vm5, %v1053_v32, %v1049_v7  ;;  %1210 = vmatpush.bf16.msrb.mxu2 %v2446_v11 }
 0x834   :  { %v1055_v26 = vmul.f32 %v1054_v35, %v1030_v34  ;;  %v2554_v34 = vld [vmem:[%s3686_s8 + $0x1] ss:$0 sm:$0xff] }
 0x836   :  { %v2309_v49 = vclamps-f32 %v1055_v26, 1.0 }
 0x838   :  { %v1059_v39 = vadd.f32 1.0, %v2309_v49 }
 0x83a   :  { %v1061_v41 = vmul.f32 %v1059_v39, %v975_v38 }
 0x83c   :  { %v1071_v28 = vpack.c.bf16 %v1061_v41, %v1060_v40 }
 0x83e   :  { %2326 = vmatmul.msk.bf16.vlgmr.msra.gmra.mxu3 %vm1099_vm6, %v1071_v28  ;;  %v2562_v28 = vld [vmem:[%s3688_s3 + $0x1] ss:$0 sm:$0xff]  ;;  %s3712_s3 = sld [smem:[#allocation12_spill]] }
 0x8c1   :  { %v1112_v44 = vpop.f32.mrf.mxu3 }
 0x8c2   :  { %v1113_v45 = vadd.f32 %v2561_v5, %v1112_v44 }
 0x8c4   :  { %v3228_v46 = vadd.f32 %v1113_v45, %v3158_v54 }
 0x8c6   :  { %v1123_v53 = vsel %vm89_vm0, %v3228_v46, 0.0 }
 0x8c7   :  { %1124 = vadd.xlane.f32.xlu1 %v1123_v53 }
 0x8c9   :  { %v1114_v2 = vpop.f32.mrf.mxu3 }
 0x8ca   :  { %v1115_v47 = vadd.f32 %v2561_v5, %v1114_v2 }
 0x8cc   :  { %v3233_v48 = vadd.f32 %v1115_v47, %v3165_v59 }
 0x8ce   :  { %v1126_v42 = vsel %vm89_vm0, %v3233_v48, 0.0 }
 0x8cf   :  { %1127 = vadd.xlane.f32.xlu1 %v1126_v42 }
 0x93a   :  { %v1125_v50 = vpop.xlane.xlu1 %1124 }
 0x93b   :  { %v1129_v51 = vmul.f32 %v1125_v50, %v2837_v10 }
 0x93d   :  { %v1131_v52 = vsub.f32 %v3228_v46, %v1129_v51  ;;  %v2676_v51 = vld [vmem:[%s3683_s0] sm:$0xff] }
 0x93f   :  { %v1133_v54 = vmul.f32 %v1131_v52, %v1131_v52 }
 0x941   :  { %v1135_v43 = vsel %vm89_vm0, %v1133_v54, 0.0 }
 0x942   :  { %1136 = vadd.xlane.f32.xlu1 %v1135_v43  ;;  %v1128_v57 = vpop.xlane.xlu1 %1127 }
 0x943   :  { %v1130_v61 = vmul.f32 %v1128_v57, %v2837_v10 }
 0x945   :  { %v1132_v63 = vsub.f32 %v3233_v48, %v1130_v61 }
 0x947   :  { %v1134_v59 = vmul.f32 %v1132_v63, %v1132_v63 }
 0x949   :  { %v1138_v3 = vsel %vm89_vm0, %v1134_v59, 0.0 }
 0x94a   :  { %1139 = vadd.xlane.f32.xlu2 %v1138_v3 }
 0x9b5   :  { %v1137_v4 = vpop.xlane.xlu1 %1136 }
 0x9b6   :  { %v1141_v6 = vmul.f32 %v1137_v4, %v2837_v10 }
 0x9b8   :  { %v1143_v9 = vadd.f32 1e-05, %v1141_v6 }
 0x9ba   :  { %2618 = vrsqrt.f32 %v1143_v9  ;;  %vm1151_vm15 = vweird.f32 %v1143_v9 }
 0x9bd   :  { %v1140_v12 = vpop.xlane.xlu2 %1139 }
 0x9be   :  { %v1142_v17 = vmul.f32 %v1140_v12, %v2837_v10 }
 0x9c0   :  { %v2619_v18 = vpop.eup %2618  ;;  %v1144_v19 = vadd.f32 1e-05, %v1142_v17 }
 0x9c1   :  { %v1146_v20 = vmul.f32 %v2619_v18, %v1143_v9  ;;  %vm1152_vm7 = vweird.f32 %v2619_v18 }
 0x9c2   :  { %2620 = vrsqrt.f32 %v1144_v19  ;;  %vm1153_vm1 = vmor %vm1151_vm15, %vm1152_vm7  ;;  %vm1161_vm3 = vweird.f32 %v1144_v19 }
 0x9c3   :  { %v1147_v22 = vmul.f32 %v2619_v18, %v1146_v20 }
 0x9c5   :  { %v1148_v23 = vmul.f32 0.5, %v1147_v22 }
 0x9c7   :  { %v1149_v55 = vsub.f32 1.5, %v1148_v23 }
 0x9c8   :  { %v2621_v24 = vpop.eup %2620 }
 0x9c9   :  { %v1150_v25 = vmul.f32 %v2619_v18, %v1149_v55  ;;  %v1156_v27 = vmul.f32 %v2621_v24, %v1144_v19  ;;  %vm1162_vm2 = vweird.f32 %v2621_v24 }
 0x9ca   :  { %vm1163_vm4 = vmor %vm1161_vm3, %vm1162_vm2 }
 0x9cb   :  { %v1157_v29 = vmul.f32 %v2621_v24, %v1156_v27  ;;  %v1154_v30 = vsel %vm1153_vm1, %v2619_v18, %v1150_v25 }
 0x9cc   :  { %v1165_v7 = vmul.f32 %v1154_v30, %v1131_v52 }
 0x9cd   :  { %v1158_v32 = vmul.f32 0.5, %v1157_v29 }
 0x9ce   :  { %v1170_v49 = vmul.f32 %v2554_v34, %v1165_v7 }
 0x9cf   :  { %v1159_v33 = vsub.f32 1.5, %v1158_v32 }
 0x9d0   :  { %v1175_v39 = vadd.f32 %v2555_v36, %v1170_v49 }
 0x9d1   :  { %v1160_v35 = vmul.f32 %v2621_v24, %v1159_v33 }
 0x9d3   :  { %v1164_v26 = vsel %vm1163_vm4, %v2621_v24, %v1160_v35 }
 0x9d4   :  { %v1166_v37 = vmul.f32 %v1164_v26, %v1132_v63 }
 0x9d6   :  { %v1171_v38 = vmul.f32 %v2554_v34, %v1166_v37 }
 0x9d8   :  { %v1176_v40 = vadd.f32 %v2555_v36, %v1171_v38 }
 0x9da   :  { %v1184_v41 = vpack.c.bf16 %v1176_v40, %v1175_v39 }
 0x9dc   :  { %2342 = vmatmul.msk.bf16.vlgmr.msrb.gmra.mxu2 %vm89_vm0, %v1184_v41 }
 0xa5f   :  { %v1212_v5 = vpop.f32.mrf.mxu2 }
 0xa60   :  { %v1213_v44 = vadd.f32 %v2562_v28, %v1212_v5 }
 0xa62   :  { %v1261_v45 = vmul.f32 %v1213_v44, %v2909_v60  ;;  %v1247_v53 = vmul.f32 %v1213_v44, %v2911_v62  ;;  %v1219_v2 = vmul.f32 %v1213_v44, %v2917_v1  ;;  %v1233_v52 = vmul.f32 %v2676_v51, %v1213_v44  ;;  %v2677_v1 = vld [vmem:[%s3683_s0 + $0x8] sm:$0xff]  ;;  %s3703_s0 = smov 84  }
 0xa63   :  { %v1245_v43 = vmul.f32 %v1213_v44, %v2946_v15 }
 0xa64   :  { %1265 = vrot.lane.b32.xlu1 %v1261_v45, %s3700_s22  ;;  %1251 = vrot.lane.b32.xlu0 %v1247_v53, %s3697_s5 }
 0xa65   :  { %1223 = vrot.lane.b32.xlu2 %v1219_v2, %s3697_s5 }
 0xa67   :  { %v1214_v47 = vpop.f32.mrf.mxu2 }
 0xa68   :  { %v1215_v42 = vadd.f32 %v2562_v28, %v1214_v47 }
 0xa6a   :  { %v1248_v50 = vmul.f32 %v1215_v42, %v2902_v56  ;;  %v1262_v60 = vmul.f32 %v1215_v42, %v2907_v58  ;;  %v3274_v62 = vpack.i.bf16 %v1213_v44, %v1215_v42  ;;  %v1234_v56 = vmul.f32 %v2677_v1, %v1215_v42 }
 0xa6b   :  { %v1220_v54 = vmul.f32 %v1215_v42, %v2931_v8  ;;  %v1259_v58 = vmul.f32 %v1213_v44, %v2948_v16  ;;  %v1231_v8 = vmul.f32 %v1213_v44, %v2955_v21  ;;  %v2678_v16 = vld [vmem:[%s3685_s6] sm:$0xff]  ;;  %v1260_v9 = vmul.f32 %v1215_v42, %v2942_v13 }
 0xa6c   :  { %1253 = vrot.lane.b32.xlu1 %v1248_v50, %s3697_s5  ;;  %1237 = vrot.lane.b32.xlu0 %v1233_v52, %s3700_s22  ;;  %v1217_v0 = vmul.f32 %v2678_v16, %v1213_v44  ;;  %v1246_v17 = vmul.f32 %v1215_v42, %v2944_v14  ;;  %v1232_v20 = vmul.f32 %v1215_v42, %v2976_v31  ;;  %v2679_v14 = vld [vmem:[%s3685_s6 + $0x8] sm:$0xff] }
 0xa6d   :  { %1267 = vrot.lane.b32.xlu2 %v1262_v60, %s3700_s22  ;;  %v1218_v22 = vmul.f32 %v2679_v14, %v1215_v42 }
 0xa74   :  { %1239 = vrot.lane.b32.xlu1 %v1234_v56, %s3700_s22  ;;  %1225 = vrot.lane.b32.xlu0 %v1220_v54, %s3697_s5 }
 0xabf   :  { %v1224_v15 = vpop.permute.xlu2 %1223 }
 0xac0   :  { %v1229_v6 = vsub.f32 %v1217_v0, %v1224_v15 }
 0xac7   :  { %v1268_v21 = vpop.permute.xlu2 %1267 }
 0xac8   :  { %v1272_v11 = vadd.f32 %v1268_v21, %v1260_v9 }
 0xad6   :  { %v1266_v57 = vpop.permute.xlu1 %1265  ;;  %v1252_v61 = vpop.permute.xlu0 %1251 }
 0xad7   :  { %v1271_v63 = vadd.f32 %v1266_v57, %v1259_v58  ;;  %v1257_v59 = vsub.f32 %v1245_v43, %v1252_v61 }
 0xad9   :  { %1349 = vrot.lane.b32.xlu1 %v1271_v63, %s3690_s28  ;;  %1329 = vrot.lane.b32.xlu0 %v1257_v59, %s3702_s21 }
 0xada   :  { %1337 = vrot.lane.b32.xlu2 %v1271_v63, %s3703_s0 }
 0xade   :  { %v1238_v3 = vpop.permute.xlu0 %1237  ;;  %v1254_v12 = vpop.permute.xlu1 %1253 }
 0xadf   :  { %v3289_v4 = vadd.f32 %v1238_v3, %v1231_v8  ;;  %v1258_v18 = vsub.f32 %v1246_v17, %v1254_v12 }
 0xae1   :  { %1355 = vrot.lane.b32.xlu1 %v1257_v59, %s3696_s1  ;;  %1343 = vrot.lane.b32.xlu0 %v1257_v59, %s3689_s29 }
 0xae2   :  { %1275 = vrot.lane.b32.xlu2 %v3289_v4, %s3691_s30 }
 0xae6   :  { %v1240_v13 = vpop.permute.xlu1 %1239  ;;  %v1226_v19 = vpop.permute.xlu0 %1225 }
 0xae7   :  { %v3321_v23 = vadd.f32 %v1240_v13, %v1232_v20  ;;  %v3323_v55 = vsub.f32 %v1218_v22, %v1226_v19 }
 0xae9   :  { %1289 = vrot.lane.b32.xlu1 %v3289_v4, %s3694_s10  ;;  %1283 = vrot.lane.b32.xlu0 %v1229_v6, %s3692_s26 }
 0xaea   :  { %1361 = vrot.lane.b32.xlu2 %v1271_v63, %s3704_s17 }
 0xaf1   :  { %1373 = vrot.lane.b32.xlu1 %v1271_v63, %s3702_s21  ;;  %1367 = vrot.lane.b32.xlu0 %v1257_v59, %s3705_s18 }
 0xaf2   :  { %1295 = vrot.lane.b32.xlu2 %v1229_v6, %s3693_s7 }
 0xaf9   :  { %1339 = vrot.lane.b32.xlu1 %v1272_v11, %s3703_s0  ;;  %1301 = vrot.lane.b32.xlu0 %v3289_v4, %s3706_s4 }
 0xafa   :  { %1307 = vrot.lane.b32.xlu2 %v1229_v6, %s3695_s24 }
 0xb01   :  { %1357 = vrot.lane.b32.xlu1 %v1258_v18, %s3696_s1  ;;  %1345 = vrot.lane.b32.xlu0 %v1258_v18, %s3689_s29 }
 0xb02   :  { %1331 = vrot.lane.b32.xlu2 %v1258_v18, %s3702_s21 }
 0xb09   :  { %1363 = vrot.lane.b32.xlu1 %v1272_v11, %s3704_s17  ;;  %1375 = vrot.lane.b32.xlu0 %v1272_v11, %s3702_s21 }
 0xb0a   :  { %1351 = vrot.lane.b32.xlu2 %v1272_v11, %s3690_s28  ;;  %s3710_s28 = smov 48  }
 0xb11   :  { %1277 = vrot.lane.b32.xlu1 %v3321_v23, %s3691_s30  ;;  %1285 = vrot.lane.b32.xlu0 %v3323_v55, %s3692_s26  ;;  %s3709_s26 = smov 64  }
 0xb12   :  { %1369 = vrot.lane.b32.xlu2 %v1258_v18, %s3705_s18 }
 0xb19   :  { %1297 = vrot.lane.b32.xlu1 %v3323_v55, %s3693_s7  ;;  %1303 = vrot.lane.b32.xlu0 %v3321_v23, %s3706_s4 }
 0xb1a   :  { %1291 = vrot.lane.b32.xlu2 %v3321_v23, %s3694_s10 }
 0xb22   :  { %1309 = vrot.lane.b32.xlu2 %v3323_v55, %s3695_s24 }
 0xb34   :  { %v1338_v31 = vpop.permute.xlu2 %1337 }
 0xb3c   :  { %v1276_v24 = vpop.permute.xlu2 %1275 }
 0xb3d   :  { %v1313_v41 = vsel %vm325_vm9, %v1229_v6, %v1276_v24 }
 0xb44   :  { %v1362_v25 = vpop.permute.xlu2 %1361 }
 0xb4b   :  { %v1350_v27 = vpop.permute.xlu1 %1349  ;;  %v1330_v29 = vpop.permute.xlu0 %1329 }
 0xb4c   :  { %v1296_v30 = vpop.permute.xlu2 %1295  ;;  %v1379_v34 = vsel %vm325_vm9, %v1330_v29, %v1338_v31 }
 0xb53   :  { %v1356_v32 = vpop.permute.xlu1 %1355  ;;  %v1344_v33 = vpop.permute.xlu0 %1343 }
 0xb54   :  { %v1381_v7 = vsel %vm328_vm8, %v1379_v34, %v1344_v33  ;;  %v1308_v35 = vpop.permute.xlu2 %1307  ;;  %v2680_v33 = vld [vmem:[%s3698_s20] sm:$0xff] }
 0xb55   :  { %v1383_v49 = vsel %vm331_vm10, %v1381_v7, %v1350_v27 }
 0xb56   :  { %v1385_v37 = vsel %vm334_vm11, %v1383_v49, %v1356_v32 }
 0xb57   :  { %v1387_v39 = vsel %vm337_vm12, %v1385_v37, %v1362_v25  ;;  %v2681_v37 = vld [vmem:[%s3698_s20 + $0x8] sm:$0xff]  ;;  %s3707_s20 = smov 56  }
 0xb5b   :  { %v1290_v26 = vpop.permute.xlu1 %1289  ;;  %v1284_v36 = vpop.permute.xlu0 %1283 }
 0xb5c   :  { %v1332_v28 = vpop.permute.xlu2 %1331  ;;  %v1315_v44 = vsel %vm328_vm8, %v1313_v41, %v1284_v36 }
 0xb5d   :  { %v1317_v53 = vsel %vm331_vm10, %v1315_v44, %v1290_v26 }
 0xb5e   :  { %v1319_v42 = vsel %vm334_vm11, %v1317_v53, %v1296_v30 }
 0xb63   :  { %v1374_v38 = vpop.permute.xlu1 %1373  ;;  %v1368_v40 = vpop.permute.xlu0 %1367 }
 0xb64   :  { %v1389_v5 = vsel %vm340_vm13, %v1387_v39, %v1368_v40  ;;  %v1352_v52 = vpop.permute.xlu2 %1351 }
 0xb65   :  { %v1391_v45 = vsel %vm343_vm14, %v1389_v5, %v1374_v38 }
 0xb66   :  { %1495 = vrot.lane.b32.xlu0 %v1391_v45, %s3694_s10 }
 0xb6b   :  { %v1340_v2 = vpop.permute.xlu1 %1339  ;;  %v1302_v47 = vpop.permute.xlu0 %1301 }
 0xb6c   :  { %v1321_v50 = vsel %vm337_vm12, %v1319_v42, %v1302_v47  ;;  %v1380_v54 = vsel %vm325_vm9, %v1332_v28, %v1340_v2  ;;  %v1370_v43 = vpop.permute.xlu2 %1369 }
 0xb6d   :  { %v1323_v51 = vsel %vm340_vm13, %v1321_v50, %v1308_v35 }
 0xb6e   :  { %v1325_v60 = vsel %vm343_vm14, %v1323_v51, %v3289_v4 }
 0xb6f   :  { %1491 = vrot.lane.b32.xlu2 %v1325_v60, %s3694_s10 }
 0xb73   :  { %v1358_v1 = vpop.permute.xlu1 %1357  ;;  %v1346_v56 = vpop.permute.xlu0 %1345 }
 0xb74   :  { %v1382_v58 = vsel %vm328_vm8, %v1380_v54, %v1346_v56  ;;  %v1292_v15 = vpop.permute.xlu2 %1291 }
 0xb75   :  { %v1384_v57 = vsel %vm331_vm10, %v1382_v58, %v1352_v52 }
 0xb76   :  { %v1386_v63 = vsel %vm334_vm11, %v1384_v57, %v1358_v1 }
 0xb77   :  { %1695 = vrot.lane.b32.xlu2 %v1391_v45, %s3696_s1 }
 0xb7b   :  { %v1364_v61 = vpop.permute.xlu1 %1363  ;;  %v1376_v59 = vpop.permute.xlu0 %1375 }
 0xb7c   :  { %v1388_v8 = vsel %vm337_vm12, %v1386_v63, %v1364_v61  ;;  %v1310_v18 = vpop.permute.xlu2 %1309 }
 0xb7d   :  { %v1390_v3 = vsel %vm340_vm13, %v1388_v8, %v1370_v43 }
 0xb7e   :  { %v1392_v4 = vsel %vm343_vm14, %v1390_v3, %v1376_v59 }
 0xb7f   :  { %1697 = vrot.lane.b32.xlu0 %v1392_v4, %s3696_s1  ;;  %1497 = vrot.lane.b32.xlu1 %v1392_v4, %s3694_s10 }
 0xb80   :  { %2343 = vmatpush.xpose.msk.msrb.mxu0 %vm328_vm8, %v1392_v4  ;;  %1595 = vrot.lane.b32.xlu2 %v1391_v45, %s3697_s5 }
 0xb83   :  { %v1278_v16 = vpop.permute.xlu1 %1277  ;;  %v1286_v0 = vpop.permute.xlu0 %1285 }
 0xb84   :  { %2344 = vmatpush.xpose.msk.msrb.mxu0 %vm328_vm8, %v1391_v45  ;;  %v1314_v6 = vsel %vm325_vm9, %v3323_v55, %v1278_v16 }
 0xb85   :  { %v1316_v21 = vsel %vm328_vm8, %v1314_v6, %v1286_v0 }
 0xb86   :  { %v1318_v11 = vsel %vm331_vm10, %v1316_v21, %v1292_v15 }
 0xb87   :  { %2345 = vmatmul.msk.f32.vlgmr.msrb.gmra.mxu0 %vm328_vm8, %v1325_v60  ;;  %1597 = vrot.lane.b32.xlu0 %v1392_v4, %s3697_s5 }
 0xb8b   :  { %v1298_v9 = vpop.permute.xlu1 %1297  ;;  %v1304_v12 = vpop.permute.xlu0 %1303 }
 0xb8c   :  { %v1320_v17 = vsel %vm334_vm11, %v1318_v11, %v1298_v9 }
 0xb8d   :  { %v1322_v13 = vsel %vm337_vm12, %v1320_v17, %v1304_v12 }
 0xb8e   :  { %v1324_v19 = vsel %vm340_vm13, %v1322_v13, %v1310_v18 }
 0xb8f   :  { %1591 = vrot.lane.b32.xlu0 %v1325_v60, %s3697_s5  ;;  %v1326_v20 = vsel %vm343_vm14, %v1324_v19, %v3321_v23 }
 0xb90   :  { %1493 = vrot.lane.b32.xlu1 %v1326_v20, %s3694_s10  ;;  %1593 = vrot.lane.b32.xlu2 %v1326_v20, %s3697_s5  ;;  %s3708_s10 = smov 40   ;;  %s3711_s5 = smov 24  }
 0xb91   :  { %2346 = vmatmul.msk.f32.gmra.mxu0 %vm328_vm8, %v1326_v20 }
 0xb98   :  { %1691 = vrot.lane.b32.xlu1 %v1325_v60, %s3696_s1 }
 0xba0   :  { %1693 = vrot.lane.b32.xlu1 %v1326_v20, %s3696_s1  ;;  %s3718_s1 = sld [smem:[#allocation15_spill]] }
 0xbc9   :  { %v1492_v14 = vpop.permute.xlu2 %1491 }
 0xbd1   :  { %v1696_v24 = vpop.permute.xlu2 %1695 }
 0xbd8   :  { %v1496_v22 = vpop.permute.xlu0 %1495 }
 0xbda   :  { %v1596_v25 = vpop.permute.xlu2 %1595 }
 0xbea   :  { %v1594_v7 = vpop.permute.xlu2 %1593 }
 0xbf1   :  { %v1498_v55 = vpop.permute.xlu1 %1497  ;;  %v1698_v31 = vpop.permute.xlu0 %1697 }
 0xbf2   :  { %2349 = vmatpush.xpose.msk.msrb.mxu3 %vm328_vm8, %v1498_v55 }
 0xbf6   :  { %2350 = vmatpush.xpose.msk.msrb.mxu3 %vm328_vm8, %v1496_v22 }
 0xbf9   :  { %v1598_v23 = vpop.permute.xlu0 %1597  ;;  %2351 = vmatmul.msk.f32.vlgmr.msrb.gmra.mxu3 %vm328_vm8, %v1492_v14 }
 0xbfa   :  { %2361 = vmatpush.xpose.msk.msra.mxu3 %vm328_vm8, %v1698_v31  ;;  %2355 = vmatpush.xpose.msk.msra.mxu0 %vm328_vm8, %v1598_v23 }
 0xbfe   :  { %2362 = vmatpush.xpose.msk.msra.mxu3 %vm328_vm8, %v1696_v24  ;;  %2356 = vmatpush.xpose.msk.msra.mxu0 %vm328_vm8, %v1596_v25 }
 0xc01   :  { %v1592_v27 = vpop.permute.xlu0 %1591 }
 0xc02   :  { %v1494_v29 = vpop.permute.xlu1 %1493  ;;  %2357 = vmatmul.msk.f32.vlgmr.msra.gmra.mxu0 %vm328_vm8, %v1592_v27 }
 0xc03   :  { %2352 = vmatmul.msk.f32.gmra.mxu3 %vm328_vm8, %v1494_v29 }
 0xc04   :  { %v1422_v30 = vpop.f32.mrf.mxu0 }
 0xc05   :  { %v1428_v32 = vmul.f32 0.35355338, %v1422_v30 }
 0xc07   :  { %v1430_v34 = vadd.f32 %v2680_v33, %v1428_v32 }
 0xc09   :  { %v1432_v35 = vsel %vm334_vm11, %v1430_v34, -inf }
 0xc0a   :  { %1433 = vmax.xlane.f32.xlu0 %v1432_v35  ;;  %v1692_v26 = vpop.permute.xlu1 %1691  ;;  %2358 = vmatmul.msk.f32.gmra.mxu0 %vm328_vm8, %v1594_v7 }
 0xc0b   :  { %2363 = vmatmul.msk.f32.vlgmr.msra.gmra.mxu3 %vm328_vm8, %v1692_v26 }
 0xc0e   :  { %v1425_v36 = vpop.f32.mrf.mxu0 }
 0xc0f   :  { %v1429_v49 = vmul.f32 0.35355338, %v1425_v36 }
 0xc11   :  { %v1431_v38 = vadd.f32 %v2681_v37, %v1429_v49 }
 0xc12   :  { %v1694_v39 = vpop.permute.xlu1 %1693 }
 0xc13   :  { %2364 = vmatmul.msk.f32.gmra.mxu3 %vm328_vm8, %v1694_v39  ;;  %v1435_v40 = vsel %vm334_vm11, %v1431_v38, -inf }
 0xc14   :  { %1436 = vmax.xlane.f32.xlu1 %v1435_v40 }
 0xc7c   :  { %v1524_v41 = vpop.f32.mrf.mxu3 }
 0xc7d   :  { %v1530_v28 = vmul.f32 0.35355338, %v1524_v41  ;;  %v1434_v5 = vpop.xlane.xlu0 %1433 }
 0xc7e   :  { %v1438_v44 = vsub.f32 %v1430_v34, %v1434_v5 }
 0xc7f   :  { %v1624_v45 = vpop.f32.mrf.mxu0  ;;  %v1532_v53 = vadd.f32 %v2680_v33, %v1530_v28 }
 0xc80   :  { %v1440_v2 = vmul.f32 1.442695, %v1438_v44  ;;  %v1630_v47 = vmul.f32 0.35355338, %v1624_v45 }
 0xc81   :  { %v1534_v42 = vsel %vm334_vm11, %v1532_v53, -inf }
 0xc82   :  { %2622 = vpow2.f32 %v1440_v2  ;;  %v1632_v50 = vadd.f32 %v2680_v33, %v1630_v47  ;;  %1535 = vmax.xlane.f32.xlu1 %v1534_v42 }
 0xc84   :  { %v1634_v51 = vsel %vm334_vm11, %v1632_v50, -inf }
 0xc85   :  { %1635 = vmax.xlane.f32.xlu2 %v1634_v51 }
 0xc86   :  { %v1527_v52 = vpop.f32.mrf.mxu3 }
 0xc87   :  { %v1531_v60 = vmul.f32 0.35355338, %v1527_v52  ;;  %v1437_v1 = vpop.xlane.xlu1 %1436  ;;  %v1627_v56 = vpop.f32.mrf.mxu0 }
 0xc88   :  { %v3407_v54 = vpop.eup %2622  ;;  %v1439_v58 = vsub.f32 %v1431_v38, %v1437_v1  ;;  %v1631_v43 = vmul.f32 0.35355338, %v1627_v56 }
 0xc89   :  { %v1533_v57 = vadd.f32 %v2681_v37, %v1531_v60  ;;  %v1444_v61 = vsel %vm334_vm11, %v3407_v54, 0.0 }
 0xc8a   :  { %v1442_v63 = vmul.f32 1.442695, %v1439_v58  ;;  %v3411_v59 = vadd.f32 %v2681_v37, %v1631_v43  ;;  %1445 = vadd.xlane.f32.xlu1 %v1444_v61 }
 0xc8b   :  { %v1537_v8 = vsel %vm334_vm11, %v1533_v57, -inf }
 0xc8c   :  { %2624 = vpow2.f32 %v1442_v63  ;;  %v1637_v3 = vsel %vm334_vm11, %v3411_v59, -inf }
 0xc8d   :  { %1538 = vmax.xlane.f32.xlu2 %v1537_v8  ;;  %1638 = vmax.xlane.f32.xlu0 %v1637_v3 }
 0xc8e   :  { %v1724_v4 = vpop.f32.mrf.mxu3 }
 0xc8f   :  { %v1730_v15 = vmul.f32 0.35355338, %v1724_v4 }
 0xc91   :  { %v1732_v16 = vadd.f32 %v2680_v33, %v1730_v15 }
 0xc92   :  { %v3416_v0 = vpop.eup %2624 }
 0xc93   :  { %v1734_v6 = vsel %vm334_vm11, %v1732_v16, -inf  ;;  %v1447_v21 = vsel %vm334_vm11, %v3416_v0, 0.0 }
 0xc95   :  { %1735 = vmax.xlane.f32.xlu0 %v1734_v6  ;;  %1448 = vadd.xlane.f32.xlu2 %v1447_v21 }
 0xc96   :  { %v1727_v9 = vpop.f32.mrf.mxu3 }
 0xc97   :  { %v1731_v11 = vmul.f32 0.35355338, %v1727_v9 }
 0xc99   :  { %v1733_v12 = vadd.f32 %v2681_v37, %v1731_v11 }
 0xc9b   :  { %v1737_v17 = vsel %vm334_vm11, %v1733_v12, -inf }
 0xc9c   :  { %1738 = vmax.xlane.f32.xlu1 %v1737_v17 }
 0xca9   :  { %2518 = vrot.lane.b32.xlu0 %v3274_v62, %s3707_s20  ;;  %s3719_s20 = sld [smem:[#allocation19_spill]] }
 0xcad   :  { %2528 = vrot.lane.b32.xlu2 %v3274_v62, %s3708_s10 }
 0xcb5   :  { %2523 = vrot.lane.b32.xlu1 %v3274_v62, %s3709_s26 }
 0xcf5   :  { %v1536_v18 = vpop.xlane.xlu1 %1535 }
 0xcf6   :  { %v1540_v13 = vsub.f32 %v1532_v53, %v1536_v18 }
 0xcf8   :  { %v1542_v19 = vmul.f32 1.442695, %v1540_v13  ;;  %v1636_v20 = vpop.xlane.xlu2 %1635 }
 0xcf9   :  { %v1640_v14 = vsub.f32 %v1632_v50, %v1636_v20 }
 0xcfa   :  { %2626 = vpow2.f32 %v1542_v19 }
 0xcfb   :  { %v1642_v22 = vmul.f32 1.442695, %v1640_v14 }
 0xcfd   :  { %2628 = vpow2.f32 %v1642_v22  ;;  %v1446_v32 = vpop.xlane.xlu1 %1445 }
 0xd00   :  { %v3428_v55 = vpop.eup %2626  ;;  %v1539_v31 = vpop.xlane.xlu2 %1538 }
 0xd01   :  { %v1639_v24 = vpop.xlane.xlu0 %1638  ;;  %v1541_v23 = vsub.f32 %v1533_v57, %v1539_v31  ;;  %v1546_v25 = vsel %vm334_vm11, %v3428_v55, 0.0 }
 0xd02   :  { %1547 = vadd.xlane.f32.xlu2 %v1546_v25  ;;  %v1641_v58 = vsub.f32 %v3411_v59, %v1639_v24 }
 0xd03   :  { %v3432_v27 = vpop.eup %2628  ;;  %v1544_v29 = vmul.f32 1.442695, %v1541_v23 }
 0xd04   :  { %v1646_v30 = vsel %vm334_vm11, %v3432_v27, 0.0  ;;  %v1644_v43 = vmul.f32 1.442695, %v1641_v58 }
 0xd05   :  { %2630 = vpow2.f32 %v1544_v29  ;;  %1647 = vadd.xlane.f32.xlu0 %v1646_v30 }
 0xd08   :  { %v1449_v37 = vpop.xlane.xlu2 %1448 }
 0xd09   :  { %v1736_v33 = vpop.xlane.xlu0 %1735 }
 0xd0a   :  { %v1740_v34 = vsub.f32 %v1732_v16, %v1736_v33 }
 0xd0b   :  { %v2631_v7 = vpop.eup %2630 }
 0xd0c   :  { %v1742_v35 = vmul.f32 1.442695, %v1740_v34  ;;  %v1549_v26 = vsel %vm334_vm11, %v2631_v7, 0.0  ;;  %v2449_v34 = vld [vmem:[%s3712_s3 + $0x18] sm:$0xff] }
 0xd0d   :  { %1550 = vadd.xlane.f32.xlu2 %v1549_v26  ;;  %1853 = vmatpush.bf16.msrb.mxu0 %v2449_v34 }
 0xd0e   :  { %2632 = vpow2.f32 %v1742_v35 }
 0xd0f   :  { %v1739_v36 = vpop.xlane.xlu1 %1738 }
 0xd10   :  { %v1741_v49 = vsub.f32 %v1733_v12, %v1739_v36  ;;  %v2529_v44 = vpop.permute.xlu2 %2528 }
 0xd11   :  { %v2530_v2 = vunpack.i.l.bf16 %v2529_v44  ;;  %v2531_v47 = vunpack.i.h.bf16 %v2529_v44 }
 0xd12   :  { %v1744_v38 = vmul.f32 1.442695, %v1741_v49 }
 0xd14   :  { %v2633_v39 = vpop.eup %2632  ;;  %2634 = vpow2.f32 %v1744_v38 }
 0xd15   :  { %v1746_v40 = vsel %vm334_vm11, %v2633_v39, 0.0  ;;  %2636 = vrcp.f32 %v1446_v32 }
 0xd16   :  { %1747 = vadd.xlane.f32.xlu2 %v1746_v40  ;;  %2638 = vrcp.f32 %v1449_v37 }
 0xd17   :  { %2640 = vpow2.f32 %v1644_v43 }
 0xd1a   :  { %v2635_v41 = vpop.eup %2634 }
 0xd1b   :  { %v2519_v28 = vpop.permute.xlu0 %2518  ;;  %v1749_v5 = vsel %vm334_vm11, %v2635_v41, 0.0  ;;  %v2637_v50 = vpop.eup %2636 }
 0xd1c   :  { %v2520_v45 = vunpack.i.l.bf16 %v2519_v28  ;;  %1750 = vadd.xlane.f32.xlu1 %v1749_v5  ;;  %v2521_v53 = vunpack.i.h.bf16 %v2519_v28  ;;  %v1452_v60 = vmul.f32 %v2637_v50, %v3407_v54  ;;  %v2639_v1 = vpop.eup %2638 }
 0xd1d   :  { %v1453_v56 = vmul.f32 %v2639_v1, %v3416_v0  ;;  %v2641_v57 = vpop.eup %2640 }
 0xd1e   :  { %1582 = vmatpush.msra.mxu2 %v2520_v45  ;;  %v1649_v61 = vsel %vm334_vm11, %v2641_v57, 0.0 }
 0xd20   :  { %1583 = vmatpush.msra.mxu2 %v2521_v53 }
 0xd22   :  { %1782 = vmatpush.msrb.mxu2 %v2530_v2 }
 0xd24   :  { %1783 = vmatpush.msrb.mxu2 %v2531_v47 }
 0xd27   :  { %v2524_v42 = vpop.permute.xlu1 %2523 }
 0xd28   :  { %v2525_v51 = vunpack.i.l.bf16 %v2524_v42  ;;  %v2526_v52 = vunpack.i.h.bf16 %v2524_v42  ;;  %v2563_v42 = vld [vmem:[%s3701_s19 + $0x1] ss:$0 sm:$0xff] }
 0xd2a   :  { %1482 = vmatpush.msra.mxu1 %v2525_v51 }
 0xd2c   :  { %1483 = vmatpush.msra.mxu1 %v2526_v52 }
 0xd2d   :  { %2347 = vmatmul.msk.f32.vlgmr.msra.gmra.mxu1 %vm334_vm11, %v1452_v60 }
 0xd2e   :  { %2533 = vrot.lane.b32.xlu2 %v3274_v62, %s3710_s28  ;;  %s3713_s28 = sld [smem:[#allocation16_spill]] }
 0xd35   :  { %2348 = vmatmul.msk.f32.gmra.mxu1 %vm334_vm11, %v1453_v56 }
 0xd57   :  { %1650 = vadd.xlane.f32.xlu2 %v1649_v61 }
 0xd75   :  { %v1548_v54 = vpop.xlane.xlu2 %1547 }
 0xd76   :  { %2642 = vrcp.f32 %v1548_v54 }
 0xd78   :  { %v1648_v4 = vpop.xlane.xlu0 %1647 }
 0xd7c   :  { %v2643_v63 = vpop.eup %2642 }
 0xd7d   :  { %v1554_v62 = vmul.f32 %v2643_v63, %v3428_v55 }
 0xd7f   :  { %2353 = vmatmul.msk.f32.vlgmr.msra.gmra.mxu2 %vm334_vm11, %v1554_v62 }
 0xd80   :  { %v1551_v8 = vpop.xlane.xlu2 %1550 }
 0xd81   :  { %2644 = vrcp.f32 %v1551_v8 }
 0xd87   :  { %v2645_v3 = vpop.eup %2644 }
 0xd88   :  { %v1555_v16 = vmul.f32 %v2645_v3, %v2631_v7  ;;  %v2448_v7 = vld [vmem:[%s3712_s3 + $0x10] sm:$0xff] }
 0xd89   :  { %v1748_v15 = vpop.xlane.xlu2 %1747  ;;  %1854 = vmatpush.bf16.msrb.mxu0 %v2448_v7 }
 0xd8a   :  { %2646 = vrcp.f32 %v1748_v15  ;;  %2354 = vmatmul.msk.f32.gmra.mxu2 %vm334_vm11, %v1555_v16 }
 0xd8b   :  { %2648 = vrcp.f32 %v1648_v4 }
 0xd8f   :  { %v1751_v0 = vpop.xlane.xlu1 %1750 }
 0xd90   :  { %v2647_v59 = vpop.eup %2646  ;;  %2650 = vrcp.f32 %v1751_v0 }
 0xd91   :  { %v1754_v6 = vmul.f32 %v2647_v59, %v2633_v39  ;;  %v2534_v21 = vpop.permute.xlu2 %2533  ;;  %v2649_v9 = vpop.eup %2648  ;;  %v2451_v59 = vld [vmem:[%s3602_s13 + $0x18] sm:$0xff] }
 0xd92   :  { %v2535_v11 = vunpack.i.l.bf16 %v2534_v21  ;;  %v2536_v12 = vunpack.i.h.bf16 %v2534_v21  ;;  %v1654_v17 = vmul.f32 %v2649_v9, %v3432_v27 }
 0xd93   :  { %2365 = vmatmul.msk.f32.vlgmr.msrb.gmra.mxu2 %vm334_vm11, %v1754_v6  ;;  %v2450_v6 = vld [vmem:[%s3602_s13 + $0x10] sm:$0xff] }
 0xd94   :  { %1682 = vmatpush.msrb.mxu1 %v2535_v11 }
 0xd96   :  { %1683 = vmatpush.msrb.mxu1 %v2536_v12  ;;  %v2651_v18 = vpop.eup %2650 }
 0xd97   :  { %2359 = vmatmul.msk.f32.vlgmr.msrb.gmra.mxu1 %vm334_vm11, %v1654_v17  ;;  %v1755_v13 = vmul.f32 %v2651_v18, %v2635_v41 }
 0xd98   :  { %1953 = vmatpush.bf16.msra.mxu1 %v2451_v59 }
 0xd9b   :  { %2366 = vmatmul.msk.f32.gmra.mxu2 %vm334_vm11, %v1755_v13 }
 0xd9c   :  { %1954 = vmatpush.bf16.msra.mxu1 %v2450_v6 }
 0xdaa   :  { %v1485_v27 = vpop.f32.mrf.mxu1 }
 0xdb2   :  { %v1488_v29 = vpop.f32.mrf.mxu1 }
 0xdca   :  { %v1651_v19 = vpop.xlane.xlu2 %1650 }
 0xdcb   :  { %2652 = vrcp.f32 %v1651_v19 }
 0xdd1   :  { %v2653_v20 = vpop.eup %2652 }
 0xdd2   :  { %v1655_v14 = vmul.f32 %v2653_v20, %v2641_v57 }
 0xdd4   :  { %2360 = vmatmul.msk.f32.gmra.mxu1 %vm334_vm11, %v1655_v14 }
 0xe02   :  { %v1585_v22 = vpop.f32.mrf.mxu2 }
 0xe0d   :  { %v1588_v55 = vpop.f32.mrf.mxu2 }
 0xe0e   :  { %v2542_v31 = vpack.i.bf16 %v1588_v55, %v1585_v22 }
 0xe10   :  { %2543 = vrot.lane.b32.xlu0 %v2542_v31, %s3693_s7 }
 0xe14   :  { %v1685_v30 = vpop.f32.mrf.mxu1 }
 0xe16   :  { %v1785_v24 = vpop.f32.mrf.mxu2 }
 0xe1e   :  { %v1788_v23 = vpop.f32.mrf.mxu2 }
 0xe1f   :  { %v2547_v25 = vpack.i.bf16 %v1788_v23, %v1785_v24 }
 0xe21   :  { %2548 = vrot.lane.b32.xlu0 %v2547_v25, %s3711_s5  ;;  %v2564_v25 = vld [vmem:[%s3599_s11 + $0x1] ss:$0 sm:$0xff]  ;;  %s3721_s5 = sld [smem:[#allocation21_spill]] }
 0xe51   :  { %v1688_v32 = vpop.f32.mrf.mxu1 }
 0xe52   :  { %v2537_v33 = vpack.i.bf16 %v1688_v32, %v1685_v30  ;;  %v2565_v32 = vld [vmem:[%s3600_s12 + $0x1] ss:$0 sm:$0xff]  ;;  %s3717_s12 = sld [smem:[#allocation18_spill]] }
 0xe54   :  { %2538 = vrot.lane.b32.xlu1 %v2537_v33, %s3700_s22  ;;  %s3715_s22 = sld [smem:[#allocation14_spill]] }
 0xe82   :  { %v2544_v35 = vpop.permute.xlu0 %2543 }
 0xe83   :  { %v2546_v26 = vunpack.i.h.bf16 %v2544_v35  ;;  %v2545_v36 = vunpack.i.l.bf16 %v2544_v35 }
 0xe85   :  { %v1815_v40 = vsel %vm328_vm8, %v1485_v27, %v2545_v36  ;;  %v1816_v41 = vsel %vm328_vm8, %v1488_v29, %v2546_v26 }
 0xe93   :  { %v2549_v49 = vpop.permute.xlu0 %2548 }
 0xe94   :  { %v2551_v28 = vunpack.i.h.bf16 %v2549_v49  ;;  %v2550_v5 = vunpack.i.l.bf16 %v2549_v49  ;;  %v2566_v49 = vld [vmem:[%s3601_s14 + $0x1] ss:$0 sm:$0xff] }
 0xec6   :  { %v2539_v37 = vpop.permute.xlu1 %2538 }
 0xec7   :  { %v2541_v38 = vunpack.i.h.bf16 %v2539_v37  ;;  %v2540_v39 = vunpack.i.l.bf16 %v2539_v37 }
 0xec9   :  { %v1818_v44 = vsel %vm334_vm11, %v1816_v41, %v2541_v38  ;;  %v1817_v45 = vsel %vm334_vm11, %v1815_v40, %v2540_v39 }
 0xeca   :  { %v1820_v53 = vsel %vm340_vm13, %v1818_v44, %v2551_v28  ;;  %v1819_v2 = vsel %vm340_vm13, %v1817_v45, %v2550_v5 }
 0xecb   :  { %v1828_v47 = vpack.c.bf16 %v1820_v53, %v1819_v2 }
 0xecd   :  { %2380 = vmatmul.msk.bf16.vlgmr.msrb.gmra.mxu0 %vm89_vm0, %v1828_v47 }
 0xf4a   :  { %v1856_v50 = vpop.f32.mrf.mxu0 }
 0xf4b   :  { %v1857_v51 = vadd.f32 %v2563_v42, %v1856_v50 }
 0xf4d   :  { %v3475_v52 = vadd.f32 %v1857_v51, %v3228_v46 }
 0xf4f   :  { %v1867_v60 = vsel %vm89_vm0, %v3475_v52, 0.0 }
 0xf50   :  { %1868 = vadd.xlane.f32.xlu0 %v1867_v60 }
 0xf52   :  { %v1858_v1 = vpop.f32.mrf.mxu0 }
 0xf53   :  { %v1859_v56 = vadd.f32 %v2563_v42, %v1858_v1 }
 0xf55   :  { %v3480_v58 = vadd.f32 %v1859_v56, %v3233_v48 }
 0xf57   :  { %v1870_v43 = vsel %vm89_vm0, %v3480_v58, 0.0 }
 0xf58   :  { %1871 = vadd.xlane.f32.xlu2 %v1870_v43 }
 0xfc3   :  { %v1869_v57 = vpop.xlane.xlu0 %1868 }
 0xfc4   :  { %v1873_v61 = vmul.f32 %v1869_v57, %v2837_v10 }
 0xfc6   :  { %v1875_v54 = vsub.f32 %v3475_v52, %v1873_v61  ;;  %v2455_v61 = vld [vmem:[%s3604_s15 + $0x38] sm:$0xff] }
 0xfc7   :  { %2095 = vmatpush.bf16.msrb.mxu3 %v2455_v61 }
 0xfc8   :  { %v1877_v46 = vmul.f32 %v1875_v54, %v1875_v54 }
 0xfca   :  { %v1879_v63 = vsel %vm89_vm0, %v1877_v46, 0.0 }
 0xfcb   :  { %v1872_v62 = vpop.xlane.xlu2 %1871  ;;  %1880 = vadd.xlane.f32.xlu1 %v1879_v63 }
 0xfcc   :  { %v1874_v8 = vmul.f32 %v1872_v62, %v2837_v10 }
 0xfce   :  { %v1876_v3 = vsub.f32 %v3480_v58, %v1874_v8 }
 0xfd0   :  { %v1878_v48 = vmul.f32 %v1876_v3, %v1876_v3 }
 0xfd2   :  { %v1882_v4 = vsel %vm89_vm0, %v1878_v48, 0.0 }
 0xfd3   :  { %1883 = vadd.xlane.f32.xlu2 %v1882_v4  ;;  %v2454_v4 = vld [vmem:[%s3604_s15 + $0x30] sm:$0xff] }
 0xfd4   :  { %2096 = vmatpush.bf16.msrb.mxu3 %v2454_v4 }
0x103e   :  { %v1881_v15 = vpop.xlane.xlu1 %1880 }
0x103f   :  { %v1885_v16 = vmul.f32 %v1881_v15, %v2837_v10 }
0x1041   :  { %v1887_v0 = vadd.f32 1e-05, %v1885_v16 }
0x1043   :  { %2654 = vrsqrt.f32 %v1887_v0  ;;  %vm1895_vm9 = vweird.f32 %v1887_v0 }
0x1046   :  { %v1884_v21 = vpop.xlane.xlu2 %1883 }
0x1047   :  { %v1886_v9 = vmul.f32 %v1884_v21, %v2837_v10 }
0x1049   :  { %v2655_v11 = vpop.eup %2654  ;;  %v1888_v12 = vadd.f32 1e-05, %v1886_v9  ;;  %v2453_v9 = vld [vmem:[%s3604_s15 + $0x28] sm:$0xff] }
0x104a   :  { %v1890_v17 = vmul.f32 %v2655_v11, %v1887_v0  ;;  %vm1896_vm8 = vweird.f32 %v2655_v11  ;;  %2097 = vmatpush.bf16.msrb.mxu3 %v2453_v9 }
0x104b   :  { %2656 = vrsqrt.f32 %v1888_v12  ;;  %vm1897_vm10 = vmor %vm1895_vm9, %vm1896_vm8  ;;  %vm1905_vm12 = vweird.f32 %v1888_v12  ;;  %vm2110_vm8 = vcmask 1040384   ;;  %vm2114_vm9 = vcmask 254976  }
0x104c   :  { %v1891_v18 = vmul.f32 %v2655_v11, %v1890_v17 }
0x104e   :  { %v1892_v13 = vmul.f32 0.5, %v1891_v18 }
0x1050   :  { %v1893_v19 = vsub.f32 1.5, %v1892_v13 }
0x1051   :  { %v2657_v20 = vpop.eup %2656 }
0x1052   :  { %v1894_v14 = vmul.f32 %v2655_v11, %v1893_v19  ;;  %v1900_v22 = vmul.f32 %v2657_v20, %v1888_v12  ;;  %vm1906_vm11 = vweird.f32 %v2657_v20  ;;  %v2452_v19 = vld [vmem:[%s3604_s15 + $0x20] sm:$0xff] }
0x1053   :  { %vm1907_vm13 = vmor %vm1905_vm12, %vm1906_vm11  ;;  %2098 = vmatpush.bf16.msrb.mxu3 %v2452_v19  ;;  %v2457_v19 = vld [vmem:[%s3713_s28 + $0x8] sm:$0xff] }
0x1054   :  { %v1901_v55 = vmul.f32 %v2657_v20, %v1900_v22  ;;  %v1898_v31 = vsel %vm1897_vm10, %v2655_v11, %v1894_v14  ;;  %2175 = vmatpush.bf16.msra.mxu2 %v2457_v19 }
0x1055   :  { %v1909_v27 = vmul.f32 %v1898_v31, %v1875_v54 }
0x1056   :  { %v1902_v24 = vmul.f32 0.5, %v1901_v55 }
0x1057   :  { %v1914_v33 = vmul.f32 %v2564_v25, %v1909_v27 }
0x1058   :  { %v1903_v23 = vsub.f32 1.5, %v1902_v24 }
0x1059   :  { %v1919_v35 = vadd.f32 %v2565_v32, %v1914_v33 }
0x105a   :  { %v1904_v29 = vmul.f32 %v2657_v20, %v1903_v23 }
0x105c   :  { %v1908_v30 = vsel %vm1907_vm13, %v2657_v20, %v1904_v29 }
0x105d   :  { %v1910_v34 = vmul.f32 %v1908_v30, %v1876_v3 }
0x105f   :  { %v1915_v7 = vmul.f32 %v2564_v25, %v1910_v34 }
0x1061   :  { %v1920_v26 = vadd.f32 %v2565_v32, %v1915_v7 }
0x1063   :  { %v1928_v36 = vpack.c.bf16 %v1920_v26, %v1919_v35 }
0x1065   :  { %2396 = vmatmul.msk.bf16.vlgmr.msra.gmra.mxu1 %vm89_vm0, %v1928_v36 }
0x10e2   :  { %v1956_v37 = vpop.f32.mrf.mxu1 }
0x10e3   :  { %v3508_v38 = vadd.f32 %v2566_v49, %v1956_v37 }
0x10e5   :  { %v3511_v39 = vmul.f32 0.70710677, %v3508_v38 }
0x10e7   :  { %v1965_v40 = vmul.f32 %v3511_v39, %v3511_v39 }
0x10e9   :  { %v1966_v41 = vmin.f32 %v1965_v40, 16.0 }
0x10ea   :  { %v1958_v28 = vpop.f32.mrf.mxu1 }
0x10eb   :  { %v1967_v5 = vmul.f32 2.1237322e-06, %v1966_v41  ;;  %v1978_v44 = vmul.f32 3.8918573e-05, %v1966_v41  ;;  %v3515_v45 = vadd.f32 %v2566_v49, %v1958_v28 }
0x10ed   :  { %v1968_v53 = vadd.f32 0.00028619796, %v1967_v5  ;;  %v1979_v2 = vadd.f32 0.001143296, %v1978_v44  ;;  %v3518_v47 = vmul.f32 0.70710677, %v3515_v45 }
0x10ef   :  { %v1980_v42 = vmul.f32 %v1979_v2, %v1966_v41  ;;  %v2005_v50 = vmul.f32 %v3518_v47, %v3518_v47  ;;  %v1969_v51 = vmul.f32 %v1968_v53, %v1966_v41 }
0x10f1   :  { %v1981_v60 = vadd.f32 0.014752088, %v1980_v42  ;;  %v2006_v1 = vmin.f32 %v2005_v50, 16.0  ;;  %v1970_v54 = vadd.f32 0.0036580483, %v1969_v51 }
0x10f3   :  { %v1982_v56 = vmul.f32 %v1981_v60, %v1966_v41  ;;  %v2007_v43 = vmul.f32 2.1237322e-06, %v2006_v1  ;;  %v2018_v57 = vmul.f32 3.8918573e-05, %v2006_v1  ;;  %v1971_v15 = vmul.f32 %v1970_v54, %v1966_v41 }
0x10f5   :  { %v1983_v46 = vadd.f32 0.112945676, %v1982_v56  ;;  %v2008_v63 = vadd.f32 0.00028619796, %v2007_v43  ;;  %v2019_v62 = vadd.f32 0.001143296, %v2018_v57 }
0x10f6   :  { %v1972_v11 = vadd.f32 0.05243302, %v1971_v15 }
0x10f7   :  { %v1984_v8 = vmul.f32 %v1983_v46, %v1966_v41  ;;  %v2009_v3 = vmul.f32 %v2008_v63, %v2006_v1  ;;  %v2020_v48 = vmul.f32 %v2019_v62, %v2006_v1  ;;  %v1961_v63 = vmul.f32 0.5, %v3508_v38 }
0x10f8   :  { %v1973_v20 = vmul.f32 %v1972_v11, %v1966_v41  ;;  %v1962_v62 = vmul.f32 0.5, %v3515_v45 }
0x10f9   :  { %v1985_v16 = vadd.f32 0.4994258, %v1984_v8  ;;  %v2010_v59 = vadd.f32 0.0036580483, %v2009_v3  ;;  %v2021_v0 = vadd.f32 0.014752088, %v2020_v48 }
0x10fa   :  { %v1974_v24 = vadd.f32 0.18741608, %v1973_v20 }
0x10fb   :  { %v1986_v6 = vmul.f32 %v1985_v16, %v1966_v41  ;;  %v2022_v21 = vmul.f32 %v2021_v0, %v2006_v1  ;;  %v2011_v17 = vmul.f32 %v2010_v59, %v2006_v1 }
0x10fc   :  { %v1975_v30 = vmul.f32 %v1974_v24, %v1966_v41 }
0x10fd   :  { %v1987_v12 = vadd.f32 1.0, %v1986_v6  ;;  %v2023_v18 = vadd.f32 0.112945676, %v2022_v21  ;;  %v2012_v14 = vadd.f32 0.05243302, %v2011_v17 }
0x10fe   :  { %v1976_v26 = vadd.f32 1.1283791, %v1975_v30 }
0x10ff   :  { %2658 = vrcp.f32 %v1987_v12  ;;  %v2024_v13 = vmul.f32 %v2023_v18, %v2006_v1  ;;  %v2013_v25 = vmul.f32 %v2012_v14, %v2006_v1  ;;  %v1999_v33 = vand.u32 2147483648, %v1987_v12 }
0x1100   :  { %v1997_v7 = vand.u32 2147483647, %v1987_v12  ;;  %vm1993_vm5 = vweird.f32 %v1987_v12  ;;  %v1977_v44 = vmul.f32 %v1976_v26, %v3511_v39  ;;  %v2184_v26 = vld [vmem:[%s3716_s25 + $0x8] sm:$0xff] }
0x1101   :  { %v2025_v22 = vadd.f32 0.4994258, %v2024_v13  ;;  %v2014_v34 = vadd.f32 0.18741608, %v2013_v25  ;;  %v2000_v37 = vor.u32 1.1754944e-38, %v1999_v33 }
0x1102   :  { %vm1998_vm15 = vcmp.eq.f32.partialorder %v1997_v7, 8.507059e+37  ;;  %v2186_v7 = vld [vmem:[%s3716_s25 + $0x18] sm:$0xff] }
0x1103   :  { %v2026_v55 = vmul.f32 %v2025_v22, %v2006_v1  ;;  %v2015_v40 = vmul.f32 %v2014_v34, %v2006_v1  ;;  %2206 = vmatpush.msra.mxu0 %v2186_v7 }
0x1105   :  { %v2659_v31 = vpop.eup %2658  ;;  %v2027_v27 = vadd.f32 1.0, %v2026_v55  ;;  %v2016_v41 = vadd.f32 1.1283791, %v2015_v40 }
0x1106   :  { %v1989_v23 = vmul.f32 %v2659_v31, %v1987_v12  ;;  %vm1994_vm14 = vweird.f32 %v2659_v31 }
0x1107   :  { %2660 = vrcp.f32 %v2027_v27  ;;  %vm1995_vm7 = vmor %vm1993_vm5, %vm1994_vm14  ;;  %v2039_v2 = vand.u32 2147483648, %v2027_v27  ;;  %v2037_v51 = vand.u32 2147483647, %v2027_v27  ;;  %vm2033_vm2 = vweird.f32 %v2027_v27 }
0x1108   :  { %v1990_v29 = vsub.f32 1.0, %v1989_v23  ;;  %v2017_v57 = vmul.f32 %v2016_v41, %v3518_v47  ;;  %v2567_v47 = vld [vmem:[%s3603_s16 + $0x1] ss:$0 sm:$0xff]  ;;  %s3720_s16 = sld [smem:[#allocation20_spill]] }
0x1109   :  { %v2040_v56 = vor.u32 1.1754944e-38, %v2039_v2  ;;  %vm2038_vm4 = vcmp.eq.f32.partialorder %v2037_v51, 8.507059e+37 }
0x110a   :  { %v1991_v32 = vmul.f32 %v2659_v31, %v1990_v29 }
0x110c   :  { %v1992_v35 = vadd.f32 %v2659_v31, %v1991_v32 }
0x110d   :  { %v2661_v36 = vpop.eup %2660 }
0x110e   :  { %v1996_v49 = vsel %vm1995_vm7, %v2659_v31, %v1992_v35  ;;  %v2029_v28 = vmul.f32 %v2661_v36, %v2027_v27  ;;  %vm2034_vm1 = vweird.f32 %v2661_v36  ;;  %v2568_v27 = vld [vmem:[%s3714_s27] ss:$0 sm:$0xff]  ;;  %v2185_v35 = vld [vmem:[%s3716_s25 + $0x10] sm:$0xff] }
0x110f   :  { %v2001_v5 = vsel %vm1998_vm15, %v2000_v37, %v1996_v49  ;;  %vm2035_vm3 = vmor %vm2033_vm2, %vm2034_vm1  ;;  %2207 = vmatpush.msra.mxu0 %v2185_v35  ;;  %v30_v49 = vstv %s3717_s12  ;;  %v2570_v37 = vld [vmem:[%s3718_s1] ss:$0 sm:$0xff] }
0x1110   :  { %v2030_v53 = vsub.f32 1.0, %v2029_v28  ;;  %v2002_v42 = vmul.f32 %v2001_v5, %v1977_v44  ;;  %31 = vst [vmem:[#allocation2] sm:$0x1] %v30_v49 }
0x1111   :  { %2208 = vmatpush.msra.mxu0 %v2184_v26 }
0x1112   :  { %v2031_v50 = vmul.f32 %v2661_v36, %v2030_v53  ;;  %v2397_v43 = vclamps-f32 %v2002_v42, 1.0 }
0x1114   :  { %v2032_v60 = vadd.f32 %v2661_v36, %v2031_v50  ;;  %v2045_v46 = vadd.f32 1.0, %v2397_v43 }
0x1116   :  { %v2036_v1 = vsel %vm2035_vm3, %v2661_v36, %v2032_v60  ;;  %v2047_v3 = vmul.f32 %v2045_v46, %v1961_v63  ;;  %v2183_v36 = vld [vmem:[%s3716_s25] sm:$0xff] }
0x1117   :  { %v2041_v61 = vsel %vm2038_vm4, %v2040_v56, %v2036_v1  ;;  %2209 = vmatpush.msra.mxu0 %v2183_v36  ;;  %v2571_v53 = vld [vmem:[#allocation2] ss:$0 sm:$0xff] }
0x1118   :  { %v2042_v54 = vmul.f32 %v2041_v61, %v2017_v57 }
0x111a   :  { %v2398_v39 = vclamps-f32 %v2042_v54, 1.0 }
0x111c   :  { %v2046_v8 = vadd.f32 1.0, %v2398_v39 }
0x111e   :  { %v2048_v48 = vmul.f32 %v2046_v8, %v1962_v62 }
0x1120   :  { %v2060_v4 = vpack.c.bf16 %v2048_v48, %v2047_v3  ;;  %v2233_v3 = vld [vmem:[%s3720_s16] sm:$0x3] }
0x1122   :  { %2424 = vmatmul.msk.bf16.vlgmr.msrb.gmra.mxu3 %vm1099_vm6, %v2060_v4 }
0x11a5   :  { %v2100_v15 = vpop.f32.mrf.mxu3 }
0x11a6   :  { %v2101_v59 = vadd.f32 %v2567_v47, %v2100_v15 }
0x11a8   :  { %v2105_v38 = vadd.f32 %v2101_v59, %v3475_v52  ;;  %v2456_v52 = vld [vmem:[%s3713_s28] sm:$0xff] }
0x11a9   :  { %2176 = vmatpush.bf16.msra.mxu2 %v2456_v52 }
0x11ad   :  { %v2102_v16 = vpop.f32.mrf.mxu3 }
0x11ae   :  { %v2103_v0 = vadd.f32 %v2567_v47, %v2102_v16  ;;  %v2244_v16 = vsub.f32 1.0, %v2233_v3 }
0x11b0   :  { %v2106_v6 = vadd.f32 %v2103_v0, %v3480_v58 }
0x11b2   :  { %v2108_v45 = vrot.slane %v2106_v6, 7 }
0x11b4   :  { %v2111_v21 = vsel %vm2110_vm8, %v2105_v38, %v2108_v45 }
0x11b5   :  { %v2115_v9 = vsel %vm2114_vm9, %v2111_v21, 0.0 }
0x11b6   :  { %2116 = vadd.xlane.f32.xlu2 %v2115_v9 }
0x1229   :  { %v2117_v11 = vpop.xlane.xlu2 %2116 }
0x122a   :  { %v2118_v12 = vmul.f32 %v2117_v11, %v2837_v10 }
0x122c   :  { %v2119_v17 = vsub.f32 %v2111_v21, %v2118_v12 }
0x122e   :  { %v2120_v18 = vmul.f32 %v2119_v17, %v2119_v17 }
0x1230   :  { %v2121_v13 = vsel %vm2114_vm9, %v2120_v18, 0.0 }
0x1231   :  { %2122 = vadd.xlane.f32.xlu2 %v2121_v13 }
0x12a4   :  { %v2123_v58 = vpop.xlane.xlu2 %2122 }
0x12a5   :  { %v2124_v20 = vmul.f32 %v2123_v58, %v2837_v10  ;;  %v2569_v10 = vld [vmem:[%s3715_s22] ss:$0 sm:$0xff] }
0x12a7   :  { %v2125_v14 = vadd.f32 1e-05, %v2124_v20 }
0x12a9   :  { %2662 = vrsqrt.f32 %v2125_v14  ;;  %vm2132_vm10 = vweird.f32 %v2125_v14 }
0x12af   :  { %v2663_v22 = vpop.eup %2662 }
0x12b0   :  { %v2127_v55 = vmul.f32 %v2663_v22, %v2125_v14  ;;  %vm2133_vm6 = vweird.f32 %v2663_v22 }
0x12b1   :  { %vm2134_vm11 = vmor %vm2132_vm10, %vm2133_vm6 }
0x12b2   :  { %v2128_v31 = vmul.f32 %v2663_v22, %v2127_v55 }
0x12b4   :  { %v2129_v24 = vmul.f32 0.5, %v2128_v31 }
0x12b6   :  { %v2130_v23 = vsub.f32 1.5, %v2129_v24 }
0x12b8   :  { %v2131_v25 = vmul.f32 %v2663_v22, %v2130_v23 }
0x12ba   :  { %v2135_v29 = vsel %vm2134_vm11, %v2663_v22, %v2131_v25 }
0x12bb   :  { %v2136_v30 = vmul.f32 %v2135_v29, %v2119_v17 }
0x12bd   :  { %v2140_v32 = vmul.f32 %v2568_v27, %v2136_v30 }
0x12bf   :  { %v2144_v33 = vadd.f32 %v2569_v10, %v2140_v32 }
0x12c1   :  { %v2150_v34 = vpack.c.bf16 %v2144_v33, %v2144_v33 }
0x12c3   :  { %2433 = vmatmul.msk.bf16.vlgmr.msra.gmra.mxu2 %vm89_vm0, %v2150_v34 }
0x1346   :  { %v2178_v40 = vpop.f32.mrf.mxu2 }
0x1347   :  { %v2179_v28 = vadd.f32 %v2570_v37, %v2178_v40 }
0x1349   :  { %2664 = vtanh.f32 %v2179_v28 }
0x134e   :  { %v2180_v5 = vpop.f32.mrf.mxu2 }
0x134f   :  { %v2665_v44 = vpop.eup %2664 }
0x1350   :  { %2434 = vmatmul.msk.f32.vlgmr.msra.gmra.mxu0 %vm89_vm0, %v2665_v44  ;;  %vm2241_vm0 = vcmask 1024  }
0x13cd   :  { %v2211_v41 = vpop.f32.mrf.mxu0 }
0x13ce   :  { %v2212_v2 = vadd.f32 %v2571_v53, %v2211_v41 }
0x13d0   :  { %v2435_v42 = vmul.f32 -1.442695, %v2212_v2 }
0x13d2   :  { %2666 = vpow2.f32 %v2435_v42 }
0x13d8   :  { %v2667_v50 = vpop.eup %2666 }
0x13d9   :  { %v2217_v51 = vadd.f32 1.0, %v2667_v50 }
0x13db   :  { %2668 = vrcp.f32 %v2217_v51  ;;  %v2229_v57 = vand.u32 2147483648, %v2217_v51  ;;  %v2227_v61 = vand.u32 2147483647, %v2217_v51  ;;  %vm2223_vm13 = vweird.f32 %v2217_v51 }
0x13dd   :  { %v2230_v46 = vor.u32 1.1754944e-38, %v2229_v57  ;;  %vm2228_vm5 = vcmp.eq.f32.partialorder %v2227_v61, 8.507059e+37 }
0x13e1   :  { %v2669_v60 = vpop.eup %2668 }
0x13e2   :  { %v2219_v56 = vmul.f32 %v2669_v60, %v2217_v51  ;;  %vm2224_vm12 = vweird.f32 %v2669_v60 }
0x13e3   :  { %vm2225_vm14 = vmor %vm2223_vm13, %vm2224_vm12 }
0x13e4   :  { %v2220_v43 = vsub.f32 1.0, %v2219_v56 }
0x13e6   :  { %v2221_v1 = vmul.f32 %v2669_v60, %v2220_v43 }
0x13e8   :  { %v2222_v54 = vadd.f32 %v2669_v60, %v2221_v1 }
0x13ea   :  { %v2226_v39 = vsel %vm2225_vm14, %v2669_v60, %v2222_v54 }
0x13eb   :  { %v2231_v63 = vsel %vm2228_vm5, %v2230_v46, %v2226_v39 }
0x13ec   :  { %2670 = vlog2.f32 %v2231_v63  ;;  %v2237_v62 = vsub.f32 1.0, %v2231_v63  ;;  %2242 = vst.msk [vmem:[%s3719_s20] sm:$0x3] %vm2241_vm0, %v2231_v63 }
0x13ee   :  { %2672 = vlog2.f32 %v2237_v62 }
0x13f2   :  { %v2671_v8 = vpop.eup %2670 }
0x13f3   :  { %v2235_v48 = vmul.f32 0.6931472, %v2671_v8 }
0x13f4   :  { %v2673_v4 = vpop.eup %2672 }
0x13f5   :  { %v2236_v15 = vmax.f32 %v2235_v48, -100.0  ;;  %v2239_v47 = vmul.f32 0.6931472, %v2673_v4 }
0x13f7   :  { %v2240_v59 = vmax.f32 %v2239_v47, -100.0  ;;  %v2243_v0 = vmul.f32 %v2236_v15, %v2233_v3 }
0x13f9   :  { %v2245_v6 = vmul.f32 %v2244_v16, %v2240_v59 }
0x13fb   :  { %v2246_v38 = vadd.f32 %v2245_v6, %v2243_v0 }
0x13fd   :  { %v2247_v45 = vsub.f32 0.0, %v2246_v38 }
0x13ff   :  { %2248 = vst.msk [vmem:[%s3721_s5] sm:$0x3] %vm2241_vm0, %v2247_v45 }

</bundles_post_ra>
